<compile_context>
chip_gen: v7x
topology: tpu7x:2x2x1
jax: 0.10.0
libtpu: 0.0.40
codegen_flags: <defaults>
</compile_context>

<pallas_src>
import math
import functools

import jax
import jax.numpy as jnp
from jax import lax
from jax.experimental import pallas as pl
from jax.experimental.pallas import tpu as pltpu

EPS = 1e-5


# ------------------------------ Pallas kernel -------------------------------

def _fused_bottleneck_kernel(x_ref, w1_ref, w2f_ref, w3_ref, wsc_ref, o_ref,
                             pad_ref, slab_ref, *, H, W):
    """Fully fused Bottleneck forward (everything VMEM-resident).

    x_ref:   (N, cin, H*W)   input, NCHW with the spatial dims merged
    w1_ref:  (c1, cin)       projected 1x1 conv1
    w2f_ref: (c2, 9*c1)      projected 3x3 conv2, tap-major im2col layout
    w3_ref:  (c3, c2)        projected 1x1 conv3
    wsc_ref: (c3, cin)       shortcut 1x1 conv
    o_ref:   (N, c3, H*W)    output, NCHW with the spatial dims merged
    pad_ref: (c1, H+2, W+2)  zero-padded per-image h1 window (scratch)
    slab_ref:(9, c1, H*W)    im2col slab (scratch)
    """
    N, cin, HW = x_ref.shape
    c1 = w1_ref.shape[0]
    c3 = w3_ref.shape[0]
    inv_cnt = 1.0 / float(N * HW)

    w1 = w1_ref[...]
    w2f = w2f_ref[...]
    w3 = w3_ref[...]
    wsc = wsc_ref[...]

    # -------- stage 1: y1 = conv1x1(x); bn1 (two-sweep batch stats) + relu --------
    y1s = []
    for n in range(N):
        y1s.append(jnp.dot(w1, x_ref[n], preferred_element_type=jnp.float32))

    m1 = sum([jnp.sum(y, axis=1, keepdims=True) for y in y1s]) * inv_cnt        # (c1,1)
    v1 = sum([jnp.sum(jnp.square(y - m1), axis=1, keepdims=True)
              for y in y1s]) * inv_cnt
    r1 = lax.rsqrt(v1 + EPS)
    h1s = [jnp.maximum((y - m1) * r1, 0.0) for y in y1s]

    # -------- stage 2: 3x3 conv as ONE im2col matmul per image; bn2 + relu --------
    pad_ref[...] = jnp.zeros_like(pad_ref)          # halo stays zero afterwards
    y2s = []
    for n in range(N):
        pad_ref[:, 1:H + 1, 1:W + 1] = h1s[n].reshape(c1, H, W)
        for t in range(9):
            kh, kw = t // 3, t % 3
            slab_ref[t] = pad_ref[:, kh:kh + H, kw:kw + W].reshape(c1, HW)
        y2s.append(jnp.dot(w2f, slab_ref[...].reshape(9 * c1, HW),
                           preferred_element_type=jnp.float32))               # (c2, HW)

    m2 = sum([jnp.sum(y, axis=1, keepdims=True) for y in y2s]) * inv_cnt
    v2 = sum([jnp.sum(jnp.square(y - m2), axis=1, keepdims=True)
              for y in y2s]) * inv_cnt
    r2 = lax.rsqrt(v2 + EPS)
    h2s = [jnp.maximum((y - m2) * r2, 0.0) for y in y2s]

    # -------- stage 3: y3 = conv1x1(h2), ysc = conv1x1_sc(x); bn3/bn_sc; add; relu --------
    y3s = [jnp.dot(w3, h, preferred_element_type=jnp.float32) for h in h2s]
    m3 = sum([jnp.sum(y, axis=1, keepdims=True) for y in y3s]) * inv_cnt
    v3 = sum([jnp.sum(jnp.square(y - m3), axis=1, keepdims=True)
              for y in y3s]) * inv_cnt
    r3 = lax.rsqrt(v3 + EPS)

    yscs = [jnp.dot(wsc, x_ref[n], preferred_element_type=jnp.float32)
            for n in range(N)]
    msc = sum([jnp.sum(y, axis=1, keepdims=True) for y in yscs]) * inv_cnt
    vsc = sum([jnp.sum(jnp.square(y - msc), axis=1, keepdims=True)
               for y in yscs]) * inv_cnt
    rsc = lax.rsqrt(vsc + EPS)

    for n in range(N):
        out = (y3s[n] - m3) * r3 + (yscs[n] - msc) * rsc                       # (c3, HW)
        o_ref[n] = jnp.maximum(out, 0.0).astype(o_ref.dtype)


# --------------------------- pallas_call wrapper -----------------------------

def project(meta_w, P, Q):
    # TProjection.forward: projected[p,q,h,w] = sum_{o,i} meta[o,i,h,w] P[o,p] Q[i,q]
    return jnp.einsum('oihw,op,iq->pqhw', meta_w, P, Q)


def bottleneck_forward(x_nchw, params):
    """Single-shot Bottleneck forward.  x_nchw: (N, Cin_p, H, W) -> (N, C3_p, H, W)."""
    x = x_nchw.astype(jnp.float32)
    N, cin, H, W = x.shape
    HW = H * W
    x3 = x.reshape(N, cin, HW)                       # free trailing-dim merge

    # Projected conv weights, channels-as-rows matmul layouts.
    w1 = project(params['conv1_kernel'], params['P1'], params['Q1'])[:, :, 0, 0]   # (c1, cin)
    w2 = project(params['conv2_kernel'], params['P2'], params['Q2'])               # (c2, c1, 3, 3)
    w3 = project(params['conv3_kernel'], params['P3'], params['Q3'])[:, :, 0, 0]   # (c3, c2)
    wsc = params['shortcut_w'][:, :, 0, 0]                                          # (c3, cin)
    c1, c2, c3 = w1.shape[0], w2.shape[0], w3.shape[0]
    # tap-major im2col weight: w2f[co, (kh*3+kw)*c1 + ci] = w2[co, ci, kh, kw]
    w2f = jnp.transpose(w2, (0, 2, 3, 1)).reshape(c2, 9 * c1)

    # Fused fast path requires the whole working set to be VMEM resident.
    # TODO(synk): streaming multi-pass fallback for > VMEM activation sets.
    work_bytes = 4 * (N * HW * (cin + 2 * c1 + 2 * c2 + 3 * c3)
                      + 9 * c1 * HW + c1 * (H + 2) * (W + 2)
                      + 9 * c1 * c2 + c1 * cin + c2 * c3 + cin * c3)
    assert work_bytes < 12 * 1024 * 1024, (
        "fused fast path needs VMEM residency; use the streaming variant")

    kernel = functools.partial(_fused_bottleneck_kernel, H=H, W=W)
    out3 = pl.pallas_call(
        kernel,
        out_shape=jax.ShapeDtypeStruct((N, c3, HW), jnp.float32),
        grid=(1,),
        in_specs=[
            pl.BlockSpec((N, cin, HW), lambda i: (0, 0, 0)),
            pl.BlockSpec((c1, cin), lambda i: (0, 0)),
            pl.BlockSpec((c2, 9 * c1), lambda i: (0, 0)),
            pl.BlockSpec((c3, c2), lambda i: (0, 0)),
            pl.BlockSpec((c3, cin), lambda i: (0, 0)),
        ],
        out_specs=pl.BlockSpec((N, c3, HW), lambda i: (0, 0, 0)),
        scratch_shapes=[
            pltpu.VMEM((c1, H + 2, W + 2), jnp.float32),   # padded h1 window
            pltpu.VMEM((9, c1, HW), jnp.float32),          # im2col slab
        ],
        compiler_params=pltpu.CompilerParams(
            dimension_semantics=("arbitrary",)),
    )(x3, w1, w2f, w3, wsc)

    return out3.reshape(N, c3, H, W)                 # free trailing-dim split (NCHW out)


# ------------------------ parameter init (matches PyTorch) ------------------

def init_projection(key, meta_c, curr_c, candidate_list, overlap=1.0):
    # Mirrors TProjection._init_projection (identity placement + 0.01 * N(0,1)).
    Wm = jnp.zeros((meta_c, curr_c), jnp.float32)
    ind = candidate_list.index(curr_c)
    cum_c = 0
    for id_p in range(ind):
        cum_c += int((1 - overlap) * candidate_list[id_p])
    Wm = Wm.at[cum_c:cum_c + curr_c, :].set(jnp.eye(curr_c, dtype=jnp.float32))
    return Wm + 0.01 * jax.random.normal(key, (meta_c, curr_c), jnp.float32)


def kaiming_uniform(key, shape):
    # kaiming_uniform_(a=sqrt(5)) -> uniform(-1/sqrt(fan_in), 1/sqrt(fan_in)).
    fan_in = shape[1] * shape[2] * shape[3]
    bound = 1.0 / math.sqrt(fan_in)
    return jax.random.uniform(key, shape, jnp.float32, -bound, bound)


# --------------------------- pure-JAX reference -----------------------------

def _bn_ref(y):
    mean = jnp.mean(y, axis=(0, 1, 2), keepdims=True)
    var = jnp.mean(jnp.square(y - mean), axis=(0, 1, 2), keepdims=True)
    return (y - mean) / jnp.sqrt(var + EPS)


def bottleneck_ref(x_nchw, params):
    dn = ('NHWC', 'OIHW', 'NHWC')
    x = jnp.transpose(x_nchw, (0, 2, 3, 1))
    w1 = project(params['conv1_kernel'], params['P1'], params['Q1'])
    h1 = jax.nn.relu(_bn_ref(lax.conv_general_dilated(x, w1, (1, 1), 'VALID',
                                                      dimension_numbers=dn)))
    w2 = project(params['conv2_kernel'], params['P2'], params['Q2'])
    h2 = jax.nn.relu(_bn_ref(lax.conv_general_dilated(h1, w2, (1, 1),
                                                      [(1, 1), (1, 1)],
                                                      dimension_numbers=dn)))
    w3 = project(params['conv3_kernel'], params['P3'], params['Q3'])
    main = _bn_ref(lax.conv_general_dilated(h2, w3, (1, 1), 'VALID',
                                            dimension_numbers=dn))
    sc = _bn_ref(lax.conv_general_dilated(x, params['shortcut_w'], (1, 1), 'VALID',
                                          dimension_numbers=dn))
    return jnp.transpose(jax.nn.relu(main + sc), (0, 3, 1, 2))


# --------------------------------- main -------------------------------------

if __name__ == "__main__":
    key = jax.random.PRNGKey(0)
    keys = jax.random.split(key, 11)

    # Bottleneck(layer_idx=1, stride=1): in_planes == planes, small widths.
    candidate_width = [4, 8]
    expansion = 4
    in_planes = planes = 8
    out_planes = expansion * planes                     # 32
    archs = [1, 0, 1, 0]                                # single-shot width indices

    conv1_kernel = kaiming_uniform(keys[0], (planes, in_planes, 1, 1))
    conv2_kernel = kaiming_uniform(keys[1], (planes, planes, 3, 3))
    conv3_kernel = kaiming_uniform(keys[2], (out_planes, planes, 1, 1))

    cin1_p = candidate_width[archs[0]]                  # 8
    cout1_p = candidate_width[archs[1]]                 # 4
    cout2_p = candidate_width[archs[2]]                 # 8
    cout3_p = expansion * candidate_width[archs[3]]     # 16

    cw = candidate_width
    cw_3p = [expansion * v for v in cw]
    P1 = init_projection(keys[3], planes, cout1_p, cw)
    Q1 = init_projection(keys[4], in_planes, cin1_p, cw)    # layer_idx==1 -> cw
    P2 = init_projection(keys[5], planes, cout2_p, cw)
    Q2 = init_projection(keys[6], planes, cout1_p, cw)
    P3 = init_projection(keys[7], out_planes, cout3_p, cw_3p)
    Q3 = init_projection(keys[8], planes, cout2_p, cw)
    shortcut_w = kaiming_uniform(keys[9], (cout3_p, cin1_p, 1, 1))

    params = dict(conv1_kernel=conv1_kernel, conv2_kernel=conv2_kernel,
                  conv3_kernel=conv3_kernel, P1=P1, Q1=Q1, P2=P2, Q2=Q2,
                  P3=P3, Q3=Q3, shortcut_w=shortcut_w)

    # module-boundary input: NCHW, channels = candidate_width[archs[0]]
    x = jax.random.normal(keys[10], (2, cin1_p, 16, 16), jnp.float32)

    fwd = jax.jit(bottleneck_forward)
    out = jax.block_until_ready(fwd(x, params))
    ref = jax.block_until_ready(bottleneck_ref(x, params))

    assert out.shape == (2, cout3_p, 16, 16), out.shape
    err = float(jnp.max(jnp.abs(out - ref)))
    assert jnp.allclose(out, ref, rtol=1e-2, atol=1e-2), err
    print("KERNEL_OK")
</pallas_src>

<mosaic_0001>
module attributes {stable_mosaic.version = 11 : i64} {
  func.func @_fused_bottleneck_kernel(%arg0: i32, %arg1: memref<2x8x256xf32, #tpu.memory_space<vmem>>, %arg2: memref<4x8xf32, #tpu.memory_space<vmem>>, %arg3: memref<8x36xf32, #tpu.memory_space<vmem>>, %arg4: memref<16x8xf32, #tpu.memory_space<vmem>>, %arg5: memref<16x8xf32, #tpu.memory_space<vmem>>, %arg6: memref<2x16x256xf32, #tpu.memory_space<vmem>>, %arg7: memref<4x18x18xf32, #tpu.memory_space<vmem>>, %arg8: memref<9x4x256xf32, #tpu.memory_space<vmem>>) attributes {dimension_semantics = [#tpu.dimension_semantics<arbitrary>], iteration_bounds = array<i64: 1>, scalar_prefetch = 0 : i64, scratch_operands = 2 : i64, tpu.core_type = #tpu.core_type<tc>, window_params = [{pipeline_mode = #tpu.pipeline_mode<synchronous>, transform_indices = @transform_0, window_bounds = array<i64: 2, 8, 256>}, {pipeline_mode = #tpu.pipeline_mode<synchronous>, transform_indices = @transform_1, window_bounds = array<i64: 4, 8>}, {pipeline_mode = #tpu.pipeline_mode<synchronous>, transform_indices = @transform_2, window_bounds = array<i64: 8, 36>}, {pipeline_mode = #tpu.pipeline_mode<synchronous>, transform_indices = @transform_3, window_bounds = array<i64: 16, 8>}, {pipeline_mode = #tpu.pipeline_mode<synchronous>, transform_indices = @transform_4, window_bounds = array<i64: 16, 8>}, {pipeline_mode = #tpu.pipeline_mode<synchronous>, transform_indices = @transform_5, window_bounds = array<i64: 2, 16, 256>}]} {
    %c0 = arith.constant 0 : index
    %c0_0 = arith.constant 0 : index
    %0 = vector.load %arg2[%c0, %c0_0] : memref<4x8xf32, #tpu.memory_space<vmem>>, vector<4x8xf32>
    %c0_1 = arith.constant 0 : index
    %c0_2 = arith.constant 0 : index
    %1 = vector.load %arg3[%c0_1, %c0_2] : memref<8x36xf32, #tpu.memory_space<vmem>>, vector<8x36xf32>
    %c0_3 = arith.constant 0 : index
    %c0_4 = arith.constant 0 : index
    %2 = vector.load %arg4[%c0_3, %c0_4] : memref<16x8xf32, #tpu.memory_space<vmem>>, vector<16x8xf32>
    %c0_5 = arith.constant 0 : index
    %c0_6 = arith.constant 0 : index
    %3 = vector.load %arg5[%c0_5, %c0_6] : memref<16x8xf32, #tpu.memory_space<vmem>>, vector<16x8xf32>
    %c0_7 = arith.constant 0 : index
    %c0_8 = arith.constant 0 : index
    %c0_9 = arith.constant 0 : index
    %4 = vector.load %arg1[%c0_7, %c0_8, %c0_9] : memref<2x8x256xf32, #tpu.memory_space<vmem>>, vector<1x8x256xf32>
    %5 = vector.shape_cast %4 : vector<1x8x256xf32> to vector<8x256xf32>
    %cst = arith.constant dense<0.000000e+00> : vector<4x256xf32>
    %6 = tpu.matmul %0, %5, %cst {dimension_numbers = #tpu.dot_dimension_numbers<[1], [0], [0], [1], [0, 0, 1, 1], [], []>} : vector<4x8xf32>, vector<8x256xf32>, vector<4x256xf32> -> vector<4x256xf32>
    %c1 = arith.constant 1 : index
    %c0_10 = arith.constant 0 : index
    %c0_11 = arith.constant 0 : index
    %7 = vector.load %arg1[%c1, %c0_10, %c0_11] : memref<2x8x256xf32, #tpu.memory_space<vmem>>, vector<1x8x256xf32>
    %8 = vector.shape_cast %7 : vector<1x8x256xf32> to vector<8x256xf32>
    %cst_12 = arith.constant dense<0.000000e+00> : vector<4x256xf32>
    %9 = tpu.matmul %0, %8, %cst_12 {dimension_numbers = #tpu.dot_dimension_numbers<[1], [0], [0], [1], [0, 0, 1, 1], [], []>} : vector<4x8xf32>, vector<8x256xf32>, vector<4x256xf32> -> vector<4x256xf32>
    %cst_13 = arith.constant dense<0.000000e+00> : vector<4xf32>
    %10 = vector.multi_reduction <add>, %6, %cst_13 [1] : vector<4x256xf32> to vector<4xf32>
    %11 = vector.shape_cast %10 : vector<4xf32> to vector<4x1xf32>
    %cst_14 = arith.constant dense<0.000000e+00> : vector<4xf32>
    %12 = vector.multi_reduction <add>, %9, %cst_14 [1] : vector<4x256xf32> to vector<4xf32>
    %13 = vector.shape_cast %12 : vector<4xf32> to vector<4x1xf32>
    %cst_15 = arith.constant 0.000000e+00 : f32
    %14 = vector.broadcast %cst_15 : f32 to vector<4x1xf32>
    %15 = arith.addf %14, %11 : vector<4x1xf32>
    %16 = arith.addf %15, %13 : vector<4x1xf32>
    %cst_16 = arith.constant 0.001953125 : f32
    %17 = vector.broadcast %cst_16 : f32 to vector<4x1xf32>
    %18 = arith.mulf %16, %17 : vector<4x1xf32>
    %19 = vector.broadcast %18 : vector<4x1xf32> to vector<4x256xf32>
    %20 = arith.subf %6, %19 : vector<4x256xf32>
    %21 = arith.mulf %20, %20 : vector<4x256xf32>
    %cst_17 = arith.constant dense<0.000000e+00> : vector<4xf32>
    %22 = vector.multi_reduction <add>, %21, %cst_17 [1] : vector<4x256xf32> to vector<4xf32>
    %23 = vector.shape_cast %22 : vector<4xf32> to vector<4x1xf32>
    %24 = vector.broadcast %18 : vector<4x1xf32> to vector<4x256xf32>
    %25 = arith.subf %9, %24 : vector<4x256xf32>
    %26 = arith.mulf %25, %25 : vector<4x256xf32>
    %cst_18 = arith.constant dense<0.000000e+00> : vector<4xf32>
    %27 = vector.multi_reduction <add>, %26, %cst_18 [1] : vector<4x256xf32> to vector<4xf32>
    %28 = vector.shape_cast %27 : vector<4xf32> to vector<4x1xf32>
    %cst_19 = arith.constant 0.000000e+00 : f32
    %29 = vector.broadcast %cst_19 : f32 to vector<4x1xf32>
    %30 = arith.addf %29, %23 : vector<4x1xf32>
    %31 = arith.addf %30, %28 : vector<4x1xf32>
    %cst_20 = arith.constant 0.001953125 : f32
    %32 = vector.broadcast %cst_20 : f32 to vector<4x1xf32>
    %33 = arith.mulf %31, %32 : vector<4x1xf32>
    %cst_21 = arith.constant 9.99999974E-6 : f32
    %34 = vector.broadcast %cst_21 : f32 to vector<4x1xf32>
    %35 = arith.addf %33, %34 : vector<4x1xf32>
    %36 = math.rsqrt %35 : vector<4x1xf32>
    %37 = vector.broadcast %18 : vector<4x1xf32> to vector<4x256xf32>
    %38 = arith.subf %6, %37 : vector<4x256xf32>
    %39 = vector.broadcast %36 : vector<4x1xf32> to vector<4x256xf32>
    %40 = arith.mulf %38, %39 : vector<4x256xf32>
    %cst_22 = arith.constant 0.000000e+00 : f32
    %41 = vector.broadcast %cst_22 : f32 to vector<4x256xf32>
    %42 = arith.maximumf %40, %41 : vector<4x256xf32>
    %43 = vector.broadcast %18 : vector<4x1xf32> to vector<4x256xf32>
    %44 = arith.subf %9, %43 : vector<4x256xf32>
    %45 = vector.broadcast %36 : vector<4x1xf32> to vector<4x256xf32>
    %46 = arith.mulf %44, %45 : vector<4x256xf32>
    %cst_23 = arith.constant 0.000000e+00 : f32
    %47 = vector.broadcast %cst_23 : f32 to vector<4x256xf32>
    %48 = arith.maximumf %46, %47 : vector<4x256xf32>
    %cst_24 = arith.constant 0.000000e+00 : f32
    %49 = vector.broadcast %cst_24 : f32 to vector<4x18x18xf32>
    %c0_25 = arith.constant 0 : index
    %c0_26 = arith.constant 0 : index
    %c0_27 = arith.constant 0 : index
    %50 = vector.load %arg7[%c0_25, %c0_26, %c0_27] : memref<4x18x18xf32, #tpu.memory_space<vmem>>, vector<4x18x18xf32>
    tpu.vector_store %arg7[%c0_25, %c0_26, %c0_27], %49 {strides = array<i32>} : memref<4x18x18xf32, #tpu.memory_space<vmem>>, vector<4x18x18xf32>,
    %51 = vector.shape_cast %42 : vector<4x256xf32> to vector<4x16x16xf32>
    %c0_28 = arith.constant 0 : index
    %c1_29 = arith.constant 1 : index
    %c1_30 = arith.constant 1 : index
    %52 = vector.load %arg7[%c0_28, %c1_29, %c1_30] : memref<4x18x18xf32, #tpu.memory_space<vmem>>, vector<4x16x16xf32>
    tpu.vector_store %arg7[%c0_28, %c1_29, %c1_30], %51 {strides = array<i32>} : memref<4x18x18xf32, #tpu.memory_space<vmem>>, vector<4x16x16xf32>,
    %c0_31 = arith.constant 0 : index
    %c0_32 = arith.constant 0 : index
    %c0_33 = arith.constant 0 : index
    %53 = vector.load %arg7[%c0_31, %c0_32, %c0_33] : memref<4x18x18xf32, #tpu.memory_space<vmem>>, vector<4x16x16xf32>
    %54 = vector.shape_cast %53 : vector<4x16x16xf32> to vector<4x256xf32>
    %c0_34 = arith.constant 0 : index
    %c0_35 = arith.constant 0 : index
    %c0_36 = arith.constant 0 : index
    %55 = vector.load %arg8[%c0_34, %c0_35, %c0_36] : memref<9x4x256xf32, #tpu.memory_space<vmem>>, vector<1x4x256xf32>
    %56 = vector.shape_cast %55 : vector<1x4x256xf32> to vector<4x256xf32>
    %57 = vector.shape_cast %54 : vector<4x256xf32> to vector<1x4x256xf32>
    tpu.vector_store %arg8[%c0_34, %c0_35, %c0_36], %57 {strides = array<i32>} : memref<9x4x256xf32, #tpu.memory_space<vmem>>, vector<1x4x256xf32>,
    %c0_37 = arith.constant 0 : index
    %c0_38 = arith.constant 0 : index
    %c1_39 = arith.constant 1 : index
    %58 = vector.load %arg7[%c0_37, %c0_38, %c1_39] : memref<4x18x18xf32, #tpu.memory_space<vmem>>, vector<4x16x16xf32>
    %59 = vector.shape_cast %58 : vector<4x16x16xf32> to vector<4x256xf32>
    %c1_40 = arith.constant 1 : index
    %c0_41 = arith.constant 0 : index
    %c0_42 = arith.constant 0 : index
    %60 = vector.load %arg8[%c1_40, %c0_41, %c0_42] : memref<9x4x256xf32, #tpu.memory_space<vmem>>, vector<1x4x256xf32>
    %61 = vector.shape_cast %60 : vector<1x4x256xf32> to vector<4x256xf32>
    %62 = vector.shape_cast %59 : vector<4x256xf32> to vector<1x4x256xf32>
    tpu.vector_store %arg8[%c1_40, %c0_41, %c0_42], %62 {strides = array<i32>} : memref<9x4x256xf32, #tpu.memory_space<vmem>>, vector<1x4x256xf32>,
    %c0_43 = arith.constant 0 : index
    %c0_44 = arith.constant 0 : index
    %c2 = arith.constant 2 : index
    %63 = vector.load %arg7[%c0_43, %c0_44, %c2] : memref<4x18x18xf32, #tpu.memory_space<vmem>>, vector<4x16x16xf32>
    %64 = vector.shape_cast %63 : vector<4x16x16xf32> to vector<4x256xf32>
    %c2_45 = arith.constant 2 : index
    %c0_46 = arith.constant 0 : index
    %c0_47 = arith.constant 0 : index
    %65 = vector.load %arg8[%c2_45, %c0_46, %c0_47] : memref<9x4x256xf32, #tpu.memory_space<vmem>>, vector<1x4x256xf32>
    %66 = vector.shape_cast %65 : vector<1x4x256xf32> to vector<4x256xf32>
    %67 = vector.shape_cast %64 : vector<4x256xf32> to vector<1x4x256xf32>
    tpu.vector_store %arg8[%c2_45, %c0_46, %c0_47], %67 {strides = array<i32>} : memref<9x4x256xf32, #tpu.memory_space<vmem>>, vector<1x4x256xf32>,
    %c0_48 = arith.constant 0 : index
    %c1_49 = arith.constant 1 : index
    %c0_50 = arith.constant 0 : index
    %68 = vector.load %arg7[%c0_48, %c1_49, %c0_50] : memref<4x18x18xf32, #tpu.memory_space<vmem>>, vector<4x16x16xf32>
    %69 = vector.shape_cast %68 : vector<4x16x16xf32> to vector<4x256xf32>
    %c3 = arith.constant 3 : index
    %c0_51 = arith.constant 0 : index
    %c0_52 = arith.constant 0 : index
    %70 = vector.load %arg8[%c3, %c0_51, %c0_52] : memref<9x4x256xf32, #tpu.memory_space<vmem>>, vector<1x4x256xf32>
    %71 = vector.shape_cast %70 : vector<1x4x256xf32> to vector<4x256xf32>
    %72 = vector.shape_cast %69 : vector<4x256xf32> to vector<1x4x256xf32>
    tpu.vector_store %arg8[%c3, %c0_51, %c0_52], %72 {strides = array<i32>} : memref<9x4x256xf32, #tpu.memory_space<vmem>>, vector<1x4x256xf32>,
    %c0_53 = arith.constant 0 : index
    %c1_54 = arith.constant 1 : index
    %c1_55 = arith.constant 1 : index
    %73 = vector.load %arg7[%c0_53, %c1_54, %c1_55] : memref<4x18x18xf32, #tpu.memory_space<vmem>>, vector<4x16x16xf32>
    %74 = vector.shape_cast %73 : vector<4x16x16xf32> to vector<4x256xf32>
    %c4 = arith.constant 4 : index
    %c0_56 = arith.constant 0 : index
    %c0_57 = arith.constant 0 : index
    %75 = vector.load %arg8[%c4, %c0_56, %c0_57] : memref<9x4x256xf32, #tpu.memory_space<vmem>>, vector<1x4x256xf32>
    %76 = vector.shape_cast %75 : vector<1x4x256xf32> to vector<4x256xf32>
    %77 = vector.shape_cast %74 : vector<4x256xf32> to vector<1x4x256xf32>
    tpu.vector_store %arg8[%c4, %c0_56, %c0_57], %77 {strides = array<i32>} : memref<9x4x256xf32, #tpu.memory_space<vmem>>, vector<1x4x256xf32>,
    %c0_58 = arith.constant 0 : index
    %c1_59 = arith.constant 1 : index
    %c2_60 = arith.constant 2 : index
    %78 = vector.load %arg7[%c0_58, %c1_59, %c2_60] : memref<4x18x18xf32, #tpu.memory_space<vmem>>, vector<4x16x16xf32>
    %79 = vector.shape_cast %78 : vector<4x16x16xf32> to vector<4x256xf32>
    %c5 = arith.constant 5 : index
    %c0_61 = arith.constant 0 : index
    %c0_62 = arith.constant 0 : index
    %80 = vector.load %arg8[%c5, %c0_61, %c0_62] : memref<9x4x256xf32, #tpu.memory_space<vmem>>, vector<1x4x256xf32>
    %81 = vector.shape_cast %80 : vector<1x4x256xf32> to vector<4x256xf32>
    %82 = vector.shape_cast %79 : vector<4x256xf32> to vector<1x4x256xf32>
    tpu.vector_store %arg8[%c5, %c0_61, %c0_62], %82 {strides = array<i32>} : memref<9x4x256xf32, #tpu.memory_space<vmem>>, vector<1x4x256xf32>,
    %c0_63 = arith.constant 0 : index
    %c2_64 = arith.constant 2 : index
    %c0_65 = arith.constant 0 : index
    %83 = vector.load %arg7[%c0_63, %c2_64, %c0_65] : memref<4x18x18xf32, #tpu.memory_space<vmem>>, vector<4x16x16xf32>
    %84 = vector.shape_cast %83 : vector<4x16x16xf32> to vector<4x256xf32>
    %c6 = arith.constant 6 : index
    %c0_66 = arith.constant 0 : index
    %c0_67 = arith.constant 0 : index
    %85 = vector.load %arg8[%c6, %c0_66, %c0_67] : memref<9x4x256xf32, #tpu.memory_space<vmem>>, vector<1x4x256xf32>
    %86 = vector.shape_cast %85 : vector<1x4x256xf32> to vector<4x256xf32>
    %87 = vector.shape_cast %84 : vector<4x256xf32> to vector<1x4x256xf32>
    tpu.vector_store %arg8[%c6, %c0_66, %c0_67], %87 {strides = array<i32>} : memref<9x4x256xf32, #tpu.memory_space<vmem>>, vector<1x4x256xf32>,
    %c0_68 = arith.constant 0 : index
    %c2_69 = arith.constant 2 : index
    %c1_70 = arith.constant 1 : index
    %88 = vector.load %arg7[%c0_68, %c2_69, %c1_70] : memref<4x18x18xf32, #tpu.memory_space<vmem>>, vector<4x16x16xf32>
    %89 = vector.shape_cast %88 : vector<4x16x16xf32> to vector<4x256xf32>
    %c7 = arith.constant 7 : index
    %c0_71 = arith.constant 0 : index
    %c0_72 = arith.constant 0 : index
    %90 = vector.load %arg8[%c7, %c0_71, %c0_72] : memref<9x4x256xf32, #tpu.memory_space<vmem>>, vector<1x4x256xf32>
    %91 = vector.shape_cast %90 : vector<1x4x256xf32> to vector<4x256xf32>
    %92 = vector.shape_cast %89 : vector<4x256xf32> to vector<1x4x256xf32>
    tpu.vector_store %arg8[%c7, %c0_71, %c0_72], %92 {strides = array<i32>} : memref<9x4x256xf32, #tpu.memory_space<vmem>>, vector<1x4x256xf32>,
    %c0_73 = arith.constant 0 : index
    %c2_74 = arith.constant 2 : index
    %c2_75 = arith.constant 2 : index
    %93 = vector.load %arg7[%c0_73, %c2_74, %c2_75] : memref<4x18x18xf32, #tpu.memory_space<vmem>>, vector<4x16x16xf32>
    %94 = vector.shape_cast %93 : vector<4x16x16xf32> to vector<4x256xf32>
    %c8 = arith.constant 8 : index
    %c0_76 = arith.constant 0 : index
    %c0_77 = arith.constant 0 : index
    %95 = vector.load %arg8[%c8, %c0_76, %c0_77] : memref<9x4x256xf32, #tpu.memory_space<vmem>>, vector<1x4x256xf32>
    %96 = vector.shape_cast %95 : vector<1x4x256xf32> to vector<4x256xf32>
    %97 = vector.shape_cast %94 : vector<4x256xf32> to vector<1x4x256xf32>
    tpu.vector_store %arg8[%c8, %c0_76, %c0_77], %97 {strides = array<i32>} : memref<9x4x256xf32, #tpu.memory_space<vmem>>, vector<1x4x256xf32>,
    %c0_78 = arith.constant 0 : index
    %c0_79 = arith.constant 0 : index
    %c0_80 = arith.constant 0 : index
    %98 = vector.load %arg8[%c0_78, %c0_79, %c0_80] : memref<9x4x256xf32, #tpu.memory_space<vmem>>, vector<9x4x256xf32>
    %99 = vector.shape_cast %98 : vector<9x4x256xf32> to vector<36x256xf32>
    %cst_81 = arith.constant dense<0.000000e+00> : vector<8x256xf32>
    %100 = tpu.matmul %1, %99, %cst_81 {dimension_numbers = #tpu.dot_dimension_numbers<[1], [0], [0], [1], [0, 0, 1, 1], [], []>} : vector<8x36xf32>, vector<36x256xf32>, vector<8x256xf32> -> vector<8x256xf32>
    %101 = vector.shape_cast %48 : vector<4x256xf32> to vector<4x16x16xf32>
    %c0_82 = arith.constant 0 : index
    %c1_83 = arith.constant 1 : index
    %c1_84 = arith.constant 1 : index
    %102 = vector.load %arg7[%c0_82, %c1_83, %c1_84] : memref<4x18x18xf32, #tpu.memory_space<vmem>>, vector<4x16x16xf32>
    tpu.vector_store %arg7[%c0_82, %c1_83, %c1_84], %101 {strides = array<i32>} : memref<4x18x18xf32, #tpu.memory_space<vmem>>, vector<4x16x16xf32>,
    %c0_85 = arith.constant 0 : index
    %c0_86 = arith.constant 0 : index
    %c0_87 = arith.constant 0 : index
    %103 = vector.load %arg7[%c0_85, %c0_86, %c0_87] : memref<4x18x18xf32, #tpu.memory_space<vmem>>, vector<4x16x16xf32>
    %104 = vector.shape_cast %103 : vector<4x16x16xf32> to vector<4x256xf32>
    %c0_88 = arith.constant 0 : index
    %c0_89 = arith.constant 0 : index
    %c0_90 = arith.constant 0 : index
    %105 = vector.load %arg8[%c0_88, %c0_89, %c0_90] : memref<9x4x256xf32, #tpu.memory_space<vmem>>, vector<1x4x256xf32>
    %106 = vector.shape_cast %105 : vector<1x4x256xf32> to vector<4x256xf32>
    %107 = vector.shape_cast %104 : vector<4x256xf32> to vector<1x4x256xf32>
    tpu.vector_store %arg8[%c0_88, %c0_89, %c0_90], %107 {strides = array<i32>} : memref<9x4x256xf32, #tpu.memory_space<vmem>>, vector<1x4x256xf32>,
    %c0_91 = arith.constant 0 : index
    %c0_92 = arith.constant 0 : index
    %c1_93 = arith.constant 1 : index
    %108 = vector.load %arg7[%c0_91, %c0_92, %c1_93] : memref<4x18x18xf32, #tpu.memory_space<vmem>>, vector<4x16x16xf32>
    %109 = vector.shape_cast %108 : vector<4x16x16xf32> to vector<4x256xf32>
    %c1_94 = arith.constant 1 : index
    %c0_95 = arith.constant 0 : index
    %c0_96 = arith.constant 0 : index
    %110 = vector.load %arg8[%c1_94, %c0_95, %c0_96] : memref<9x4x256xf32, #tpu.memory_space<vmem>>, vector<1x4x256xf32>
    %111 = vector.shape_cast %110 : vector<1x4x256xf32> to vector<4x256xf32>
    %112 = vector.shape_cast %109 : vector<4x256xf32> to vector<1x4x256xf32>
    tpu.vector_store %arg8[%c1_94, %c0_95, %c0_96], %112 {strides = array<i32>} : memref<9x4x256xf32, #tpu.memory_space<vmem>>, vector<1x4x256xf32>,
    %c0_97 = arith.constant 0 : index
    %c0_98 = arith.constant 0 : index
    %c2_99 = arith.constant 2 : index
    %113 = vector.load %arg7[%c0_97, %c0_98, %c2_99] : memref<4x18x18xf32, #tpu.memory_space<vmem>>, vector<4x16x16xf32>
    %114 = vector.shape_cast %113 : vector<4x16x16xf32> to vector<4x256xf32>
    %c2_100 = arith.constant 2 : index
    %c0_101 = arith.constant 0 : index
    %c0_102 = arith.constant 0 : index
    %115 = vector.load %arg8[%c2_100, %c0_101, %c0_102] : memref<9x4x256xf32, #tpu.memory_space<vmem>>, vector<1x4x256xf32>
    %116 = vector.shape_cast %115 : vector<1x4x256xf32> to vector<4x256xf32>
    %117 = vector.shape_cast %114 : vector<4x256xf32> to vector<1x4x256xf32>
    tpu.vector_store %arg8[%c2_100, %c0_101, %c0_102], %117 {strides = array<i32>} : memref<9x4x256xf32, #tpu.memory_space<vmem>>, vector<1x4x256xf32>,
    %c0_103 = arith.constant 0 : index
    %c1_104 = arith.constant 1 : index
    %c0_105 = arith.constant 0 : index
    %118 = vector.load %arg7[%c0_103, %c1_104, %c0_105] : memref<4x18x18xf32, #tpu.memory_space<vmem>>, vector<4x16x16xf32>
    %119 = vector.shape_cast %118 : vector<4x16x16xf32> to vector<4x256xf32>
    %c3_106 = arith.constant 3 : index
    %c0_107 = arith.constant 0 : index
    %c0_108 = arith.constant 0 : index
    %120 = vector.load %arg8[%c3_106, %c0_107, %c0_108] : memref<9x4x256xf32, #tpu.memory_space<vmem>>, vector<1x4x256xf32>
    %121 = vector.shape_cast %120 : vector<1x4x256xf32> to vector<4x256xf32>
    %122 = vector.shape_cast %119 : vector<4x256xf32> to vector<1x4x256xf32>
    tpu.vector_store %arg8[%c3_106, %c0_107, %c0_108], %122 {strides = array<i32>} : memref<9x4x256xf32, #tpu.memory_space<vmem>>, vector<1x4x256xf32>,
    %c0_109 = arith.constant 0 : index
    %c1_110 = arith.constant 1 : index
    %c1_111 = arith.constant 1 : index
    %123 = vector.load %arg7[%c0_109, %c1_110, %c1_111] : memref<4x18x18xf32, #tpu.memory_space<vmem>>, vector<4x16x16xf32>
    %124 = vector.shape_cast %123 : vector<4x16x16xf32> to vector<4x256xf32>
    %c4_112 = arith.constant 4 : index
    %c0_113 = arith.constant 0 : index
    %c0_114 = arith.constant 0 : index
    %125 = vector.load %arg8[%c4_112, %c0_113, %c0_114] : memref<9x4x256xf32, #tpu.memory_space<vmem>>, vector<1x4x256xf32>
    %126 = vector.shape_cast %125 : vector<1x4x256xf32> to vector<4x256xf32>
    %127 = vector.shape_cast %124 : vector<4x256xf32> to vector<1x4x256xf32>
    tpu.vector_store %arg8[%c4_112, %c0_113, %c0_114], %127 {strides = array<i32>} : memref<9x4x256xf32, #tpu.memory_space<vmem>>, vector<1x4x256xf32>,
    %c0_115 = arith.constant 0 : index
    %c1_116 = arith.constant 1 : index
    %c2_117 = arith.constant 2 : index
    %128 = vector.load %arg7[%c0_115, %c1_116, %c2_117] : memref<4x18x18xf32, #tpu.memory_space<vmem>>, vector<4x16x16xf32>
    %129 = vector.shape_cast %128 : vector<4x16x16xf32> to vector<4x256xf32>
    %c5_118 = arith.constant 5 : index
    %c0_119 = arith.constant 0 : index
    %c0_120 = arith.constant 0 : index
    %130 = vector.load %arg8[%c5_118, %c0_119, %c0_120] : memref<9x4x256xf32, #tpu.memory_space<vmem>>, vector<1x4x256xf32>
    %131 = vector.shape_cast %130 : vector<1x4x256xf32> to vector<4x256xf32>
    %132 = vector.shape_cast %129 : vector<4x256xf32> to vector<1x4x256xf32>
    tpu.vector_store %arg8[%c5_118, %c0_119, %c0_120], %132 {strides = array<i32>} : memref<9x4x256xf32, #tpu.memory_space<vmem>>, vector<1x4x256xf32>,
    %c0_121 = arith.constant 0 : index
    %c2_122 = arith.constant 2 : index
    %c0_123 = arith.constant 0 : index
    %133 = vector.load %arg7[%c0_121, %c2_122, %c0_123] : memref<4x18x18xf32, #tpu.memory_space<vmem>>, vector<4x16x16xf32>
    %134 = vector.shape_cast %133 : vector<4x16x16xf32> to vector<4x256xf32>
    %c6_124 = arith.constant 6 : index
    %c0_125 = arith.constant 0 : index
    %c0_126 = arith.constant 0 : index
    %135 = vector.load %arg8[%c6_124, %c0_125, %c0_126] : memref<9x4x256xf32, #tpu.memory_space<vmem>>, vector<1x4x256xf32>
    %136 = vector.shape_cast %135 : vector<1x4x256xf32> to vector<4x256xf32>
    %137 = vector.shape_cast %134 : vector<4x256xf32> to vector<1x4x256xf32>
    tpu.vector_store %arg8[%c6_124, %c0_125, %c0_126], %137 {strides = array<i32>} : memref<9x4x256xf32, #tpu.memory_space<vmem>>, vector<1x4x256xf32>,
    %c0_127 = arith.constant 0 : index
    %c2_128 = arith.constant 2 : index
    %c1_129 = arith.constant 1 : index
    %138 = vector.load %arg7[%c0_127, %c2_128, %c1_129] : memref<4x18x18xf32, #tpu.memory_space<vmem>>, vector<4x16x16xf32>
    %139 = vector.shape_cast %138 : vector<4x16x16xf32> to vector<4x256xf32>
    %c7_130 = arith.constant 7 : index
    %c0_131 = arith.constant 0 : index
    %c0_132 = arith.constant 0 : index
    %140 = vector.load %arg8[%c7_130, %c0_131, %c0_132] : memref<9x4x256xf32, #tpu.memory_space<vmem>>, vector<1x4x256xf32>
    %141 = vector.shape_cast %140 : vector<1x4x256xf32> to vector<4x256xf32>
    %142 = vector.shape_cast %139 : vector<4x256xf32> to vector<1x4x256xf32>
    tpu.vector_store %arg8[%c7_130, %c0_131, %c0_132], %142 {strides = array<i32>} : memref<9x4x256xf32, #tpu.memory_space<vmem>>, vector<1x4x256xf32>,
    %c0_133 = arith.constant 0 : index
    %c2_134 = arith.constant 2 : index
    %c2_135 = arith.constant 2 : index
    %143 = vector.load %arg7[%c0_133, %c2_134, %c2_135] : memref<4x18x18xf32, #tpu.memory_space<vmem>>, vector<4x16x16xf32>
    %144 = vector.shape_cast %143 : vector<4x16x16xf32> to vector<4x256xf32>
    %c8_136 = arith.constant 8 : index
    %c0_137 = arith.constant 0 : index
    %c0_138 = arith.constant 0 : index
    %145 = vector.load %arg8[%c8_136, %c0_137, %c0_138] : memref<9x4x256xf32, #tpu.memory_space<vmem>>, vector<1x4x256xf32>
    %146 = vector.shape_cast %145 : vector<1x4x256xf32> to vector<4x256xf32>
    %147 = vector.shape_cast %144 : vector<4x256xf32> to vector<1x4x256xf32>
    tpu.vector_store %arg8[%c8_136, %c0_137, %c0_138], %147 {strides = array<i32>} : memref<9x4x256xf32, #tpu.memory_space<vmem>>, vector<1x4x256xf32>,
    %c0_139 = arith.constant 0 : index
    %c0_140 = arith.constant 0 : index
    %c0_141 = arith.constant 0 : index
    %148 = vector.load %arg8[%c0_139, %c0_140, %c0_141] : memref<9x4x256xf32, #tpu.memory_space<vmem>>, vector<9x4x256xf32>
    %149 = vector.shape_cast %148 : vector<9x4x256xf32> to vector<36x256xf32>
    %cst_142 = arith.constant dense<0.000000e+00> : vector<8x256xf32>
    %150 = tpu.matmul %1, %149, %cst_142 {dimension_numbers = #tpu.dot_dimension_numbers<[1], [0], [0], [1], [0, 0, 1, 1], [], []>} : vector<8x36xf32>, vector<36x256xf32>, vector<8x256xf32> -> vector<8x256xf32>
    %cst_143 = arith.constant dense<0.000000e+00> : vector<8xf32>
    %151 = vector.multi_reduction <add>, %100, %cst_143 [1] : vector<8x256xf32> to vector<8xf32>
    %152 = vector.shape_cast %151 : vector<8xf32> to vector<8x1xf32>
    %cst_144 = arith.constant dense<0.000000e+00> : vector<8xf32>
    %153 = vector.multi_reduction <add>, %150, %cst_144 [1] : vector<8x256xf32> to vector<8xf32>
    %154 = vector.shape_cast %153 : vector<8xf32> to vector<8x1xf32>
    %cst_145 = arith.constant 0.000000e+00 : f32
    %155 = vector.broadcast %cst_145 : f32 to vector<8x1xf32>
    %156 = arith.addf %155, %152 : vector<8x1xf32>
    %157 = arith.addf %156, %154 : vector<8x1xf32>
    %cst_146 = arith.constant 0.001953125 : f32
    %158 = vector.broadcast %cst_146 : f32 to vector<8x1xf32>
    %159 = arith.mulf %157, %158 : vector<8x1xf32>
    %160 = vector.broadcast %159 : vector<8x1xf32> to vector<8x256xf32>
    %161 = arith.subf %100, %160 : vector<8x256xf32>
    %162 = arith.mulf %161, %161 : vector<8x256xf32>
    %cst_147 = arith.constant dense<0.000000e+00> : vector<8xf32>
    %163 = vector.multi_reduction <add>, %162, %cst_147 [1] : vector<8x256xf32> to vector<8xf32>
    %164 = vector.shape_cast %163 : vector<8xf32> to vector<8x1xf32>
    %165 = vector.broadcast %159 : vector<8x1xf32> to vector<8x256xf32>
    %166 = arith.subf %150, %165 : vector<8x256xf32>
    %167 = arith.mulf %166, %166 : vector<8x256xf32>
    %cst_148 = arith.constant dense<0.000000e+00> : vector<8xf32>
    %168 = vector.multi_reduction <add>, %167, %cst_148 [1] : vector<8x256xf32> to vector<8xf32>
    %169 = vector.shape_cast %168 : vector<8xf32> to vector<8x1xf32>
    %cst_149 = arith.constant 0.000000e+00 : f32
    %170 = vector.broadcast %cst_149 : f32 to vector<8x1xf32>
    %171 = arith.addf %170, %164 : vector<8x1xf32>
    %172 = arith.addf %171, %169 : vector<8x1xf32>
    %cst_150 = arith.constant 0.001953125 : f32
    %173 = vector.broadcast %cst_150 : f32 to vector<8x1xf32>
    %174 = arith.mulf %172, %173 : vector<8x1xf32>
    %cst_151 = arith.constant 9.99999974E-6 : f32
    %175 = vector.broadcast %cst_151 : f32 to vector<8x1xf32>
    %176 = arith.addf %174, %175 : vector<8x1xf32>
    %177 = math.rsqrt %176 : vector<8x1xf32>
    %178 = vector.broadcast %159 : vector<8x1xf32> to vector<8x256xf32>
    %179 = arith.subf %100, %178 : vector<8x256xf32>
    %180 = vector.broadcast %177 : vector<8x1xf32> to vector<8x256xf32>
    %181 = arith.mulf %179, %180 : vector<8x256xf32>
    %cst_152 = arith.constant 0.000000e+00 : f32
    %182 = vector.broadcast %cst_152 : f32 to vector<8x256xf32>
    %183 = arith.maximumf %181, %182 : vector<8x256xf32>
    %184 = vector.broadcast %159 : vector<8x1xf32> to vector<8x256xf32>
    %185 = arith.subf %150, %184 : vector<8x256xf32>
    %186 = vector.broadcast %177 : vector<8x1xf32> to vector<8x256xf32>
    %187 = arith.mulf %185, %186 : vector<8x256xf32>
    %cst_153 = arith.constant 0.000000e+00 : f32
    %188 = vector.broadcast %cst_153 : f32 to vector<8x256xf32>
    %189 = arith.maximumf %187, %188 : vector<8x256xf32>
    %cst_154 = arith.constant dense<0.000000e+00> : vector<16x256xf32>
    %190 = tpu.matmul %2, %183, %cst_154 {dimension_numbers = #tpu.dot_dimension_numbers<[1], [0], [0], [1], [0, 0, 1, 1], [], []>} : vector<16x8xf32>, vector<8x256xf32>, vector<16x256xf32> -> vector<16x256xf32>
    %cst_155 = arith.constant dense<0.000000e+00> : vector<16x256xf32>
    %191 = tpu.matmul %2, %189, %cst_155 {dimension_numbers = #tpu.dot_dimension_numbers<[1], [0], [0], [1], [0, 0, 1, 1], [], []>} : vector<16x8xf32>, vector<8x256xf32>, vector<16x256xf32> -> vector<16x256xf32>
    %cst_156 = arith.constant dense<0.000000e+00> : vector<16xf32>
    %192 = vector.multi_reduction <add>, %190, %cst_156 [1] : vector<16x256xf32> to vector<16xf32>
    %193 = vector.shape_cast %192 : vector<16xf32> to vector<16x1xf32>
    %cst_157 = arith.constant dense<0.000000e+00> : vector<16xf32>
    %194 = vector.multi_reduction <add>, %191, %cst_157 [1] : vector<16x256xf32> to vector<16xf32>
    %195 = vector.shape_cast %194 : vector<16xf32> to vector<16x1xf32>
    %cst_158 = arith.constant 0.000000e+00 : f32
    %196 = vector.broadcast %cst_158 : f32 to vector<16x1xf32>
    %197 = arith.addf %196, %193 : vector<16x1xf32>
    %198 = arith.addf %197, %195 : vector<16x1xf32>
    %cst_159 = arith.constant 0.001953125 : f32
    %199 = vector.broadcast %cst_159 : f32 to vector<16x1xf32>
    %200 = arith.mulf %198, %199 : vector<16x1xf32>
    %201 = vector.broadcast %200 : vector<16x1xf32> to vector<16x256xf32>
    %202 = arith.subf %190, %201 : vector<16x256xf32>
    %203 = arith.mulf %202, %202 : vector<16x256xf32>
    %cst_160 = arith.constant dense<0.000000e+00> : vector<16xf32>
    %204 = vector.multi_reduction <add>, %203, %cst_160 [1] : vector<16x256xf32> to vector<16xf32>
    %205 = vector.shape_cast %204 : vector<16xf32> to vector<16x1xf32>
    %206 = vector.broadcast %200 : vector<16x1xf32> to vector<16x256xf32>
    %207 = arith.subf %191, %206 : vector<16x256xf32>
    %208 = arith.mulf %207, %207 : vector<16x256xf32>
    %cst_161 = arith.constant dense<0.000000e+00> : vector<16xf32>
    %209 = vector.multi_reduction <add>, %208, %cst_161 [1] : vector<16x256xf32> to vector<16xf32>
    %210 = vector.shape_cast %209 : vector<16xf32> to vector<16x1xf32>
    %cst_162 = arith.constant 0.000000e+00 : f32
    %211 = vector.broadcast %cst_162 : f32 to vector<16x1xf32>
    %212 = arith.addf %211, %205 : vector<16x1xf32>
    %213 = arith.addf %212, %210 : vector<16x1xf32>
    %cst_163 = arith.constant 0.001953125 : f32
    %214 = vector.broadcast %cst_163 : f32 to vector<16x1xf32>
    %215 = arith.mulf %213, %214 : vector<16x1xf32>
    %cst_164 = arith.constant 9.99999974E-6 : f32
    %216 = vector.broadcast %cst_164 : f32 to vector<16x1xf32>
    %217 = arith.addf %215, %216 : vector<16x1xf32>
    %218 = math.rsqrt %217 : vector<16x1xf32>
    %c0_165 = arith.constant 0 : index
    %c0_166 = arith.constant 0 : index
    %c0_167 = arith.constant 0 : index
    %219 = vector.load %arg1[%c0_165, %c0_166, %c0_167] : memref<2x8x256xf32, #tpu.memory_space<vmem>>, vector<1x8x256xf32>
    %220 = vector.shape_cast %219 : vector<1x8x256xf32> to vector<8x256xf32>
    %cst_168 = arith.constant dense<0.000000e+00> : vector<16x256xf32>
    %221 = tpu.matmul %3, %220, %cst_168 {dimension_numbers = #tpu.dot_dimension_numbers<[1], [0], [0], [1], [0, 0, 1, 1], [], []>} : vector<16x8xf32>, vector<8x256xf32>, vector<16x256xf32> -> vector<16x256xf32>
    %c1_169 = arith.constant 1 : index
    %c0_170 = arith.constant 0 : index
    %c0_171 = arith.constant 0 : index
    %222 = vector.load %arg1[%c1_169, %c0_170, %c0_171] : memref<2x8x256xf32, #tpu.memory_space<vmem>>, vector<1x8x256xf32>
    %223 = vector.shape_cast %222 : vector<1x8x256xf32> to vector<8x256xf32>
    %cst_172 = arith.constant dense<0.000000e+00> : vector<16x256xf32>
    %224 = tpu.matmul %3, %223, %cst_172 {dimension_numbers = #tpu.dot_dimension_numbers<[1], [0], [0], [1], [0, 0, 1, 1], [], []>} : vector<16x8xf32>, vector<8x256xf32>, vector<16x256xf32> -> vector<16x256xf32>
    %cst_173 = arith.constant dense<0.000000e+00> : vector<16xf32>
    %225 = vector.multi_reduction <add>, %221, %cst_173 [1] : vector<16x256xf32> to vector<16xf32>
    %226 = vector.shape_cast %225 : vector<16xf32> to vector<16x1xf32>
    %cst_174 = arith.constant dense<0.000000e+00> : vector<16xf32>
    %227 = vector.multi_reduction <add>, %224, %cst_174 [1] : vector<16x256xf32> to vector<16xf32>
    %228 = vector.shape_cast %227 : vector<16xf32> to vector<16x1xf32>
    %cst_175 = arith.constant 0.000000e+00 : f32
    %229 = vector.broadcast %cst_175 : f32 to vector<16x1xf32>
    %230 = arith.addf %229, %226 : vector<16x1xf32>
    %231 = arith.addf %230, %228 : vector<16x1xf32>
    %cst_176 = arith.constant 0.001953125 : f32
    %232 = vector.broadcast %cst_176 : f32 to vector<16x1xf32>
    %233 = arith.mulf %231, %232 : vector<16x1xf32>
    %234 = vector.broadcast %233 : vector<16x1xf32> to vector<16x256xf32>
    %235 = arith.subf %221, %234 : vector<16x256xf32>
    %236 = arith.mulf %235, %235 : vector<16x256xf32>
    %cst_177 = arith.constant dense<0.000000e+00> : vector<16xf32>
    %237 = vector.multi_reduction <add>, %236, %cst_177 [1] : vector<16x256xf32> to vector<16xf32>
    %238 = vector.shape_cast %237 : vector<16xf32> to vector<16x1xf32>
    %239 = vector.broadcast %233 : vector<16x1xf32> to vector<16x256xf32>
    %240 = arith.subf %224, %239 : vector<16x256xf32>
    %241 = arith.mulf %240, %240 : vector<16x256xf32>
    %cst_178 = arith.constant dense<0.000000e+00> : vector<16xf32>
    %242 = vector.multi_reduction <add>, %241, %cst_178 [1] : vector<16x256xf32> to vector<16xf32>
    %243 = vector.shape_cast %242 : vector<16xf32> to vector<16x1xf32>
    %cst_179 = arith.constant 0.000000e+00 : f32
    %244 = vector.broadcast %cst_179 : f32 to vector<16x1xf32>
    %245 = arith.addf %244, %238 : vector<16x1xf32>
    %246 = arith.addf %245, %243 : vector<16x1xf32>
    %cst_180 = arith.constant 0.001953125 : f32
    %247 = vector.broadcast %cst_180 : f32 to vector<16x1xf32>
    %248 = arith.mulf %246, %247 : vector<16x1xf32>
    %cst_181 = arith.constant 9.99999974E-6 : f32
    %249 = vector.broadcast %cst_181 : f32 to vector<16x1xf32>
    %250 = arith.addf %248, %249 : vector<16x1xf32>
    %251 = math.rsqrt %250 : vector<16x1xf32>
    %252 = vector.broadcast %200 : vector<16x1xf32> to vector<16x256xf32>
    %253 = arith.subf %190, %252 : vector<16x256xf32>
    %254 = vector.broadcast %218 : vector<16x1xf32> to vector<16x256xf32>
    %255 = arith.mulf %253, %254 : vector<16x256xf32>
    %256 = vector.broadcast %233 : vector<16x1xf32> to vector<16x256xf32>
    %257 = arith.subf %221, %256 : vector<16x256xf32>
    %258 = vector.broadcast %251 : vector<16x1xf32> to vector<16x256xf32>
    %259 = arith.mulf %257, %258 : vector<16x256xf32>
    %260 = arith.addf %255, %259 : vector<16x256xf32>
    %cst_182 = arith.constant 0.000000e+00 : f32
    %261 = vector.broadcast %cst_182 : f32 to vector<16x256xf32>
    %262 = arith.maximumf %260, %261 : vector<16x256xf32>
    %c0_183 = arith.constant 0 : index
    %c0_184 = arith.constant 0 : index
    %c0_185 = arith.constant 0 : index
    %263 = vector.load %arg6[%c0_183, %c0_184, %c0_185] : memref<2x16x256xf32, #tpu.memory_space<vmem>>, vector<1x16x256xf32>
    %264 = vector.shape_cast %263 : vector<1x16x256xf32> to vector<16x256xf32>
    %265 = vector.shape_cast %262 : vector<16x256xf32> to vector<1x16x256xf32>
    tpu.vector_store %arg6[%c0_183, %c0_184, %c0_185], %265 {strides = array<i32>} : memref<2x16x256xf32, #tpu.memory_space<vmem>>, vector<1x16x256xf32>,
    %266 = vector.broadcast %200 : vector<16x1xf32> to vector<16x256xf32>
    %267 = arith.subf %191, %266 : vector<16x256xf32>
    %268 = vector.broadcast %218 : vector<16x1xf32> to vector<16x256xf32>
    %269 = arith.mulf %267, %268 : vector<16x256xf32>
    %270 = vector.broadcast %233 : vector<16x1xf32> to vector<16x256xf32>
    %271 = arith.subf %224, %270 : vector<16x256xf32>
    %272 = vector.broadcast %251 : vector<16x1xf32> to vector<16x256xf32>
    %273 = arith.mulf %271, %272 : vector<16x256xf32>
    %274 = arith.addf %269, %273 : vector<16x256xf32>
    %cst_186 = arith.constant 0.000000e+00 : f32
    %275 = vector.broadcast %cst_186 : f32 to vector<16x256xf32>
    %276 = arith.maximumf %274, %275 : vector<16x256xf32>
    %c1_187 = arith.constant 1 : index
    %c0_188 = arith.constant 0 : index
    %c0_189 = arith.constant 0 : index
    %277 = vector.load %arg6[%c1_187, %c0_188, %c0_189] : memref<2x16x256xf32, #tpu.memory_space<vmem>>, vector<1x16x256xf32>
    %278 = vector.shape_cast %277 : vector<1x16x256xf32> to vector<16x256xf32>
    %279 = vector.shape_cast %276 : vector<16x256xf32> to vector<1x16x256xf32>
    tpu.vector_store %arg6[%c1_187, %c0_188, %c0_189], %279 {strides = array<i32>} : memref<2x16x256xf32, #tpu.memory_space<vmem>>, vector<1x16x256xf32>,
    return
  }
  func.func @transform_0(%arg0: i32) -> (i32, i32, i32) {
    %c0_i32 = arith.constant 0 : i32
    %c0_i32_0 = arith.constant 0 : i32
    %c0_i32_1 = arith.constant 0 : i32
    %c0_i32_2 = arith.constant 0 : i32
    return %c0_i32, %c0_i32_0, %c0_i32_1 : i32, i32, i32
  }
  func.func @transform_1(%arg0: i32) -> (i32, i32) {
    %c0_i32 = arith.constant 0 : i32
    %c0_i32_0 = arith.constant 0 : i32
    %c0_i32_1 = arith.constant 0 : i32
    return %c0_i32, %c0_i32_0 : i32, i32
  }
  func.func @transform_2(%arg0: i32) -> (i32, i32) {
    %c0_i32 = arith.constant 0 : i32
    %c0_i32_0 = arith.constant 0 : i32
    %c0_i32_1 = arith.constant 0 : i32
    return %c0_i32, %c0_i32_0 : i32, i32
  }
  func.func @transform_3(%arg0: i32) -> (i32, i32) {
    %c0_i32 = arith.constant 0 : i32
    %c0_i32_0 = arith.constant 0 : i32
    %c0_i32_1 = arith.constant 0 : i32
    return %c0_i32, %c0_i32_0 : i32, i32
  }
  func.func @transform_4(%arg0: i32) -> (i32, i32) {
    %c0_i32 = arith.constant 0 : i32
    %c0_i32_0 = arith.constant 0 : i32
    %c0_i32_1 = arith.constant 0 : i32
    return %c0_i32, %c0_i32_0 : i32, i32
  }
  func.func @transform_5(%arg0: i32) -> (i32, i32, i32) {
    %c0_i32 = arith.constant 0 : i32
    %c0_i32_0 = arith.constant 0 : i32
    %c0_i32_1 = arith.constant 0 : i32
    %c0_i32_2 = arith.constant 0 : i32
    return %c0_i32, %c0_i32_0, %c0_i32_1 : i32, i32, i32
  }
}

</mosaic_0001>

<bundles_post_ra>
// kernel: bottleneck_forward.1
= control target key start
LH: loop header
LB: loop body
LE: loop exit
PB: predicated region body
PF: predicated region fallthrough
CT: control target
= control target key end

     0   :  { %v9380_v2 = vmov 0.0   ;;  %vm28_vm0 = vcmask 64512   ;;  %vm177_vm1 = vcmask 1043456   ;;  %s5878_s28 = smov 112   ;;  %s5879_s29 = smov 80   ;;  %vm222_vm2 = vcmask 146432   ;;  %s9374_s0 = inlined_call_operand.vmem [shape: f32[2,8,256], index: 0, kind: input, shape index: {}]   ;;  %s9375_s1 = inlined_call_operand.vmem [shape: f32[4,8], index: 1, kind: input, shape index: {}]   ;;  %s9376_s2 = inlined_call_operand.vmem [shape: f32[8,36], index: 2, kind: input, shape index: {}]   ;;  %s9377_s3 = inlined_call_operand.vmem [shape: f32[16,8], index: 3, kind: input, shape index: {}]   ;;  %s9378_s4 = inlined_call_operand.vmem [shape: f32[16,8], index: 4, kind: input, shape index: {}]   ;;  %s9379_s5 = inlined_call_operand.vmem [shape: f32[2,16,256], index: 5, kind: output, shape index: {}]  }
   0x1   :  { %v27_v0 = vld [vmem:[%s9374_s0 + $0x8] sm:$0xff]  ;;  %v26_v1 = vld [vmem:[%s9374_s0] sm:$0xff]  ;;  %96 = vmatprep.mubr.f32.mxu0 %v9380_v2  ;;  %170 = vmatprep.mubr.f32.mxu1 %v9380_v2  ;;  %v5761_v4 = vld [vmem:[%s9374_s0 + $0x18] sm:$0xff]  ;;  %s5880_s30 = smov 48   ;;  %s5881_s6 = smov 64   ;;  %223 = vst.msk [vmem:[#allocation2] sm:$0xff] %vm222_vm2, %v9380_v2  ;;  %v284_v52 = vlaneseq }
   0x2   :  { %v20_v3 = vld [vmem:[%s9375_s1] sm:$0xf]  ;;  %32 = vmatprep.subr.mxu0 %v27_v0  ;;  %v5760_v5 = vld [vmem:[%s9374_s0 + $0x10] sm:$0xff]  ;;  %106 = vmatprep.subr.mxu1 %v5761_v4  ;;  %s5877_s1 = smov 96   ;;  %s5882_s7 = smov 16   ;;  %224 = vst.msk [vmem:[#allocation2 + $0x8] sm:$0xff] %vm222_vm2, %v9380_v2 }
   0x3   :  { %33 = vmatpush1.msra.mxu0 %v26_v1  ;;  %107 = vmatpush1.msra.mxu1 %v5760_v5  ;;  %s5883_s8 = smov 32   ;;  %227 = vst.msk [vmem:[#allocation2 + $0x18] sm:$0xff] %vm222_vm2, %v9380_v2  ;;  %228 = vst.msk [vmem:[#allocation2 + $0x20] sm:$0xff] %vm222_vm2, %v9380_v2  ;;  %v5884_v50 = vmov 1983009808   ;;  %v285_v56 = vshrl.u32 %v284_v52, 7 }
   0x4   :  { %5759 = vmatmul.mubr.msk.f32.vlgmr.msra.gmra.mrb[0].mxu0 %vm28_vm0, %v20_v3  ;;  %5762 = vmatmul.mubr.msk.f32.vlgmr.msra.gmra.mrb[0].mxu1 %vm28_vm0, %v20_v3  ;;  %230 = vst.msk [vmem:[#allocation2 + $0x30] sm:$0xff] %vm222_vm2, %v9380_v2  ;;  %231 = vst.msk [vmem:[#allocation2 + $0x38] sm:$0xff] %vm222_vm2, %v9380_v2  ;;  %v282_v51 = vunpack.c.l.s4 %v5884_v50  ;;  %v5885_v58 = vmov 1934713408   ;;  %s5886_s9 = smov 1   ;;  %vm225_vm3 = vcmask 140288  }
   0x5   :  { %2742 = vmatprep.mubr.f32.mxu0 %v9380_v2  ;;  %5235 = vmatprep.mubr.f32.mxu1 %v9380_v2  ;;  %233 = vst.msk [vmem:[#allocation2 + $0x48] sm:$0xff] %vm222_vm2, %v9380_v2  ;;  %234 = vst.msk [vmem:[#allocation2 + $0x50] sm:$0xff] %vm222_vm2, %v9380_v2  ;;  %v315_v59 = vunpack.c.l.s4 %v5885_v58  ;;  %vm448_vm4 = vcmask 138248   ;;  %s5887_s10 = smov 127   ;;  %s5888_s11 = smov 126   ;;  %vm657_vm5 = vcmask 130048  }
   0x6   :  { %v283_v55 = vunpack.c.0.s8 %v282_v51  ;;  %226 = vst.msk [vmem:[#allocation2 + $0x10] sm:$0x3] %vm225_vm3, %v9380_v2  ;;  %229 = vst.msk [vmem:[#allocation2 + $0x28] sm:$0x3] %vm225_vm3, %v9380_v2  ;;  %vm659_vm6 = vcmask 261120   ;;  %vm661_vm7 = vcmask 392192  }
   0x7   :  { %v316_v3 = vunpack.c.0.s8 %v315_v59  ;;  %232 = vst.msk [vmem:[#allocation2 + $0x40] sm:$0x3] %vm225_vm3, %v9380_v2  ;;  %235 = vst.msk [vmem:[#allocation2 + $0x58] sm:$0x3] %vm225_vm3, %v9380_v2  ;;  %vm663_vm8 = vcmask 523264   ;;  %vm665_vm9 = vcmask 654336  }
   0x8   :  { %v6020_v62 = vsub.s32 %v283_v55, %v285_v56  ;;  %vm667_vm10 = vcmask 785408   ;;  %vm669_vm11 = vcmask 916480   ;;  %vm2670_vm12 = vcmask 293888  }
  0xd7   :  { %v98_v6 = vpop.f32.mrb[0].mxu0  ;;  %v172_v8 = vpop.f32.mrb[0].mxu1 }
  0xd8   :  { %v100_v7 = vpop.f32.mrb[1].mxu0  ;;  %v178_v9 = vsel %vm177_vm1, %v98_v6, 0.0  ;;  %v183_v10 = vsel %vm177_vm1, %v172_v8, 0.0  ;;  %v174_v11 = vpop.f32.mrb[1].mxu1 }
  0xd9   :  { %v179_v12 = vsel %vm177_vm1, %v100_v7, 0.0  ;;  %v184_v13 = vsel %vm177_vm1, %v174_v11, 0.0 }
  0xda   :  { %v180_v14 = vadd.f32 %v179_v12, %v178_v9  ;;  %v185_v15 = vadd.f32 %v184_v13, %v183_v10 }
  0xdc   :  { %181 = vadd.xlane.f32.xlu0 %v180_v14 }
  0xe0   :  { %186 = vadd.xlane.f32.xlu0 %v185_v15 }
 0x169   :  { %v182_v16 = vpop.xlane.xlu0 %181 }
 0x16d   :  { %v187_v17 = vpop.xlane.xlu0 %186 }
 0x16e   :  { %v189_v18 = vadd.f32 %v187_v17, %v182_v16 }
 0x170   :  { %v190_v19 = vmul.f32 0.001953125, %v189_v18 }
 0x172   :  { %v191_v20 = vsub.f32 %v98_v6, %v190_v19  ;;  %v192_v21 = vsub.f32 %v100_v7, %v190_v19  ;;  %v200_v22 = vsub.f32 %v172_v8, %v190_v19  ;;  %v201_v23 = vsub.f32 %v174_v11, %v190_v19 }
 0x173   :  { %v6027_v11 = vsub.s32 %v316_v3, %v285_v56 }
 0x174   :  { %v193_v24 = vmul.f32 %v191_v20, %v191_v20  ;;  %v194_v25 = vmul.f32 %v192_v21, %v192_v21  ;;  %v202_v26 = vmul.f32 %v200_v22, %v200_v22  ;;  %v203_v27 = vmul.f32 %v201_v23, %v201_v23 }
 0x176   :  { %v195_v28 = vsel %vm177_vm1, %v193_v24, 0.0  ;;  %v196_v29 = vsel %vm177_vm1, %v194_v25, 0.0  ;;  %v204_v31 = vsel %vm177_vm1, %v202_v26, 0.0  ;;  %v205_v32 = vsel %vm177_vm1, %v203_v27, 0.0 }
 0x177   :  { %v197_v30 = vadd.f32 %v196_v29, %v195_v28  ;;  %v206_v33 = vadd.f32 %v205_v32, %v204_v31 }
 0x179   :  { %198 = vadd.xlane.f32.xlu1 %v197_v30 }
 0x17d   :  { %207 = vadd.xlane.f32.xlu1 %v206_v33 }
 0x206   :  { %v199_v34 = vpop.xlane.xlu1 %198 }
 0x20a   :  { %v208_v35 = vpop.xlane.xlu1 %207 }
 0x20b   :  { %v210_v36 = vadd.f32 %v208_v35, %v199_v34 }
 0x20d   :  { %v211_v37 = vmul.f32 0.001953125, %v210_v36 }
 0x20f   :  { %v212_v38 = vadd.f32 1e-05, %v211_v37 }
 0x211   :  { %5864 = vrsqrt.f32 %v212_v38 }
 0x21b   :  { %v5865_v39 = vpop.eup %5864 }
 0x21c   :  { %v214_v40 = vmul.f32 %v5865_v39, %v191_v20  ;;  %v215_v42 = vmul.f32 %v5865_v39, %v192_v21  ;;  %v218_v44 = vmul.f32 %v5865_v39, %v200_v22  ;;  %v219_v46 = vmul.f32 %v5865_v39, %v201_v23 }
 0x21e   :  { %v5948_v41 = vmax.f32 %v214_v40, 0.0  ;;  %v5962_v43 = vmax.f32 %v215_v42, 0.0  ;;  %v5976_v45 = vmax.f32 %v218_v44, 0.0  ;;  %v5994_v47 = vmax.f32 %v219_v46, 0.0 }
 0x220   :  { %240 = vrot.lane.b32.xlu1 %v5948_v41, %s5877_s1  ;;  %237 = vrot.lane.b32.xlu0 %v5948_v41, %s5878_s28 }
 0x224   :  { %243 = vrot.lane.b32.xlu1 %v5948_v41, %s5879_s29  ;;  %249 = vrot.lane.b32.xlu0 %v5948_v41, %s5880_s30 }
 0x228   :  { %246 = vrot.lane.b32.xlu1 %v5948_v41, %s5881_s6  ;;  %255 = vrot.lane.b32.xlu0 %v5948_v41, %s5882_s7 }
 0x22c   :  { %252 = vrot.lane.b32.xlu1 %v5948_v41, %s5883_s8  ;;  %262 = vrot.lane.b32.xlu0 %v5962_v43, %s5877_s1 }
 0x230   :  { %259 = vrot.lane.b32.xlu1 %v5962_v43, %s5878_s28  ;;  %268 = vrot.lane.b32.xlu0 %v5962_v43, %s5881_s6 }
 0x234   :  { %265 = vrot.lane.b32.xlu1 %v5962_v43, %s5879_s29  ;;  %274 = vrot.lane.b32.xlu0 %v5962_v43, %s5883_s8 }
 0x238   :  { %271 = vrot.lane.b32.xlu1 %v5962_v43, %s5880_s30  ;;  %2750 = vrot.lane.b32.xlu0 %v5976_v45, %s5878_s28 }
 0x23c   :  { %277 = vrot.lane.b32.xlu1 %v5962_v43, %s5882_s7  ;;  %2756 = vrot.lane.b32.xlu0 %v5976_v45, %s5879_s29 }
 0x240   :  { %2753 = vrot.lane.b32.xlu1 %v5976_v45, %s5877_s1  ;;  %2762 = vrot.lane.b32.xlu0 %v5976_v45, %s5880_s30 }
 0x244   :  { %2759 = vrot.lane.b32.xlu1 %v5976_v45, %s5881_s6  ;;  %2768 = vrot.lane.b32.xlu0 %v5976_v45, %s5882_s7 }
 0x248   :  { %2765 = vrot.lane.b32.xlu1 %v5976_v45, %s5883_s8  ;;  %2775 = vrot.lane.b32.xlu0 %v5994_v47, %s5877_s1 }
 0x24c   :  { %2772 = vrot.lane.b32.xlu1 %v5994_v47, %s5878_s28  ;;  %2781 = vrot.lane.b32.xlu0 %v5994_v47, %s5881_s6 }
 0x250   :  { %2778 = vrot.lane.b32.xlu1 %v5994_v47, %s5879_s29  ;;  %2787 = vrot.lane.b32.xlu0 %v5994_v47, %s5883_s8 }
 0x254   :  { %2784 = vrot.lane.b32.xlu1 %v5994_v47, %s5880_s30 }
 0x258   :  { %2790 = vrot.lane.b32.xlu1 %v5994_v47, %s5882_s7 }
 0x292   :  { %v241_v48 = vpop.permute.xlu1 %240  ;;  %v238_v49 = vpop.permute.xlu0 %237 }
 0x293   :  { %v280_v63 = vcombine.low %v5948_v41, %v241_v48 }
 0x295   :  { %v287_v6 = vrot.slane %v280_v63, %v6020_v62 }
 0x296   :  { %v244_v53 = vpop.permute.xlu1 %243  ;;  %v250_v54 = vpop.permute.xlu0 %249 }
 0x297   :  { %v288_v57 = vcombine.low %v238_v49, %v244_v53 }
 0x299   :  { %v295_v0 = vrot.slane %v288_v57, %v6020_v62 }
 0x29a   :  { %v247_v60 = vpop.permute.xlu1 %246  ;;  %v256_v61 = vpop.permute.xlu0 %255 }
 0x29b   :  { %v304_v1 = vcombine.low %v250_v54, %v256_v61  ;;  %v312_v8 = vcombine.low %v287_v6, %v295_v0  ;;  %v313_v21 = vcombine.high %v287_v6, %v295_v0 }
 0x29d   :  { %v311_v9 = vrot.slane %v304_v1, %v6020_v62  ;;  %v320_v15 = vrot.slane %v312_v8, %v6027_v11  ;;  %v327_v30 = vrot.slane %v313_v21, %v6027_v11 }
 0x29e   :  { %v253_v4 = vpop.permute.xlu1 %252  ;;  %v263_v5 = vpop.permute.xlu0 %262 }
 0x29f   :  { %v296_v7 = vcombine.low %v247_v60, %v253_v4  ;;  %v348_v25 = vcombine.low %v5962_v43, %v263_v5 }
 0x2a1   :  { %v303_v10 = vrot.slane %v296_v7, %v6020_v62  ;;  %v355_v33 = vrot.slane %v348_v25, %v6020_v62 }
 0x2a2   :  { %v260_v12 = vpop.permute.xlu1 %259  ;;  %v269_v13 = vpop.permute.xlu0 %268 }
 0x2a3   :  { %v328_v14 = vcombine.low %v303_v10, %v311_v9  ;;  %v329_v19 = vcombine.high %v303_v10, %v311_v9 }
 0x2a5   :  { %v336_v16 = vrot.slane %v328_v14, %v6027_v11  ;;  %v343_v27 = vrot.slane %v329_v19, %v6027_v11 }
 0x2a6   :  { %v266_v17 = vpop.permute.xlu1 %265  ;;  %v275_v18 = vpop.permute.xlu0 %274 }
 0x2a7   :  { %v344_v20 = vcombine.low %v320_v15, %v336_v16  ;;  %v356_v22 = vcombine.low %v260_v12, %v266_v17  ;;  %v345_v26 = vcombine.high %v320_v15, %v336_v16  ;;  %v364_v29 = vcombine.low %v269_v13, %v275_v18 }
 0x2a8   :  { %v346_v35 = vcombine.low %v327_v30, %v343_v27  ;;  %v347_v42 = vcombine.high %v327_v30, %v343_v27 }
 0x2a9   :  { %424 = vrot.lane.b32.xlu0 %v344_v20, %s5886_s9  ;;  %v363_v28 = vrot.slane %v356_v22, %v6020_v62  ;;  %v371_v37 = vrot.slane %v364_v29, %v6020_v62 }
 0x2aa   :  { %v272_v23 = vpop.permute.xlu1 %271  ;;  %v2751_v24 = vpop.permute.xlu0 %2750 }
 0x2ab   :  { %v380_v36 = vcombine.low %v355_v33, %v363_v28  ;;  %v381_v53 = vcombine.high %v355_v33, %v363_v28 }
 0x2ad   :  { %428 = vrot.lane.b32.xlu0 %v345_v26, %s5886_s9  ;;  %v388_v44 = vrot.slane %v380_v36, %v6027_v11  ;;  %v395_v1 = vrot.slane %v381_v53, %v6027_v11 }
 0x2ae   :  { %v278_v31 = vpop.permute.xlu1 %277  ;;  %v2757_v32 = vpop.permute.xlu0 %2756 }
 0x2af   :  { %v372_v34 = vcombine.low %v272_v23, %v278_v31  ;;  %v2801_v51 = vcombine.low %v2751_v24, %v2757_v32 }
 0x2b1   :  { %v379_v38 = vrot.slane %v372_v34, %v6020_v62  ;;  %432 = vrot.lane.b32.xlu0 %v346_v35, %s5886_s9 }
 0x2b2   :  { %v2754_v39 = vpop.permute.xlu1 %2753  ;;  %v2763_v40 = vpop.permute.xlu0 %2762 }
 0x2b3   :  { %v396_v41 = vcombine.low %v371_v37, %v379_v38  ;;  %v2793_v43 = vcombine.low %v5976_v45, %v2754_v39  ;;  %v397_v50 = vcombine.high %v371_v37, %v379_v38  ;;  %v2808_v45 = vrot.slane %v2801_v51, %v6020_v62 }
 0x2b5   :  { %436 = vrot.lane.b32.xlu0 %v347_v42, %s5886_s9  ;;  %v404_v46 = vrot.slane %v396_v41, %v6027_v11  ;;  %v2800_v54 = vrot.slane %v2793_v43, %v6020_v62  ;;  %v411_v60 = vrot.slane %v397_v50, %v6027_v11 }
 0x2b6   :  { %v2760_v48 = vpop.permute.xlu1 %2759  ;;  %v2769_v49 = vpop.permute.xlu0 %2768 }
 0x2b7   :  { %v412_v52 = vcombine.low %v388_v44, %v404_v46  ;;  %v2817_v55 = vcombine.low %v2763_v40, %v2769_v49  ;;  %v413_v59 = vcombine.high %v388_v44, %v404_v46  ;;  %v2825_v61 = vcombine.low %v2800_v54, %v2808_v45 }
 0x2b8   :  { %v414_v5 = vcombine.low %v395_v1, %v411_v60  ;;  %v415_v12 = vcombine.high %v395_v1, %v411_v60  ;;  %v2826_v14 = vcombine.high %v2800_v54, %v2808_v45 }
 0x2b9   :  { %426 = vrot.lane.b32.xlu1 %v412_v52, %s5886_s9  ;;  %v2824_v63 = vrot.slane %v2817_v55, %v6020_v62  ;;  %v2833_v7 = vrot.slane %v2825_v61, %v6027_v11 }
 0x2ba   :  { %v2766_v56 = vpop.permute.xlu1 %2765  ;;  %v2776_v57 = vpop.permute.xlu0 %2775  ;;  %v2840_v23 = vrot.slane %v2826_v14, %v6027_v11 }
 0x2bb   :  { %v2809_v58 = vcombine.low %v2760_v48, %v2766_v56  ;;  %v2861_v18 = vcombine.low %v5994_v47, %v2776_v57 }
 0x2bd   :  { %v2816_v0 = vrot.slane %v2809_v58, %v6020_v62  ;;  %430 = vrot.lane.b32.xlu1 %v413_v59, %s5886_s9  ;;  %v2868_v25 = vrot.slane %v2861_v18, %v6020_v62 }
 0x2be   :  { %v2773_v3 = vpop.permute.xlu1 %2772  ;;  %v2782_v6 = vpop.permute.xlu0 %2781 }
 0x2bf   :  { %v2841_v4 = vcombine.low %v2816_v0, %v2824_v63  ;;  %v2842_v10 = vcombine.high %v2816_v0, %v2824_v63 }
 0x2c1   :  { %434 = vrot.lane.b32.xlu1 %v414_v5, %s5886_s9  ;;  %v2849_v8 = vrot.slane %v2841_v4, %v6027_v11  ;;  %v2856_v20 = vrot.slane %v2842_v10, %v6027_v11 }
 0x2c2   :  { %v2779_v9 = vpop.permute.xlu1 %2778  ;;  %v2788_v16 = vpop.permute.xlu0 %2787 }
 0x2c3   :  { %v2857_v13 = vcombine.low %v2833_v7, %v2849_v8  ;;  %v2869_v15 = vcombine.low %v2773_v3, %v2779_v9  ;;  %v2858_v19 = vcombine.high %v2833_v7, %v2849_v8  ;;  %v2877_v22 = vcombine.low %v2782_v6, %v2788_v16 }
 0x2c4   :  { %v2859_v27 = vcombine.low %v2840_v23, %v2856_v20  ;;  %v2860_v31 = vcombine.high %v2840_v23, %v2856_v20 }
 0x2c5   :  { %438 = vrot.lane.b32.xlu1 %v415_v12, %s5886_s9  ;;  %2937 = vrot.lane.b32.xlu0 %v2857_v13, %s5886_s9  ;;  %v2876_v21 = vrot.slane %v2869_v15, %v6020_v62  ;;  %v2884_v29 = vrot.slane %v2877_v22, %v6020_v62 }
 0x2c6   :  { %v2785_v17 = vpop.permute.xlu1 %2784 }
 0x2c7   :  { %v2893_v28 = vcombine.low %v2868_v25, %v2876_v21  ;;  %v2894_v36 = vcombine.high %v2868_v25, %v2876_v21 }
 0x2c9   :  { %2941 = vrot.lane.b32.xlu0 %v2858_v19, %s5886_s9  ;;  %v2901_v32 = vrot.slane %v2893_v28, %v6027_v11  ;;  %v2908_v39 = vrot.slane %v2894_v36, %v6027_v11 }
 0x2ca   :  { %v2791_v24 = vpop.permute.xlu1 %2790 }
 0x2cb   :  { %v2885_v26 = vcombine.low %v2785_v17, %v2791_v24 }
 0x2cd   :  { %v2892_v47 = vrot.slane %v2885_v26, %v6020_v62  ;;  %2945 = vrot.lane.b32.xlu0 %v2859_v27, %s5886_s9 }
 0x2cf   :  { %v2909_v30 = vcombine.low %v2884_v29, %v2892_v47  ;;  %v2910_v34 = vcombine.high %v2884_v29, %v2892_v47 }
 0x2d1   :  { %2949 = vrot.lane.b32.xlu0 %v2860_v31, %s5886_s9  ;;  %v2917_v33 = vrot.slane %v2909_v30, %v6027_v11  ;;  %v2924_v38 = vrot.slane %v2910_v34, %v6027_v11 }
 0x2d3   :  { %v2925_v35 = vcombine.low %v2901_v32, %v2917_v33  ;;  %v2926_v37 = vcombine.high %v2901_v32, %v2917_v33  ;;  %v2927_v40 = vcombine.low %v2908_v39, %v2924_v38  ;;  %v2928_v41 = vcombine.high %v2908_v39, %v2924_v38 }
 0x2d5   :  { %2939 = vrot.lane.b32.xlu1 %v2925_v35, %s5886_s9 }
 0x2d9   :  { %2943 = vrot.lane.b32.xlu1 %v2926_v37, %s5886_s9 }
 0x2dd   :  { %2947 = vrot.lane.b32.xlu1 %v2927_v40, %s5886_s9 }
 0x2e1   :  { %2951 = vrot.lane.b32.xlu1 %v2928_v41, %s5886_s9 }
 0x31b   :  { %v425_v42 = vpop.permute.xlu0 %424 }
 0x31c   :  { %449 = vst.msk [vmem:[#allocation2 + $0x1] sm:$0xff] %vm448_vm4, %v425_v42 }
 0x31f   :  { %v429_v43 = vpop.permute.xlu0 %428 }
 0x320   :  { %451 = vst.msk [vmem:[#allocation2 + $0x19] sm:$0xff] %vm448_vm4, %v429_v43 }
 0x323   :  { %v433_v44 = vpop.permute.xlu0 %432  ;;  %v6084_v48 = vld [vmem:[#allocation2] sm:$0xff] }
 0x324   :  { %453 = vst.msk [vmem:[#allocation2 + $0x31] sm:$0xff] %vm448_vm4, %v433_v44  ;;  %v6124_v5 = vld [vmem:[#allocation2 + $0x1] sm:$0xff] }
 0x327   :  { %v437_v46 = vpop.permute.xlu0 %436  ;;  %v6093_v53 = vld [vmem:[#allocation2 + $0x18] sm:$0xff] }
 0x328   :  { %455 = vst.msk [vmem:[#allocation2 + $0x49] sm:$0xff] %vm448_vm4, %v437_v46  ;;  %v6131_v10 = vld [vmem:[#allocation2 + $0x19] sm:$0xff] }
 0x32b   :  { %v6086_v49 = vld [vmem:[#allocation2 + $0x30] sm:$0xff]  ;;  %v427_v50 = vpop.permute.xlu1 %426 }
 0x32c   :  { %450 = vst.msk [vmem:[#allocation2 + $0x9] sm:$0xff] %vm448_vm4, %v427_v50  ;;  %v465_v51 = vcombine.low %v6084_v48, %v6086_v49  ;;  %v466_v52 = vcombine.high %v6084_v48, %v6086_v49  ;;  %v6145_v21 = vld [vmem:[#allocation2 + $0x31] sm:$0xff] }
 0x32e   :  { %v6103_v45 = vrot.slane %v465_v51, %v6020_v62  ;;  %v6109_v59 = vrot.slane %v466_v52, %v6020_v62 }
 0x32f   :  { %v6095_v54 = vld [vmem:[#allocation2 + $0x48] sm:$0xff]  ;;  %v431_v55 = vpop.permute.xlu1 %430 }
 0x330   :  { %452 = vst.msk [vmem:[#allocation2 + $0x21] sm:$0xff] %vm448_vm4, %v431_v55  ;;  %v481_v56 = vcombine.low %v6093_v53, %v6095_v54  ;;  %v482_v57 = vcombine.high %v6093_v53, %v6095_v54  ;;  %v6170_v36 = vld [vmem:[#allocation2 + $0x49] sm:$0xff] }
 0x332   :  { %v6106_v58 = vrot.slane %v481_v56, %v6020_v62  ;;  %v6112_v60 = vrot.slane %v482_v57, %v6020_v62 }
 0x333   :  { %v458_v61 = vld [vmem:[#allocation2 + $0x8] sm:$0xff]  ;;  %v435_v63 = vpop.permute.xlu1 %434 }
 0x334   :  { %454 = vst.msk [vmem:[#allocation2 + $0x39] sm:$0xff] %vm448_vm4, %v435_v63  ;;  %701 = vrot.lane.b32.xlu0 %v458_v61, %s5887_s10  ;;  %v6126_v6 = vld [vmem:[#allocation2 + $0x2] sm:$0xff]  ;;  %v6195_v51 = vld [vmem:[#allocation2 + $0xa] sm:$0xff] }
 0x335   :  { %v6133_v12 = vld [vmem:[#allocation2 + $0x9] sm:$0xff] }
 0x337   :  { %v460_v7 = vld [vmem:[#allocation2 + $0x20] sm:$0xff]  ;;  %v439_v8 = vpop.permute.xlu1 %438  ;;  %v2938_v9 = vpop.permute.xlu0 %2937 }
 0x338   :  { %456 = vst.msk [vmem:[#allocation2 + $0x51] sm:$0xff] %vm448_vm4, %v439_v8  ;;  %705 = vrot.lane.b32.xlu1 %v460_v7, %s5887_s10  ;;  %2961 = vst.msk [vmem:[#allocation2 + $0x1] sm:$0xff] %vm448_vm4, %v2938_v9  ;;  %v6135_v13 = vld [vmem:[#allocation2 + $0x1a] sm:$0xff]  ;;  %v6205_v57 = vld [vmem:[#allocation2 + $0x22] sm:$0xff] }
 0x339   :  { %v1190_v22 = vld [vmem:[#allocation2 + $0x21] sm:$0xff] }
 0x33b   :  { %v462_v14 = vld [vmem:[#allocation2 + $0x38] sm:$0xff]  ;;  %v2942_v16 = vpop.permute.xlu0 %2941 }
 0x33c   :  { %v6137_v15 = vld [vmem:[#allocation2 + $0x39] sm:$0xff]  ;;  %709 = vrot.lane.b32.xlu0 %v462_v14, %s5887_s10  ;;  %2963 = vst.msk [vmem:[#allocation2 + $0x19] sm:$0xff] %vm448_vm4, %v2942_v16  ;;  %v533_v17 = vcombine.low %v458_v61, %v462_v14  ;;  %v534_v19 = vcombine.high %v458_v61, %v462_v14 }
 0x33d   :  { %v1263_v18 = vcombine.low %v6133_v12, %v6137_v15  ;;  %v1264_v20 = vcombine.high %v6133_v12, %v6137_v15  ;;  %v6147_v23 = vld [vmem:[#allocation2 + $0x32] sm:$0xff]  ;;  %v6212_v63 = vld [vmem:[#allocation2 + $0x3a] sm:$0xff] }
 0x33e   :  { %v6153_v47 = vrot.slane %v533_v17, %v6020_v62  ;;  %v6165_v34 = vrot.slane %v534_v19, %v6020_v62 }
 0x33f   :  { %v464_v24 = vld [vmem:[#allocation2 + $0x50] sm:$0xff]  ;;  %v2946_v26 = vpop.permute.xlu0 %2945  ;;  %v6156_v30 = vrot.slane %v1263_v18, %v6020_v62  ;;  %v6175_v39 = vrot.slane %v1264_v20, %v6020_v62  ;;  %v6401_v43 = vld [vmem:[#allocation2 + $0x1] sm:$0xff] }
 0x340   :  { %v1194_v25 = vld [vmem:[#allocation2 + $0x51] sm:$0xff]  ;;  %953 = vrot.lane.b32.xlu0 %v458_v61, %s5888_s11  ;;  %713 = vrot.lane.b32.xlu1 %v464_v24, %s5887_s10  ;;  %2965 = vst.msk [vmem:[#allocation2 + $0x31] sm:$0xff] %vm448_vm4, %v2946_v26  ;;  %v549_v27 = vcombine.low %v460_v7, %v464_v24  ;;  %v550_v29 = vcombine.high %v460_v7, %v464_v24 }
 0x341   :  { %v1279_v28 = vcombine.low %v1190_v22, %v1194_v25  ;;  %v1280_v31 = vcombine.high %v1190_v22, %v1194_v25  ;;  %v6172_v37 = vld [vmem:[#allocation2 + $0x4a] sm:$0xff]  ;;  %v6219_v8 = vld [vmem:[#allocation2 + $0x52] sm:$0xff] }
 0x342   :  { %v6159_v32 = vrot.slane %v549_v27, %v6020_v62  ;;  %v6168_v35 = vrot.slane %v550_v29, %v6020_v62 }
 0x343   :  { %v6162_v33 = vrot.slane %v1279_v28, %v6020_v62  ;;  %v2950_v38 = vpop.permute.xlu0 %2949  ;;  %v6178_v40 = vrot.slane %v1280_v31, %v6020_v62  ;;  %v3190_v16 = vld [vmem:[#allocation2 + $0x18] sm:$0xff] }
 0x344   :  { %961 = vrot.lane.b32.xlu0 %v462_v14, %s5888_s11  ;;  %957 = vrot.lane.b32.xlu1 %v460_v7, %s5888_s11  ;;  %2967 = vst.msk [vmem:[#allocation2 + $0x49] sm:$0xff] %vm448_vm4, %v2950_v38  ;;  %v6416_v44 = vld [vmem:[#allocation2 + $0x19] sm:$0xff] }
 0x347   :  { %v2940_v52 = vpop.permute.xlu1 %2939  ;;  %v6414_v0 = vld [vmem:[#allocation2 + $0x31] sm:$0xff] }
 0x348   :  { %699 = vrot.lane.b32.xlu0 %v6084_v48, %s5887_s10  ;;  %965 = vrot.lane.b32.xlu1 %v464_v24, %s5888_s11  ;;  %2962 = vst.msk [vmem:[#allocation2 + $0x9] sm:$0xff] %vm448_vm4, %v2940_v52 }
 0x34b   :  { %v2944_v61 = vpop.permute.xlu1 %2943  ;;  %v3194_v19 = vld [vmem:[#allocation2 + $0x48] sm:$0xff] }
 0x34c   :  { %707 = vrot.lane.b32.xlu0 %v6086_v49, %s5887_s10  ;;  %703 = vrot.lane.b32.xlu1 %v6093_v53, %s5887_s10  ;;  %2964 = vst.msk [vmem:[#allocation2 + $0x21] sm:$0xff] %vm448_vm4, %v2944_v61 }
 0x34f   :  { %v2948_v7 = vpop.permute.xlu1 %2947  ;;  %v3910_v38 = vld [vmem:[#allocation2 + $0x9] sm:$0xff] }
 0x350   :  { %951 = vrot.lane.b32.xlu0 %v6084_v48, %s5888_s11  ;;  %711 = vrot.lane.b32.xlu1 %v6095_v54, %s5887_s10  ;;  %2966 = vst.msk [vmem:[#allocation2 + $0x39] sm:$0xff] %vm448_vm4, %v2948_v7  ;;  %v3189_v48 = vld [vmem:[#allocation2 + $0x8] sm:$0xff] }
 0x351   :  { %v4631_v2 = vld [vmem:[#allocation2 + $0xa] sm:$0xff] }
 0x353   :  { %v2952_v9 = vpop.permute.xlu1 %2951  ;;  %v4633_v50 = vld [vmem:[#allocation2 + $0x22] sm:$0xff] }
 0x354   :  { %959 = vrot.lane.b32.xlu0 %v6086_v49, %s5888_s11  ;;  %955 = vrot.lane.b32.xlu1 %v6093_v53, %s5888_s11  ;;  %2968 = vst.msk [vmem:[#allocation2 + $0x51] sm:$0xff] %vm448_vm4, %v2952_v9  ;;  %v3191_v49 = vld [vmem:[#allocation2 + $0x20] sm:$0xff] }
 0x357   :  { %v3193_v53 = vld [vmem:[#allocation2 + $0x38] sm:$0xff] }
 0x358   :  { %1425 = vrot.lane.b32.xlu0 %v6133_v12, %s5887_s10  ;;  %963 = vrot.lane.b32.xlu1 %v6095_v54, %s5888_s11  ;;  %v4635_v55 = vld [vmem:[#allocation2 + $0x3a] sm:$0xff] }
 0x35b   :  { %v3195_v54 = vld [vmem:[#allocation2 + $0x50] sm:$0xff] }
 0x35c   :  { %1433 = vrot.lane.b32.xlu0 %v6137_v15, %s5887_s10  ;;  %1429 = vrot.lane.b32.xlu1 %v1190_v22, %s5887_s10  ;;  %v4637_v1 = vld [vmem:[#allocation2 + $0x52] sm:$0xff] }
 0x360   :  { %1677 = vrot.lane.b32.xlu0 %v6133_v12, %s5888_s11  ;;  %1437 = vrot.lane.b32.xlu1 %v1194_v25, %s5887_s10  ;;  %v3188_v12 = vld [vmem:[#allocation2] sm:$0xff] }
 0x364   :  { %1685 = vrot.lane.b32.xlu0 %v6137_v15, %s5888_s11  ;;  %1681 = vrot.lane.b32.xlu1 %v1190_v22, %s5888_s11  ;;  %v3192_v15 = vld [vmem:[#allocation2 + $0x30] sm:$0xff] }
 0x368   :  { %2149 = vrot.lane.b32.xlu0 %v6195_v51, %s5887_s10  ;;  %1689 = vrot.lane.b32.xlu1 %v1194_v25, %s5888_s11 }
 0x36c   :  { %2157 = vrot.lane.b32.xlu0 %v6212_v63, %s5887_s10  ;;  %2153 = vrot.lane.b32.xlu1 %v6205_v57, %s5887_s10 }
 0x370   :  { %1423 = vrot.lane.b32.xlu0 %v6124_v5, %s5887_s10  ;;  %2161 = vrot.lane.b32.xlu1 %v6219_v8, %s5887_s10 }
 0x374   :  { %1431 = vrot.lane.b32.xlu0 %v6145_v21, %s5887_s10  ;;  %1427 = vrot.lane.b32.xlu1 %v6131_v10, %s5887_s10 }
 0x378   :  { %1675 = vrot.lane.b32.xlu0 %v6124_v5, %s5888_s11  ;;  %1435 = vrot.lane.b32.xlu1 %v6170_v36, %s5887_s10 }
 0x37c   :  { %1683 = vrot.lane.b32.xlu0 %v6145_v21, %s5888_s11  ;;  %1679 = vrot.lane.b32.xlu1 %v6131_v10, %s5888_s11 }
 0x380   :  { %2147 = vrot.lane.b32.xlu0 %v6126_v6, %s5887_s10  ;;  %1687 = vrot.lane.b32.xlu1 %v6170_v36, %s5888_s11 }
 0x384   :  { %2155 = vrot.lane.b32.xlu0 %v6147_v23, %s5887_s10  ;;  %2151 = vrot.lane.b32.xlu1 %v6135_v13, %s5887_s10 }
 0x388   :  { %2401 = vrot.lane.b32.xlu0 %v6195_v51, %s5888_s11  ;;  %2159 = vrot.lane.b32.xlu1 %v6172_v37, %s5887_s10 }
 0x38c   :  { %2409 = vrot.lane.b32.xlu0 %v6212_v63, %s5888_s11  ;;  %2405 = vrot.lane.b32.xlu1 %v6205_v57, %s5888_s11 }
 0x390   :  { %2399 = vrot.lane.b32.xlu0 %v6126_v6, %s5888_s11  ;;  %2413 = vrot.lane.b32.xlu1 %v6219_v8, %s5888_s11 }
 0x394   :  { %2407 = vrot.lane.b32.xlu0 %v6147_v23, %s5888_s11  ;;  %2403 = vrot.lane.b32.xlu1 %v6135_v13, %s5888_s11 }
 0x398   :  { %2411 = vrot.lane.b32.xlu1 %v6172_v37, %s5888_s11  ;;  %3206 = vrot.lane.b32.xlu0 %v3189_v48, %s5887_s10 }
 0x39c   :  { %3210 = vrot.lane.b32.xlu1 %v3191_v49, %s5887_s10  ;;  %3214 = vrot.lane.b32.xlu0 %v3193_v53, %s5887_s10 }
 0x3a0   :  { %3457 = vrot.lane.b32.xlu0 %v3189_v48, %s5888_s11  ;;  %3218 = vrot.lane.b32.xlu1 %v3195_v54, %s5887_s10  ;;  %v3914_v48 = vld [vmem:[#allocation2 + $0x39] sm:$0xff] }
 0x3a4   :  { %3465 = vrot.lane.b32.xlu0 %v3193_v53, %s5888_s11  ;;  %3461 = vrot.lane.b32.xlu1 %v3191_v49, %s5888_s11  ;;  %v3912_v49 = vld [vmem:[#allocation2 + $0x21] sm:$0xff] }
 0x3a6   :  { %v6297_v14 = vpop.permute.xlu0 %701 }
 0x3a8   :  { %3204 = vrot.lane.b32.xlu0 %v3188_v12, %s5887_s10  ;;  %3469 = vrot.lane.b32.xlu1 %v3195_v54, %s5888_s11 }
 0x3aa   :  { %v6301_v17 = vpop.permute.xlu1 %705 }
 0x3ac   :  { %3212 = vrot.lane.b32.xlu0 %v3192_v15, %s5887_s10  ;;  %3208 = vrot.lane.b32.xlu1 %v3190_v16, %s5887_s10 }
 0x3ae   :  { %v6303_v18 = vpop.permute.xlu0 %709 }
 0x3af   :  { %v791_v20 = vcombine.low %v6297_v14, %v6303_v18 }
 0x3b0   :  { %3455 = vrot.lane.b32.xlu0 %v3188_v12, %s5888_s11  ;;  %3216 = vrot.lane.b32.xlu1 %v3194_v19, %s5887_s10 }
 0x3b1   :  { %v6318_v26 = vrot.slane %v791_v20, %v6020_v62 }
 0x3b2   :  { %v6309_v22 = vpop.permute.xlu1 %713  ;;  %v6311_v24 = vpop.permute.xlu0 %953 }
 0x3b3   :  { %v807_v25 = vcombine.low %v6301_v17, %v6309_v22 }
 0x3b4   :  { %3463 = vrot.lane.b32.xlu0 %v3192_v15, %s5888_s11  ;;  %3459 = vrot.lane.b32.xlu1 %v3190_v16, %s5888_s11 }
 0x3b5   :  { %v6321_v27 = vrot.slane %v807_v25, %v6020_v62 }
 0x3b6   :  { %v6323_v28 = vpop.permute.xlu1 %957  ;;  %v6325_v29 = vpop.permute.xlu0 %961 }
 0x3b7   :  { %v1043_v52 = vcombine.low %v6311_v24, %v6325_v29 }
 0x3b8   :  { %3927 = vrot.lane.b32.xlu0 %v3910_v38, %s5887_s10  ;;  %3467 = vrot.lane.b32.xlu1 %v3194_v19, %s5888_s11  ;;  %v3916_v19 = vld [vmem:[#allocation2 + $0x51] sm:$0xff] }
 0x3b9   :  { %v6342_v53 = vrot.slane %v1043_v52, %v6020_v62 }
 0x3ba   :  { %v6333_v61 = vpop.permute.xlu1 %965  ;;  %v6335_v7 = vpop.permute.xlu0 %699 }
 0x3bb   :  { %9578 = vst [vmem:[#allocation4_spill] sm:$0xff] %v6335_v7  ;;  %v1059_v9 = vcombine.low %v6323_v28, %v6333_v61 }
 0x3bc   :  { %3935 = vrot.lane.b32.xlu0 %v3914_v48, %s5887_s10  ;;  %3931 = vrot.lane.b32.xlu1 %v3912_v49, %s5887_s10 }
 0x3bd   :  { %v6345_v54 = vrot.slane %v1059_v9, %v6020_v62 }
 0x3be   :  { %v6347_v12 = vpop.permute.xlu1 %703  ;;  %v6349_v15 = vpop.permute.xlu0 %707 }
 0x3bf   :  { %9579 = vst [vmem:[#allocation5_spill] sm:$0xff] %v6347_v12  ;;  %9580 = vst [vmem:[#allocation6_spill] sm:$0xff] %v6349_v15  ;;  %v723_v20 = vcombine.low %v6335_v7, %v6349_v15  ;;  %v2003_v15 = vcombine.low %v6205_v57, %v6219_v8 }
 0x3c0   :  { %4178 = vrot.lane.b32.xlu0 %v3910_v38, %s5888_s11  ;;  %3939 = vrot.lane.b32.xlu1 %v3916_v19, %s5887_s10 }
 0x3c1   :  { %v6366_v16 = vrot.slane %v723_v20, %v6020_v62 }
 0x3c2   :  { %v6357_v25 = vpop.permute.xlu1 %711  ;;  %v6359_v52 = vpop.permute.xlu0 %951 }
 0x3c3   :  { %9581 = vst [vmem:[#allocation7_spill] sm:$0xff] %v6357_v25  ;;  %9582 = vst [vmem:[#allocation8_spill] sm:$0xff] %v6359_v52  ;;  %v739_v9 = vcombine.low %v6347_v12, %v6357_v25  ;;  %v1987_v25 = vcombine.low %v6195_v51, %v6212_v63 }
 0x3c4   :  { %4186 = vrot.lane.b32.xlu0 %v3914_v48, %s5888_s11  ;;  %4182 = vrot.lane.b32.xlu1 %v3912_v49, %s5888_s11  ;;  %9583 = vst [vmem:[#allocation9_spill] sm:$0xff] %v6366_v16  ;;  %v9634_v16 = vcombine.low %v6175_v39, %v6178_v40 }
 0x3c5   :  { %v6369_v38 = vrot.slane %v739_v9, %v6020_v62 }
 0x3c6   :  { %v6371_v31 = vpop.permute.xlu1 %955  ;;  %v6373_v4 = vpop.permute.xlu0 %959 }
 0x3c7   :  { %9584 = vst [vmem:[#allocation10_spill] sm:$0xff] %v6369_v38  ;;  %9585 = vst [vmem:[#allocation11_spill] sm:$0xff] %v6371_v31  ;;  %v975_v48 = vcombine.low %v6359_v52, %v6373_v4  ;;  %v6630_v38 = vrot.slane %v9634_v16, %v6027_v11  ;;  %v6662_v16 = vrot.slane %v2003_v15, %v6020_v62 }
 0x3c8   :  { %9586 = vst [vmem:[#allocation12_spill] sm:$0xff] %v6373_v4  ;;  %4648 = vrot.lane.b32.xlu0 %v4631_v2, %s5887_s10  ;;  %4190 = vrot.lane.b32.xlu1 %v3916_v19, %s5888_s11 }
 0x3c9   :  { %v6390_v56 = vrot.slane %v975_v48, %v6020_v62 }
 0x3ca   :  { %v6381_v49 = vpop.permute.xlu1 %963  ;;  %v6383_v20 = vpop.permute.xlu0 %1425 }
 0x3cb   :  { %9587 = vst [vmem:[#allocation13_spill] sm:$0xff] %v6381_v49  ;;  %9588 = vst [vmem:[#allocation14_spill] sm:$0xff] %v6383_v20  ;;  %v991_v9 = vcombine.low %v6371_v31, %v6381_v49 }
 0x3cc   :  { %4656 = vrot.lane.b32.xlu0 %v4635_v55, %s5887_s10  ;;  %4652 = vrot.lane.b32.xlu1 %v4633_v50, %s5887_s10  ;;  %9589 = vst [vmem:[#allocation15_spill] sm:$0xff] %v6390_v56 }
 0x3cd   :  { %v6393_v19 = vrot.slane %v991_v9, %v6020_v62 }
 0x3ce   :  { %v6395_v46 = vpop.permute.xlu1 %1429  ;;  %v6397_v3 = vpop.permute.xlu0 %1433 }
 0x3cf   :  { %9590 = vst [vmem:[#allocation16_spill] sm:$0xff] %v6393_v19  ;;  %9591 = vst [vmem:[#allocation17_spill] sm:$0xff] %v6395_v46  ;;  %v1515_v48 = vcombine.low %v6383_v20, %v6397_v3 }
 0x3d0   :  { %9592 = vst [vmem:[#allocation18_spill] sm:$0xff] %v6397_v3  ;;  %3925 = vrot.lane.b32.xlu0 %v6401_v43, %s5887_s10  ;;  %4660 = vrot.lane.b32.xlu1 %v4637_v1, %s5887_s10 }
 0x3d1   :  { %v6423_v52 = vrot.slane %v1515_v48, %v6020_v62 }
 0x3d2   :  { %v6408_v9 = vpop.permute.xlu1 %1437  ;;  %v6410_v42 = vpop.permute.xlu0 %1677 }
 0x3d3   :  { %9593 = vst [vmem:[#allocation19_spill] sm:$0xff] %v6408_v9  ;;  %9594 = vst [vmem:[#allocation20_spill] sm:$0xff] %v6410_v42  ;;  %v1531_v41 = vcombine.low %v6395_v46, %v6408_v9  ;;  %v6434_v9 = vld [vmem:[#allocation2 + $0x49] sm:$0xff] }
 0x3d4   :  { %3933 = vrot.lane.b32.xlu0 %v6414_v0, %s5887_s10  ;;  %3929 = vrot.lane.b32.xlu1 %v6416_v44, %s5887_s10  ;;  %9595 = vst [vmem:[#allocation21_spill] sm:$0xff] %v6423_v52  ;;  %v4630_v52 = vld [vmem:[#allocation2 + $0x2] sm:$0xff] }
 0x3d5   :  { %v6426_v20 = vrot.slane %v1531_v41, %v6020_v62 }
 0x3d6   :  { %v6428_v3 = vpop.permute.xlu1 %1681  ;;  %v6430_v42 = vpop.permute.xlu0 %1685 }
 0x3d7   :  { %9596 = vst [vmem:[#allocation22_spill] sm:$0xff] %v6426_v20  ;;  %9597 = vst [vmem:[#allocation23_spill] sm:$0xff] %v6428_v3  ;;  %v4632_v3 = vld [vmem:[#allocation2 + $0x1a] sm:$0xff] }
 0x3d8   :  { %9598 = vst [vmem:[#allocation24_spill] sm:$0xff] %v6430_v42  ;;  %4176 = vrot.lane.b32.xlu0 %v6401_v43, %s5888_s11  ;;  %3937 = vrot.lane.b32.xlu1 %v6434_v9, %s5887_s10 }
 0x3da   :  { %v6440_v48 = vpop.permute.xlu1 %1689  ;;  %v6442_v4 = vpop.permute.xlu0 %2149 }
 0x3db   :  { %9599 = vst [vmem:[#allocation25_spill] sm:$0xff] %v6440_v48  ;;  %9600 = vst [vmem:[#allocation26_spill] sm:$0xff] %v6442_v4  ;;  %v4634_v4 = vld [vmem:[#allocation2 + $0x32] sm:$0xff] }
 0x3dc   :  { %4184 = vrot.lane.b32.xlu0 %v6414_v0, %s5888_s11  ;;  %4180 = vrot.lane.b32.xlu1 %v6416_v44, %s5888_s11 }
 0x3de   :  { %v6448_v41 = vpop.permute.xlu1 %2153  ;;  %v6450_v46 = vpop.permute.xlu0 %2157 }
 0x3df   :  { %9601 = vst [vmem:[#allocation27_spill] sm:$0xff] %v6448_v41  ;;  %9602 = vst [vmem:[#allocation28_spill] sm:$0xff] %v6450_v46  ;;  %v4636_v46 = vld [vmem:[#allocation2 + $0x4a] sm:$0xff] }
 0x3e0   :  { %4646 = vrot.lane.b32.xlu0 %v4630_v52, %s5887_s10  ;;  %4188 = vrot.lane.b32.xlu1 %v6434_v9, %s5888_s11 }
 0x3e2   :  { %v6455_v20 = vpop.permute.xlu1 %2161  ;;  %v6457_v42 = vpop.permute.xlu0 %1423 }
 0x3e3   :  { %9603 = vst [vmem:[#allocation29_spill] sm:$0xff] %v6455_v20  ;;  %9604 = vst [vmem:[#allocation30_spill] sm:$0xff] %v6457_v42 }
 0x3e4   :  { %4654 = vrot.lane.b32.xlu0 %v4634_v4, %s5887_s10  ;;  %4650 = vrot.lane.b32.xlu1 %v4632_v3, %s5887_s10 }
 0x3e6   :  { %v6461_v48 = vpop.permute.xlu1 %1427  ;;  %v6463_v41 = vpop.permute.xlu0 %1431 }
 0x3e7   :  { %9605 = vst [vmem:[#allocation31_spill] sm:$0xff] %v6461_v48  ;;  %9606 = vst [vmem:[#allocation32_spill] sm:$0xff] %v6463_v41  ;;  %v1447_v20 = vcombine.low %v6457_v42, %v6463_v41  ;;  %v1211_v41 = vcombine.low %v6131_v10, %v6170_v36 }
 0x3e8   :  { %4899 = vrot.lane.b32.xlu0 %v4631_v2, %s5888_s11  ;;  %4658 = vrot.lane.b32.xlu1 %v4636_v46, %s5887_s10 }
 0x3e9   :  { %v6478_v49 = vrot.slane %v1447_v20, %v6020_v62 }
 0x3ea   :  { %v6469_v56 = vpop.permute.xlu1 %1435  ;;  %v6471_v19 = vpop.permute.xlu0 %1675 }
 0x3eb   :  { %9607 = vst [vmem:[#allocation33_spill] sm:$0xff] %v6469_v56  ;;  %9608 = vst [vmem:[#allocation34_spill] sm:$0xff] %v6471_v19  ;;  %v1463_v31 = vcombine.low %v6461_v48, %v6469_v56  ;;  %v6502_v56 = vrot.slane %v1211_v41, %v6020_v62 }
 0x3ec   :  { %4907 = vrot.lane.b32.xlu0 %v4635_v55, %s5888_s11  ;;  %4903 = vrot.lane.b32.xlu1 %v4633_v50, %s5888_s11  ;;  %9609 = vst [vmem:[#allocation35_spill] sm:$0xff] %v6478_v49  ;;  %v1195_v50 = vcombine.low %v6124_v5, %v6145_v21 }
 0x3ed   :  { %v6481_v2 = vrot.slane %v1463_v31, %v6020_v62 }
 0x3ee   :  { %v6483_v7 = vpop.permute.xlu1 %1679  ;;  %v6485_v42 = vpop.permute.xlu0 %1683 }
 0x3ef   :  { %9610 = vst [vmem:[#allocation36_spill] sm:$0xff] %v6481_v2  ;;  %9611 = vst [vmem:[#allocation37_spill] sm:$0xff] %v6483_v7  ;;  %v1699_v55 = vcombine.low %v6471_v19, %v6485_v42 }
 0x3f0   :  { %9612 = vst [vmem:[#allocation38_spill] sm:$0xff] %v6485_v42  ;;  %4897 = vrot.lane.b32.xlu0 %v4630_v52, %s5888_s11  ;;  %4911 = vrot.lane.b32.xlu1 %v4637_v1, %s5888_s11  ;;  %v6509_v1 = vrot.slane %v1195_v50, %v6020_v62  ;;  %v1212_v50 = vcombine.high %v6131_v10, %v6170_v36 }
 0x3f1   :  { %v6512_v52 = vrot.slane %v1699_v55, %v6020_v62  ;;  %v1196_v55 = vcombine.high %v6124_v5, %v6145_v21  ;;  %v9622_v10 = vcombine.high %v6153_v47, %v6159_v32 }
 0x3f2   :  { %v6497_v31 = vpop.permute.xlu1 %1687  ;;  %v6499_v20 = vpop.permute.xlu0 %2147 }
 0x3f3   :  { %9613 = vst [vmem:[#allocation39_spill] sm:$0xff] %v6497_v31  ;;  %9614 = vst [vmem:[#allocation40_spill] sm:$0xff] %v6499_v20  ;;  %v1715_v48 = vcombine.low %v6483_v7, %v6497_v31  ;;  %v9619_v7 = vcombine.high %v6103_v45, %v6106_v58  ;;  %v6548_v36 = vrot.slane %v9622_v10, %v6027_v11 }
 0x3f4   :  { %4905 = vrot.lane.b32.xlu0 %v4634_v4, %s5888_s11  ;;  %4901 = vrot.lane.b32.xlu1 %v4632_v3, %s5888_s11  ;;  %9615 = vst [vmem:[#allocation41_spill] sm:$0xff] %v6512_v52  ;;  %v1228_v3 = vcombine.high %v6509_v1, %v6502_v56  ;;  %v1210_v21 = vrot.slane %v1196_v55, %v6020_v62 }
 0x3f5   :  { %v6515_v19 = vrot.slane %v1715_v48, %v6020_v62  ;;  %v6525_v4 = vrot.slane %v9619_v7, %v6027_v11  ;;  %v1226_v48 = vrot.slane %v1212_v50, %v6020_v62  ;;  %v9628_v55 = vcombine.low %v6109_v59, %v6112_v60 }
 0x3f6   :  { %v6517_v42 = vpop.permute.xlu1 %2151  ;;  %v6519_v41 = vpop.permute.xlu0 %2155 }
 0x3f7   :  { %9616 = vst [vmem:[#allocation42_spill] sm:$0xff] %v6515_v19  ;;  %9617 = vst [vmem:[#allocation43_spill] sm:$0xff] %v6517_v42  ;;  %v2171_v7 = vcombine.low %v6499_v20, %v6519_v41 }
 0x3f8   :  { %9618 = vst [vmem:[#allocation44_spill] sm:$0xff] %v6519_v41  ;;  %4909 = vrot.lane.b32.xlu1 %v4636_v46, %s5888_s11  ;;  %606 = vrot.lane.b32.xlu0 %v6525_v4, %s5883_s8  ;;  %v6551_v46 = vrot.slane %v1228_v3, %v6027_v11  ;;  %v9627_v41 = vcombine.high %v6156_v30, %v6162_v33 }
 0x3f9   :  { %v6562_v20 = vrot.slane %v2171_v7, %v6020_v62  ;;  %v1243_v7 = vcombine.low %v1210_v21, %v1226_v48 }
 0x3fa   :  { %v6540_v31 = vpop.permute.xlu1 %2159  ;;  %v6542_v49 = vpop.permute.xlu0 %2401 }
 0x3fb   :  { %9620 = vst [vmem:[#allocation45_spill] sm:$0xff] %v6540_v31  ;;  %9621 = vst [vmem:[#allocation46_spill] sm:$0xff] %v6542_v49  ;;  %v2187_v5 = vcombine.low %v6517_v42, %v6540_v31  ;;  %v6575_v42 = vrot.slane %v9627_v41, %v6027_v11  ;;  %v6581_v31 = vrot.slane %v9628_v55, %v6027_v11 }
 0x3fc   :  { %634 = vrot.lane.b32.xlu1 %v6548_v36, %s5883_s8  ;;  %1336 = vrot.lane.b32.xlu0 %v6551_v46, %s5883_s8  ;;  %9623 = vst [vmem:[#allocation47_spill] sm:$0xff] %v6562_v20  ;;  %v9631_v55 = vcombine.low %v6165_v34, %v6168_v35  ;;  %v1935_v20 = vcombine.low %v6135_v13, %v6172_v37 }
 0x3fd   :  { %v6565_v10 = vrot.slane %v2187_v5, %v6020_v62  ;;  %v6602_v5 = vrot.slane %v1243_v7, %v6027_v11 }
 0x3fe   :  { %v6567_v3 = vpop.permute.xlu1 %2405  ;;  %v6569_v50 = vpop.permute.xlu0 %2409  ;;  %v6599_v2 = vrot.slane %v9631_v55, %v6027_v11 }
 0x3ff   :  { %9624 = vst [vmem:[#allocation48_spill] sm:$0xff] %v6565_v10  ;;  %9625 = vst [vmem:[#allocation49_spill] sm:$0xff] %v6567_v3  ;;  %v2491_v41 = vcombine.low %v6542_v49, %v6569_v50  ;;  %v1919_v49 = vcombine.low %v6126_v6, %v6147_v23 }
 0x400   :  { %9626 = vst [vmem:[#allocation50_spill] sm:$0xff] %v6569_v50  ;;  %1364 = vrot.lane.b32.xlu1 %v6575_v42, %s5883_s8  ;;  %614 = vrot.lane.b32.xlu0 %v6581_v31, %s5881_s6  ;;  %v1244_v50 = vcombine.high %v1210_v21, %v1226_v48  ;;  %v6639_v48 = vrot.slane %v1935_v20, %v6020_v62 }
 0x401   :  { %v6615_v55 = vrot.slane %v2491_v41, %v6020_v62  ;;  %v9635_v41 = vcombine.high %v6109_v59, %v6112_v60  ;;  %v1936_v21 = vcombine.high %v6135_v13, %v6172_v37  ;;  %v6652_v59 = vrot.slane %v1919_v49, %v6020_v62 }
 0x402   :  { %v6591_v52 = vpop.permute.xlu1 %2413  ;;  %v6593_v19 = vpop.permute.xlu0 %2399  ;;  %v1920_v60 = vcombine.high %v6126_v6, %v6147_v23  ;;  %v6659_v37 = vrot.slane %v1244_v50, %v6027_v11  ;;  %v9637_v49 = vcombine.high %v6165_v34, %v6168_v35  ;;  %v2004_v50 = vcombine.high %v6205_v57, %v6219_v8 }
 0x403   :  { %9629 = vst [vmem:[#allocation51_spill] sm:$0xff] %v6591_v52  ;;  %9630 = vst [vmem:[#allocation52_spill] sm:$0xff] %v6593_v19  ;;  %v2507_v10 = vcombine.low %v6567_v3, %v6591_v52  ;;  %v1952_v6 = vcombine.high %v6652_v59, %v6639_v48  ;;  %v1950_v23 = vrot.slane %v1936_v21, %v6020_v62 }
 0x404   :  { %642 = vrot.lane.b32.xlu1 %v6599_v2, %s5881_s6  ;;  %1344 = vrot.lane.b32.xlu0 %v6602_v5, %s5881_s6  ;;  %v6672_v12 = vrot.slane %v9637_v49, %v6027_v11  ;;  %v1934_v34 = vrot.slane %v1920_v60, %v6020_v62  ;;  %v1988_v35 = vcombine.high %v6195_v51, %v6212_v63 }
 0x405   :  { %v6618_v7 = vrot.slane %v2507_v10, %v6020_v62  ;;  %v6636_v10 = vrot.slane %v9635_v41, %v6027_v11  ;;  %v9642_v60 = vcombine.high %v6175_v39, %v6178_v40  ;;  %v6710_v51 = vrot.slane %v1952_v6, %v6027_v11 }
 0x406   :  { %v6622_v3 = vpop.permute.xlu1 %2403  ;;  %v6624_v52 = vpop.permute.xlu0 %2407  ;;  %v1967_v63 = vcombine.low %v1934_v34, %v1950_v23 }
 0x407   :  { %9632 = vst [vmem:[#allocation53_spill] sm:$0xff] %v6622_v3  ;;  %9633 = vst [vmem:[#allocation54_spill] sm:$0xff] %v6624_v52  ;;  %v2423_v13 = vcombine.low %v6593_v19, %v6624_v52  ;;  %v6682_v19 = vrot.slane %v1987_v25, %v6020_v62  ;;  %v6707_v52 = vrot.slane %v9642_v60, %v6027_v11 }
 0x408   :  { %1372 = vrot.lane.b32.xlu1 %v6630_v38, %s5881_s6  ;;  %622 = vrot.lane.b32.xlu0 %v6636_v10, %s5877_s1  ;;  %v6730_v60 = vrot.slane %v1967_v63, %v6027_v11 }
 0x409   :  { %v6692_v21 = vrot.slane %v2423_v13, %v6020_v62  ;;  %v2020_v8 = vcombine.high %v6682_v19, %v6662_v16  ;;  %v2018_v13 = vrot.slane %v2004_v50, %v6020_v62 }
 0x40a   :  { %v6664_v20 = vpop.permute.xlu1 %2411  ;;  %v6666_v41 = vpop.permute.xlu0 %3206 }
 0x40b   :  { %9636 = vst [vmem:[#allocation55_spill] sm:$0xff] %v6666_v41  ;;  %v2439_v15 = vcombine.low %v6622_v3, %v6664_v20  ;;  %9638 = vst [vmem:[#allocation56_spill] sm:$0xff] %v6692_v21  ;;  %v2002_v3 = vrot.slane %v1988_v35, %v6020_v62  ;;  %v6727_v50 = vrot.slane %v2020_v8, %v6027_v11 }
 0x40c   :  { %650 = vrot.lane.b32.xlu1 %v6672_v12, %s5877_s1  ;;  %1352 = vrot.lane.b32.xlu0 %v6659_v37, %s5877_s1  ;;  %v1968_v21 = vcombine.high %v1934_v34, %v1950_v23 }
 0x40d   :  { %v6695_v57 = vrot.slane %v2439_v15, %v6020_v62  ;;  %v2035_v15 = vcombine.low %v2002_v3, %v2018_v13 }
 0x40e   :  { %v6699_v25 = vpop.permute.xlu1 %3210  ;;  %v6701_v49 = vpop.permute.xlu0 %3214  ;;  %v6752_v34 = vrot.slane %v1968_v21, %v6027_v11  ;;  %v1227_v21 = vcombine.low %v6509_v1, %v6502_v56  ;;  %v9656_v56 = vcombine.low %v6103_v45, %v6106_v58 }
 0x40f   :  { %9639 = vst [vmem:[#allocation57_spill] sm:$0xff] %v6695_v57  ;;  %9640 = vst [vmem:[#allocation58_spill] sm:$0xff] %v6699_v25  ;;  %v3296_v39 = vcombine.low %v6666_v41, %v6701_v49  ;;  %v6749_v23 = vrot.slane %v2035_v15, %v6027_v11 }
 0x410   :  { %9641 = vst [vmem:[#allocation59_spill] sm:$0xff] %v6701_v49  ;;  %1380 = vrot.lane.b32.xlu1 %v6707_v52, %s5877_s1  ;;  %2060 = vrot.lane.b32.xlu0 %v6710_v51, %s5883_s8  ;;  %v2036_v49 = vcombine.high %v2002_v3, %v2018_v13  ;;  %v9654_v13 = vcombine.low %v6156_v30, %v6162_v33 }
 0x411   :  { %v6739_v35 = vrot.slane %v3296_v39, %v6020_v62  ;;  %v6787_v1 = vrot.slane %v9656_v56, %v6027_v11 }
 0x412   :  { %v6722_v40 = vpop.permute.xlu1 %3218  ;;  %v6724_v6 = vpop.permute.xlu0 %3457 }
 0x413   :  { %9643 = vst [vmem:[#allocation60_spill] sm:$0xff] %v6722_v40  ;;  %9644 = vst [vmem:[#allocation61_spill] sm:$0xff] %v6724_v6  ;;  %v3312_v57 = vcombine.low %v6699_v25, %v6722_v40  ;;  %v9649_v25 = vcombine.low %v6153_v47, %v6159_v32  ;;  %v6773_v47 = vrot.slane %v2036_v49, %v6027_v11  ;;  %v9653_v32 = vmov 0.0  }
 0x414   :  { %2088 = vrot.lane.b32.xlu1 %v6727_v50, %s5883_s8  ;;  %2068 = vrot.lane.b32.xlu0 %v6730_v60, %s5881_s6  ;;  %9645 = vst [vmem:[#allocation62_spill] sm:$0xff] %v6739_v35  ;;  %9657 = vst [vmem:[#allocation70_spill] sm:$0xff] %v6787_v1  ;;  %v529_v33 = vcombine.high %v6787_v1, %v9653_v32 }
 0x415   :  { %v6742_v8 = vrot.slane %v3312_v57, %v6020_v62  ;;  %v6758_v39 = vrot.slane %v9649_v25, %v6027_v11  ;;  %v6781_v57 = vrot.slane %v9654_v13, %v6027_v11  ;;  %v6801_v13 = vrot.slane %v1227_v21, %v6027_v11 }
 0x416   :  { %v6744_v41 = vpop.permute.xlu1 %3461  ;;  %v6746_v63 = vpop.permute.xlu0 %3465 }
 0x417   :  { %9646 = vst [vmem:[#allocation63_spill] sm:$0xff] %v6742_v8  ;;  %9647 = vst [vmem:[#allocation64_spill] sm:$0xff] %v6744_v41  ;;  %v597_v25 = vcombine.high %v6758_v39, %v9653_v32  ;;  %v1327_v30 = vcombine.high %v6781_v57, %v9653_v32  ;;  %v1259_v56 = vcombine.high %v6801_v13, %v9653_v32 }
 0x418   :  { %9648 = vst [vmem:[#allocation65_spill] sm:$0xff] %v6746_v63  ;;  %9650 = vst [vmem:[#allocation66_spill] sm:$0xff] %v6758_v39  ;;  %2096 = vrot.lane.b32.xlu1 %v6749_v23, %s5881_s6  ;;  %2076 = vrot.lane.b32.xlu0 %v6752_v34, %s5877_s1 }
 0x419   :  { %9655 = vst [vmem:[#allocation69_spill] sm:$0xff] %v6781_v57  ;;  %9660 = vst [vmem:[#allocation73_spill] sm:$0xff] %v6801_v13  ;;  %v599_v13 = vcombine.high %v6599_v2, %v9653_v32 }
 0x41a   :  { %v6768_v15 = vpop.permute.xlu1 %3469  ;;  %v6770_v3 = vpop.permute.xlu0 %3204 }
 0x41b   :  { %9651 = vst [vmem:[#allocation67_spill] sm:$0xff] %v6768_v15  ;;  %9652 = vst [vmem:[#allocation68_spill] sm:$0xff] %v6770_v3  ;;  %v5854_v3 = vld [vmem:[#allocation2 + $0x22] ss:$48 sps:$4 sm:$0xff]  }
 0x41c   :  { %2104 = vrot.lane.b32.xlu1 %v6773_v47, %s5877_s1  ;;  %630 = vrot.lane.b32.xlu0 %v597_v25, %s5882_s7  ;;  %v598_v25 = vcombine.high %v6548_v36, %v9653_v32  ;;  %v2019_v36 = vcombine.low %v6682_v19, %v6662_v16  ;;  %v1329_v16 = vcombine.high %v6630_v38, %v9653_v32 }
 0x41d   :  { %v1951_v38 = vcombine.low %v6652_v59, %v6639_v48 }
 0x41e   :  { %v6792_v49 = vpop.permute.xlu1 %3208  ;;  %v6794_v39 = vpop.permute.xlu0 %3212  ;;  %v6836_v57 = vrot.slane %v2019_v36, %v6027_v11 }
 0x41f   :  { %9658 = vst [vmem:[#allocation71_spill] sm:$0xff] %v6792_v49  ;;  %9659 = vst [vmem:[#allocation72_spill] sm:$0xff] %v6794_v39  ;;  %v5860_v49 = vld [vmem:[#allocation2 + $0x1a] ss:$48 sps:$4 sm:$0xff]  }
 0x420   :  { %1360 = vrot.lane.b32.xlu1 %v1327_v30, %s5882_s7  ;;  %602 = vrot.lane.b32.xlu0 %v529_v33, %s5882_s7  ;;  %v1328_v30 = vcombine.high %v6575_v42, %v9653_v32  ;;  %v530_v33 = vcombine.high %v6525_v4, %v9653_v32  ;;  %v1260_v42 = vcombine.high %v6551_v46, %v9653_v32 }
 0x421   :  { %9667 = vst [vmem:[#allocation80_spill] sm:$0xff] %v6836_v57  ;;  %v2051_v2 = vcombine.high %v6836_v57, %v9653_v32  ;;  %v5832_v57 = vld [vmem:[#allocation2 + $0x20] ss:$48 sps:$4 sm:$0xff]  }
 0x422   :  { %v6805_v45 = vpop.permute.xlu1 %3216  ;;  %v6807_v58 = vpop.permute.xlu0 %3455 }
 0x423   :  { %9661 = vst [vmem:[#allocation74_spill] sm:$0xff] %v6805_v45  ;;  %9662 = vst [vmem:[#allocation75_spill] sm:$0xff] %v6807_v58  ;;  %v7109_v45 = vrot.slane %v5860_v49, %v6020_v62 }
 0x424   :  { %638 = vrot.lane.b32.xlu1 %v598_v25, %s5880_s30  ;;  %1332 = vrot.lane.b32.xlu0 %v1259_v56, %s5882_s7 }
 0x426   :  { %v6815_v21 = vpop.permute.xlu1 %3459  ;;  %v6817_v1 = vpop.permute.xlu0 %3463 }
 0x427   :  { %9663 = vst [vmem:[#allocation76_spill] sm:$0xff] %v6815_v21  ;;  %9664 = vst [vmem:[#allocation77_spill] sm:$0xff] %v6817_v1 }
 0x428   :  { %1368 = vrot.lane.b32.xlu1 %v1328_v30, %s5880_s30  ;;  %610 = vrot.lane.b32.xlu0 %v530_v33, %s5880_s30  ;;  %v531_v33 = vcombine.high %v6581_v31, %v9653_v32 }
 0x42a   :  { %v6827_v25 = vpop.permute.xlu1 %3467  ;;  %v6829_v56 = vpop.permute.xlu0 %3927 }
 0x42b   :  { %9665 = vst [vmem:[#allocation78_spill] sm:$0xff] %v6827_v25  ;;  %9666 = vst [vmem:[#allocation79_spill] sm:$0xff] %v6829_v56 }
 0x42c   :  { %646 = vrot.lane.b32.xlu1 %v599_v13, %s5879_s29  ;;  %1340 = vrot.lane.b32.xlu0 %v1260_v42, %s5880_s30  ;;  %v600_v13 = vcombine.high %v6672_v12, %v9653_v32  ;;  %v1261_v12 = vcombine.high %v6602_v5, %v9653_v32 }
 0x42e   :  { %v6840_v19 = vpop.permute.xlu1 %3931  ;;  %v6842_v4 = vpop.permute.xlu0 %3935 }
 0x42f   :  { %9668 = vst [vmem:[#allocation81_spill] sm:$0xff] %v6840_v19  ;;  %9669 = vst [vmem:[#allocation82_spill] sm:$0xff] %v6842_v4  ;;  %v5848_v4 = vld [vmem:[#allocation2 + $0x4] ss:$48 sps:$4 sm:$0xff]  }
 0x430   :  { %1376 = vrot.lane.b32.xlu1 %v1329_v16, %s5879_s29  ;;  %2084 = vrot.lane.b32.xlu0 %v2051_v2, %s5882_s7  ;;  %v1330_v16 = vcombine.high %v6707_v52, %v9653_v32  ;;  %v6871_v2 = vrot.slane %v1951_v38, %v6027_v11  ;;  %v2052_v52 = vcombine.high %v6727_v50, %v9653_v32 }
 0x431   :  { %v1262_v50 = vcombine.high %v6659_v37, %v9653_v32  ;;  %v1984_v37 = vcombine.high %v6710_v51, %v9653_v32  ;;  %v2992_v1 = vrot.slane %v5848_v4, %v6020_v62 }
 0x432   :  { %v6850_v46 = vpop.permute.xlu1 %3939  ;;  %v6852_v30 = vpop.permute.xlu0 %4178  ;;  %9674 = vst [vmem:[#allocation87_spill] sm:$0xff] %v6871_v2  ;;  %v1983_v5 = vcombine.high %v6871_v2, %v9653_v32  ;;  %v532_v2 = vcombine.high %v6636_v10, %v9653_v32  ;;  %v2053_v10 = vcombine.high %v6749_v23, %v9653_v32 }
 0x433   :  { %9670 = vst [vmem:[#allocation83_spill] sm:$0xff] %v6850_v46  ;;  %9671 = vst [vmem:[#allocation84_spill] sm:$0xff] %v6852_v30  ;;  %v5846_v46 = vld [vmem:[#allocation2 + $0xd] ss:$48 sps:$4 sm:$0xff]  }
 0x434   :  { %654 = vrot.lane.b32.xlu1 %v600_v13, %s5878_s28  ;;  %618 = vrot.lane.b32.xlu0 %v531_v33, %s5879_s29 }
 0x436   :  { %v6862_v36 = vpop.permute.xlu1 %4182  ;;  %v6864_v42 = vpop.permute.xlu0 %4186 }
 0x437   :  { %9672 = vst [vmem:[#allocation85_spill] sm:$0xff] %v6862_v36  ;;  %9673 = vst [vmem:[#allocation86_spill] sm:$0xff] %v6864_v42  ;;  %v4268_v31 = vcombine.low %v6852_v30, %v6864_v42 }
 0x438   :  { %1384 = vrot.lane.b32.xlu1 %v1330_v16, %s5878_s28  ;;  %1348 = vrot.lane.b32.xlu0 %v1261_v12, %s5879_s29 }
 0x439   :  { %v6890_v33 = vrot.slane %v4268_v31, %v6020_v62  ;;  %v5830_v31 = vld [vmem:[#allocation2 + $0x8] ss:$48 sps:$4 sm:$0xff]  }
 0x43a   :  { %v6877_v48 = vpop.permute.xlu1 %4190  ;;  %v6879_v59 = vpop.permute.xlu0 %4648 }
 0x43b   :  { %9675 = vst [vmem:[#allocation88_spill] sm:$0xff] %v6877_v48  ;;  %9676 = vst [vmem:[#allocation89_spill] sm:$0xff] %v6879_v59  ;;  %v4284_v13 = vcombine.low %v6862_v36, %v6877_v48  ;;  %v5838_v36 = vld [vmem:[#allocation2] ss:$48 sps:$4 sm:$0xff]  }
 0x43c   :  { %2092 = vrot.lane.b32.xlu1 %v2052_v52, %s5880_s30  ;;  %2056 = vrot.lane.b32.xlu0 %v1983_v5, %s5882_s7  ;;  %9677 = vst [vmem:[#allocation90_spill] sm:$0xff] %v6890_v33  ;;  %v6918_v52 = vrot.slane %v5832_v57, %v6020_v62  ;;  %v2054_v57 = vcombine.high %v6773_v47, %v9653_v32  ;;  %v5842_v33 = vld [vmem:[#allocation2 + $0xc] ss:$48 sps:$4 sm:$0xff]  }
 0x43d   :  { %v6893_v38 = vrot.slane %v4284_v13, %v6020_v62  ;;  %v5840_v13 = vld [vmem:[#allocation2 + $0x18] ss:$48 sps:$4 sm:$0xff]   ;;  %v3714_v47 = vcombine.low %v6416_v44, %v6434_v9  ;;  %v6954_v48 = vrot.slane %v5838_v36, %v6020_v62 }
 0x43e   :  { %v6895_v16 = vpop.permute.xlu1 %4652  ;;  %v6897_v12 = vpop.permute.xlu0 %4656 }
 0x43f   :  { %9678 = vst [vmem:[#allocation91_spill] sm:$0xff] %v6893_v38  ;;  %9679 = vst [vmem:[#allocation92_spill] sm:$0xff] %v6895_v16  ;;  %v4738_v5 = vcombine.low %v6879_v59, %v6897_v12  ;;  %v6925_v59 = vrot.slane %v5830_v31, %v6020_v62  ;;  %v1985_v31 = vcombine.high %v6730_v60, %v9653_v32  ;;  %v5849_v38 = vld [vmem:[#allocation2 + $0x1c] ss:$48 sps:$4 sm:$0xff]  }
 0x440   :  { %9680 = vst [vmem:[#allocation93_spill] sm:$0xff] %v6897_v12  ;;  %1356 = vrot.lane.b32.xlu1 %v1262_v50, %s5878_s28  ;;  %626 = vrot.lane.b32.xlu0 %v532_v2, %s5878_s28  ;;  %v5836_v50 = vld [vmem:[#allocation2 + $0x21] ss:$48 sps:$4 sm:$0xff]   ;;  %v5834_v12 = vld [vmem:[#allocation2 + $0x9] ss:$48 sps:$4 sm:$0xff]  }
 0x441   :  { %v6928_v23 = vrot.slane %v4738_v5, %v6020_v62  ;;  %v3078_v5 = vcombine.high %v6925_v59, %v6918_v52  ;;  %v6959_v60 = vrot.slane %v5834_v12, %v6020_v62 }
 0x442   :  { %v6909_v30 = vpop.permute.xlu1 %4660  ;;  %v6911_v42 = vpop.permute.xlu0 %3925 }
 0x443   :  { %9681 = vst [vmem:[#allocation94_spill] sm:$0xff] %v6909_v30  ;;  %9682 = vst [vmem:[#allocation95_spill] sm:$0xff] %v6911_v42  ;;  %v4754_v2 = vcombine.low %v6895_v16, %v6909_v30  ;;  %v6936_v16 = vrot.slane %v5840_v13, %v6020_v62  ;;  %v1986_v13 = vcombine.high %v6752_v34, %v9653_v32 }
 0x444   :  { %2100 = vrot.lane.b32.xlu1 %v2053_v10, %s5879_s29  ;;  %2064 = vrot.lane.b32.xlu0 %v1984_v37, %s5880_s30  ;;  %9683 = vst [vmem:[#allocation96_spill] sm:$0xff] %v6928_v23  ;;  %v6947_v37 = vrot.slane %v5836_v50, %v6020_v62  ;;  %v3698_v50 = vcombine.low %v6401_v43, %v6414_v0 }
 0x445   :  { %v6931_v51 = vrot.slane %v4754_v2, %v6020_v62  ;;  %v5843_v2 = vld [vmem:[#allocation2 + $0x24] ss:$48 sps:$4 sm:$0xff]   ;;  %v3010_v36 = vcombine.high %v6954_v48, %v6936_v16  ;;  %v6974_v12 = vrot.slane %v3078_v5, %v6027_v11  ;;  %v3060_v5 = vrot.slane %v5842_v33, %v6020_v62 }
 0x446   :  { %v6938_v30 = vpop.permute.xlu1 %3929  ;;  %v6940_v10 = vpop.permute.xlu0 %3933  ;;  %v3799_v23 = vcombine.high %v6959_v60, %v6947_v37  ;;  %v6989_v19 = vrot.slane %v3698_v50, %v6020_v62 }
 0x447   :  { %9684 = vst [vmem:[#allocation97_spill] sm:$0xff] %v6931_v51  ;;  %9685 = vst [vmem:[#allocation98_spill] sm:$0xff] %v6938_v30  ;;  %v3949_v56 = vcombine.low %v6911_v42, %v6940_v10  ;;  %v3076_v51 = vrot.slane %v5843_v2, %v6020_v62  ;;  %v6980_v42 = vrot.slane %v3714_v47, %v6020_v62 }
 0x448   :  { %9686 = vst [vmem:[#allocation99_spill] sm:$0xff] %v6940_v10  ;;  %2108 = vrot.lane.b32.xlu1 %v2054_v57, %s5878_s28  ;;  %2072 = vrot.lane.b32.xlu0 %v1985_v31, %s5879_s29  ;;  %v5847_v10 = vld [vmem:[#allocation2 + $0x25] ss:$48 sps:$4 sm:$0xff]   ;;  %v3008_v2 = vrot.slane %v5849_v38, %v6020_v62  ;;  %v7008_v50 = vrot.slane %v3799_v23, %v6027_v11 }
 0x449   :  { %v6993_v47 = vrot.slane %v3949_v56, %v6020_v62  ;;  %v3093_v38 = vcombine.low %v3060_v5, %v3076_v51  ;;  %v3731_v56 = vcombine.high %v6989_v19, %v6980_v42 }
 0x44a   :  { %v6969_v57 = vpop.permute.xlu1 %3937  ;;  %v6971_v31 = vpop.permute.xlu0 %4176 }
 0x44b   :  { %9687 = vst [vmem:[#allocation100_spill] sm:$0xff] %v6969_v57  ;;  %9688 = vst [vmem:[#allocation101_spill] sm:$0xff] %v6971_v31  ;;  %v3965_v34 = vcombine.low %v6938_v30, %v6969_v57  ;;  %v6999_v30 = vrot.slane %v3010_v36, %v6027_v11  ;;  %v7030_v4 = vrot.slane %v3093_v38, %v6027_v11 }
 0x44c   :  { %3146 = vrot.lane.b32.xlu1 %v6974_v12, %s5883_s8  ;;  %2080 = vrot.lane.b32.xlu0 %v1986_v13, %s5878_s28  ;;  %9689 = vst [vmem:[#allocation102_spill] sm:$0xff] %v6993_v47  ;;  %v3715_v13 = vcombine.high %v6416_v44, %v6434_v9  ;;  %v3781_v44 = vrot.slane %v5846_v46, %v6020_v62 }
 0x44d   :  { %v6996_v58 = vrot.slane %v3965_v34, %v6020_v62  ;;  %v3797_v34 = vrot.slane %v5847_v10, %v6020_v62  ;;  %v3699_v9 = vcombine.high %v6401_v43, %v6414_v0  ;;  %v3025_v10 = vcombine.low %v2992_v1, %v3008_v2 }
 0x44e   :  { %v7003_v57 = vpop.permute.xlu1 %4180  ;;  %v7005_v33 = vpop.permute.xlu0 %4184  ;;  %v7033_v47 = vrot.slane %v3731_v56, %v6027_v11  ;;  %v3729_v46 = vrot.slane %v3715_v13, %v6020_v62 }
 0x44f   :  { %9690 = vst [vmem:[#allocation103_spill] sm:$0xff] %v6996_v58  ;;  %9691 = vst [vmem:[#allocation104_spill] sm:$0xff] %v7003_v57  ;;  %v4200_v23 = vcombine.low %v6971_v31, %v7005_v33  ;;  %v3814_v58 = vcombine.low %v3781_v44, %v3797_v34  ;;  %v3713_v43 = vrot.slane %v3699_v9, %v6020_v62 }
 0x450   :  { %9692 = vst [vmem:[#allocation105_spill] sm:$0xff] %v7005_v33  ;;  %3867 = vrot.lane.b32.xlu1 %v7008_v50, %s5883_s8  ;;  %3118 = vrot.lane.b32.xlu0 %v6999_v30, %s5883_s8  ;;  %v3815_v9 = vcombine.high %v3781_v44, %v3797_v34 }
 0x451   :  { %v7044_v38 = vrot.slane %v4200_v23, %v6020_v62  ;;  %v7054_v33 = vrot.slane %v3814_v58, %v6027_v11  ;;  %v3746_v25 = vcombine.low %v3713_v43, %v3729_v46  ;;  %v5852_v23 = vld [vmem:[#allocation2 + $0xa] ss:$48 sps:$4 sm:$0xff]   ;;  %v3747_v44 = vcombine.high %v3713_v43, %v3729_v46 }
 0x452   :  { %v7025_v21 = vpop.permute.xlu1 %4188  ;;  %v7027_v36 = vpop.permute.xlu0 %4646 }
 0x453   :  { %9693 = vst [vmem:[#allocation106_spill] sm:$0xff] %v7025_v21  ;;  %9694 = vst [vmem:[#allocation107_spill] sm:$0xff] %v7027_v36  ;;  %v4216_v0 = vcombine.low %v7003_v57, %v7025_v21  ;;  %v7057_v57 = vrot.slane %v3025_v10, %v6027_v11  ;;  %v3094_v21 = vcombine.high %v3060_v5, %v3076_v51 }
 0x454   :  { %3154 = vrot.lane.b32.xlu1 %v7030_v4, %s5881_s6  ;;  %3839 = vrot.lane.b32.xlu0 %v7033_v47, %s5883_s8  ;;  %9695 = vst [vmem:[#allocation108_spill] sm:$0xff] %v7044_v38  ;;  %v7075_v5 = vrot.slane %v3746_v25, %v6027_v11  ;;  %v7078_v38 = vrot.slane %v5854_v3, %v6020_v62  ;;  %v5858_v25 = vld [vmem:[#allocation2 + $0x2] ss:$48 sps:$4 sm:$0xff]  }
 0x455   :  { %v7047_v56 = vrot.slane %v4216_v0, %v6020_v62  ;;  %v3026_v0 = vcombine.high %v2992_v1, %v3008_v2  ;;  %v7072_v51 = vrot.slane %v3094_v21, %v6027_v11  ;;  %v7087_v1 = vrot.slane %v5852_v23, %v6020_v62  ;;  %v5856_v21 = vld [vmem:[#allocation2 + $0xe] ss:$48 sps:$4 sm:$0xff]  }
 0x456   :  { %v7049_v31 = vpop.permute.xlu1 %4650  ;;  %v7051_v13 = vpop.permute.xlu0 %4654  ;;  %v4502_v46 = vrot.slane %v5856_v21, %v6020_v62  ;;  %v7119_v43 = vrot.slane %v5858_v25, %v6020_v62 }
 0x457   :  { %9696 = vst [vmem:[#allocation109_spill] sm:$0xff] %v7047_v56  ;;  %9697 = vst [vmem:[#allocation110_spill] sm:$0xff] %v7049_v31  ;;  %v4670_v58 = vcombine.low %v7027_v36, %v7051_v13  ;;  %v5857_v56 = vld [vmem:[#allocation2 + $0x26] ss:$48 sps:$4 sm:$0xff]   ;;  %v7096_v34 = vrot.slane %v3026_v0, %v6027_v11  ;;  %v4520_v23 = vcombine.high %v7087_v1, %v7078_v38 }
 0x458   :  { %9698 = vst [vmem:[#allocation111_spill] sm:$0xff] %v7051_v13  ;;  %3875 = vrot.lane.b32.xlu1 %v7054_v33, %s5881_s6  ;;  %3126 = vrot.lane.b32.xlu0 %v7057_v57, %s5881_s6  ;;  %v4452_v21 = vcombine.high %v7119_v43, %v7109_v45 }
 0x459   :  { %v7090_v2 = vrot.slane %v4670_v58, %v6020_v62  ;;  %v4518_v58 = vrot.slane %v5857_v56, %v6020_v62  ;;  %v7124_v56 = vrot.slane %v3747_v44, %v6027_v11 }
 0x45a   :  { %v7067_v39 = vpop.permute.xlu1 %4658  ;;  %v7069_v10 = vpop.permute.xlu0 %4899 }
 0x45b   :  { %9699 = vst [vmem:[#allocation112_spill] sm:$0xff] %v7067_v39  ;;  %9700 = vst [vmem:[#allocation113_spill] sm:$0xff] %v7069_v10  ;;  %v4686_v36 = vcombine.low %v7049_v31, %v7067_v39  ;;  %v7103_v39 = vrot.slane %v3815_v9, %v6027_v11  ;;  %v5862_v9 = vld [vmem:[#allocation2 + $0x6] ss:$48 sps:$4 sm:$0xff]  }
 0x45c   :  { %3162 = vrot.lane.b32.xlu1 %v7072_v51, %s5877_s1  ;;  %3847 = vrot.lane.b32.xlu0 %v7075_v5, %s5881_s6  ;;  %9701 = vst [vmem:[#allocation114_spill] sm:$0xff] %v7090_v2  ;;  %v7131_v2 = vrot.slane %v4520_v23, %v6027_v11  ;;  %v4434_v44 = vrot.slane %v5862_v9, %v6020_v62 }
 0x45d   :  { %v7093_v3 = vrot.slane %v4686_v36, %v6020_v62  ;;  %v5863_v36 = vld [vmem:[#allocation2 + $0x1e] ss:$48 sps:$4 sm:$0xff]   ;;  %v3077_v9 = vcombine.low %v6925_v59, %v6918_v52 }
 0x45e   :  { %v7098_v13 = vpop.permute.xlu1 %4903  ;;  %v7100_v31 = vpop.permute.xlu0 %4907  ;;  %v4450_v25 = vrot.slane %v5863_v36, %v6020_v62 }
 0x45f   :  { %9702 = vst [vmem:[#allocation115_spill] sm:$0xff] %v7093_v3  ;;  %9703 = vst [vmem:[#allocation116_spill] sm:$0xff] %v7098_v13  ;;  %v4989_v49 = vcombine.low %v7069_v10, %v7100_v31  ;;  %v4535_v3 = vcombine.low %v4502_v46, %v4518_v58 }
 0x460   :  { %9704 = vst [vmem:[#allocation117_spill] sm:$0xff] %v7100_v31  ;;  %3883 = vrot.lane.b32.xlu1 %v7103_v39, %s5877_s1  ;;  %3134 = vrot.lane.b32.xlu0 %v7096_v34, %s5877_s1  ;;  %v4536_v31 = vcombine.high %v4502_v46, %v4518_v58  ;;  %v4467_v6 = vcombine.low %v4434_v44, %v4450_v25 }
 0x461   :  { %v7144_v23 = vrot.slane %v4989_v49, %v6020_v62  ;;  %v3009_v58 = vcombine.low %v6954_v48, %v6936_v16  ;;  %v4468_v49 = vcombine.high %v4434_v44, %v4450_v25 }
 0x462   :  { %v7126_v35 = vpop.permute.xlu1 %4911  ;;  %v7128_v0 = vpop.permute.xlu0 %4897  ;;  %v7178_v52 = vrot.slane %v4536_v31, %v6027_v11 }
 0x463   :  { %9705 = vst [vmem:[#allocation118_spill] sm:$0xff] %v7126_v35  ;;  %9706 = vst [vmem:[#allocation119_spill] sm:$0xff] %v7128_v0  ;;  %v5005_v8 = vcombine.low %v7098_v13, %v7126_v35  ;;  %v7154_v13 = vrot.slane %v4535_v3, %v6027_v11  ;;  %v7157_v35 = vrot.slane %v4452_v21, %v6027_v11 }
 0x464   :  { %4588 = vrot.lane.b32.xlu1 %v7131_v2, %s5883_s8  ;;  %3855 = vrot.lane.b32.xlu0 %v7124_v56, %s5877_s1  ;;  %9707 = vst [vmem:[#allocation120_spill] sm:$0xff] %v7144_v23  ;;  %v3798_v3 = vcombine.low %v6959_v60, %v6947_v37  ;;  %v7181_v21 = vrot.slane %v4467_v6, %v6027_v11 }
 0x465   :  { %v7147_v10 = vrot.slane %v5005_v8, %v6020_v62  ;;  %v7184_v23 = vrot.slane %v3077_v9, %v6027_v11  ;;  %v3730_v6 = vcombine.low %v6989_v19, %v6980_v42  ;;  %v7205_v25 = vrot.slane %v4468_v49, %v6027_v11 }
 0x466   :  { %v7149_v40 = vpop.permute.xlu1 %4901  ;;  %v7151_v36 = vpop.permute.xlu0 %4905  ;;  %v7210_v9 = vrot.slane %v3798_v3, %v6027_v11 }
 0x467   :  { %9708 = vst [vmem:[#allocation121_spill] sm:$0xff] %v7147_v10  ;;  %9709 = vst [vmem:[#allocation122_spill] sm:$0xff] %v7149_v40  ;;  %v4921_v8 = vcombine.low %v7128_v0, %v7151_v36  ;;  %v3109_v44 = vcombine.high %v7184_v23, %v9653_v32  ;;  %v9770_v10 = vld [vmem:[#allocation21_spill] sm:$0xff] }
 0x468   :  { %9710 = vst [vmem:[#allocation123_spill] sm:$0xff] %v7151_v36  ;;  %4596 = vrot.lane.b32.xlu1 %v7154_v13, %s5881_s6  ;;  %4560 = vrot.lane.b32.xlu0 %v7157_v35, %s5883_s8  ;;  %9713 = vst [vmem:[#allocation126_spill] sm:$0xff] %v7184_v23  ;;  %v3830_v49 = vcombine.high %v7210_v9, %v9653_v32  ;;  %v3110_v23 = vcombine.high %v6974_v12, %v9653_v32  ;;  %v9778_v36 = vld [vmem:[#allocation17_spill] sm:$0xff] }
 0x469   :  { %v7193_v48 = vrot.slane %v4921_v8, %v6020_v62  ;;  %9718 = vst [vmem:[#allocation131_spill] sm:$0xff] %v7210_v9  ;;  %v7213_v8 = vrot.slane %v3009_v58, %v6027_v11  ;;  %v7229_v58 = vrot.slane %v3730_v6, %v6027_v11  ;;  %v4519_v12 = vcombine.low %v7087_v1, %v7078_v38 }
 0x46a   :  { %v7173_v46 = vpop.permute.xlu1 %4909  ;;  %v7175_v59 = vpop.permute.xlu0 %606  ;;  %v3832_v1 = vcombine.high %v7054_v33, %v9653_v32  ;;  %v4451_v33 = vcombine.low %v7119_v43, %v7109_v45  ;;  %v4552_v43 = vcombine.high %v7131_v2, %v9653_v32  ;;  %v808_v2 = vcombine.high %v6301_v17, %v6309_v22 }
 0x46b   :  { %9711 = vst [vmem:[#allocation124_spill] sm:$0xff] %v7173_v46  ;;  %9712 = vst [vmem:[#allocation125_spill] sm:$0xff] %v7175_v59  ;;  %v4937_v37 = vcombine.low %v7149_v40, %v7173_v46  ;;  %v3041_v3 = vcombine.high %v7213_v8, %v9653_v32  ;;  %v3762_v9 = vcombine.high %v7229_v58, %v9653_v32  ;;  %v9767_v59 = vld [vmem:[#allocation24_spill] sm:$0xff]  ;;  %v9793_v46 = vld [vmem:[#allocation41_spill] sm:$0xff] }
 0x46c   :  { %4604 = vrot.lane.b32.xlu1 %v7178_v52, %s5877_s1  ;;  %4568 = vrot.lane.b32.xlu0 %v7181_v21, %s5881_s6  ;;  %9714 = vst [vmem:[#allocation127_spill] sm:$0xff] %v7193_v48  ;;  %9719 = vst [vmem:[#allocation132_spill] sm:$0xff] %v7213_v8  ;;  %v4485_v17 = vcombine.high %v7181_v21, %v9653_v32  ;;  %v822_v22 = vrot.slane %v808_v2, %v6020_v62 }
 0x46d   :  { %v7196_v16 = vrot.slane %v4937_v37, %v6020_v62  ;;  %9722 = vst [vmem:[#allocation135_spill] sm:$0xff] %v7229_v58  ;;  %v3111_v58 = vcombine.high %v7030_v4, %v9653_v32  ;;  %v1044_v21 = vcombine.high %v6311_v24, %v6325_v29  ;;  %v4486_v29 = vcombine.high %v7205_v25, %v9653_v32 }
 0x46e   :  { %v7200_v60 = vpop.permute.xlu1 %634  ;;  %v7202_v31 = vpop.permute.xlu0 %1336 }
 0x46f   :  { %9715 = vst [vmem:[#allocation128_spill] sm:$0xff] %v7196_v16  ;;  %9716 = vst [vmem:[#allocation129_spill] sm:$0xff] %v7200_v60  ;;  %v1058_v24 = vrot.slane %v1044_v21, %v6020_v62  ;;  %v9776_v16 = vld [vmem:[#allocation26_spill] sm:$0xff]  ;;  %v9798_v60 = vld [vmem:[#allocation32_spill] sm:$0xff] }
 0x470   :  { %9717 = vst [vmem:[#allocation130_spill] sm:$0xff] %v7202_v31  ;;  %4576 = vrot.lane.b32.xlu1 %v7205_v25, %s5877_s1  ;;  %3142 = vrot.lane.b32.xlu0 %v3109_v44, %s5882_s7 }
 0x472   :  { %v7220_v19 = vpop.permute.xlu1 %1364  ;;  %v7222_v42 = vpop.permute.xlu0 %614 }
 0x473   :  { %9720 = vst [vmem:[#allocation133_spill] sm:$0xff] %v7220_v19  ;;  %9721 = vst [vmem:[#allocation134_spill] sm:$0xff] %v7222_v42 }
 0x474   :  { %3863 = vrot.lane.b32.xlu1 %v3830_v49, %s5882_s7  ;;  %3114 = vrot.lane.b32.xlu0 %v3041_v3, %s5882_s7  ;;  %v3831_v49 = vcombine.high %v7008_v50, %v9653_v32  ;;  %v3042_v3 = vcombine.high %v6999_v30, %v9653_v32  ;;  %v3763_v50 = vcombine.high %v7033_v47, %v9653_v32 }
 0x476   :  { %v7233_v37 = vpop.permute.xlu1 %642  ;;  %v7235_v44 = vpop.permute.xlu0 %1344 }
 0x477   :  { %9723 = vst [vmem:[#allocation136_spill] sm:$0xff] %v7233_v37  ;;  %9724 = vst [vmem:[#allocation137_spill] sm:$0xff] %v7235_v44  ;;  %v9758_v44 = vld [vmem:[#allocation15_spill] sm:$0xff] }
 0x478   :  { %3150 = vrot.lane.b32.xlu1 %v3110_v23, %s5880_s30  ;;  %3835 = vrot.lane.b32.xlu0 %v3762_v9, %s5882_s7 }
 0x47a   :  { %v7243_v6 = vpop.permute.xlu1 %1372  ;;  %v7245_v8 = vpop.permute.xlu0 %622 }
 0x47b   :  { %9725 = vst [vmem:[#allocation138_spill] sm:$0xff] %v7243_v6  ;;  %9726 = vst [vmem:[#allocation139_spill] sm:$0xff] %v7245_v8  ;;  %v7264_v8 = vrot.slane %v4519_v12, %v6027_v11 }
 0x47c   :  { %3871 = vrot.lane.b32.xlu1 %v3831_v49, %s5880_s30  ;;  %3122 = vrot.lane.b32.xlu0 %v3042_v3, %s5880_s30  ;;  %v3043_v3 = vcombine.high %v7057_v57, %v9653_v32 }
 0x47d   :  { %9729 = vst [vmem:[#allocation142_spill] sm:$0xff] %v7264_v8  ;;  %v4551_v4 = vcombine.high %v7264_v8, %v9653_v32  ;;  %v9749_v8 = vld [vmem:[#allocation10_spill] sm:$0xff] }
 0x47e   :  { %v7255_v23 = vpop.permute.xlu1 %650  ;;  %v7257_v9 = vpop.permute.xlu0 %1352 }
 0x47f   :  { %9727 = vst [vmem:[#allocation140_spill] sm:$0xff] %v7255_v23  ;;  %9728 = vst [vmem:[#allocation141_spill] sm:$0xff] %v7257_v9  ;;  %v9757_v9 = vld [vmem:[#allocation16_spill] sm:$0xff] }
 0x480   :  { %3158 = vrot.lane.b32.xlu1 %v3111_v58, %s5879_s29  ;;  %3843 = vrot.lane.b32.xlu0 %v3763_v50, %s5880_s30  ;;  %v3112_v58 = vcombine.high %v7072_v51, %v9653_v32  ;;  %v3764_v51 = vcombine.high %v7075_v5, %v9653_v32 }
 0x482   :  { %v7268_v30 = vpop.permute.xlu1 %1380  ;;  %v7270_v38 = vpop.permute.xlu0 %2060 }
 0x483   :  { %9730 = vst [vmem:[#allocation143_spill] sm:$0xff] %v7268_v30  ;;  %9731 = vst [vmem:[#allocation144_spill] sm:$0xff] %v7270_v38  ;;  %v9753_v38 = vld [vmem:[#allocation6_spill] sm:$0xff] }
 0x484   :  { %3879 = vrot.lane.b32.xlu1 %v3832_v1, %s5879_s29  ;;  %4584 = vrot.lane.b32.xlu0 %v4551_v4, %s5882_s7  ;;  %v3833_v1 = vcombine.high %v7103_v39, %v9653_v32  ;;  %v7299_v4 = vrot.slane %v4451_v33, %v6027_v11  ;;  %v3044_v33 = vcombine.high %v7096_v34, %v9653_v32 }
 0x485   :  { %v4484_v34 = vcombine.high %v7157_v35, %v9653_v32 }
 0x486   :  { %v7278_v47 = vpop.permute.xlu1 %2088  ;;  %v7280_v49 = vpop.permute.xlu0 %2068  ;;  %9736 = vst [vmem:[#allocation149_spill] sm:$0xff] %v7299_v4  ;;  %v4483_v39 = vcombine.high %v7299_v4, %v9653_v32 }
 0x487   :  { %9732 = vst [vmem:[#allocation145_spill] sm:$0xff] %v7278_v47  ;;  %9733 = vst [vmem:[#allocation146_spill] sm:$0xff] %v7280_v49 }
 0x488   :  { %3166 = vrot.lane.b32.xlu1 %v3112_v58, %s5878_s28  ;;  %3130 = vrot.lane.b32.xlu0 %v3043_v3, %s5879_s29  ;;  %v3765_v3 = vcombine.high %v7124_v56, %v9653_v32  ;;  %v4553_v56 = vcombine.high %v7154_v13, %v9653_v32  ;;  %v1076_v13 = vcombine.high %v6342_v53, %v6345_v54 }
 0x48a   :  { %v7290_v12 = vpop.permute.xlu1 %2096  ;;  %v7292_v50 = vpop.permute.xlu0 %2076 }
 0x48b   :  { %9734 = vst [vmem:[#allocation147_spill] sm:$0xff] %v7290_v12  ;;  %9735 = vst [vmem:[#allocation148_spill] sm:$0xff] %v7292_v50 }
 0x48c   :  { %3887 = vrot.lane.b32.xlu1 %v3833_v1, %s5878_s28  ;;  %3851 = vrot.lane.b32.xlu0 %v3764_v51, %s5879_s29  ;;  %v824_v1 = vcombine.high %v6318_v26, %v6321_v27 }
 0x48e   :  { %v7303_v45 = vpop.permute.xlu1 %2104  ;;  %v7305_v57 = vpop.permute.xlu0 %630 }
 0x48f   :  { %9737 = vst [vmem:[#allocation150_spill] sm:$0xff] %v7303_v45  ;;  %9738 = vst [vmem:[#allocation151_spill] sm:$0xff] %v7305_v57  ;;  %v9754_v45 = vld [vmem:[#allocation4_spill] sm:$0xff] }
 0x490   :  { %4592 = vrot.lane.b32.xlu1 %v4552_v43, %s5880_s30  ;;  %4556 = vrot.lane.b32.xlu0 %v4483_v39, %s5882_s7  ;;  %v792_v39 = vcombine.high %v6297_v14, %v6303_v18  ;;  %v7351_v14 = vrot.slane %v824_v1, %v6027_v11  ;;  %v7365_v1 = vrot.slane %v1076_v13, %v6027_v11  ;;  %v9750_v13 = vld [vmem:[#allocation9_spill] sm:$0xff]  ;;  %v9802_v57 = vld [vmem:[#allocation48_spill] sm:$0xff] }
 0x491   :  { %v756_v50 = vcombine.high %v9750_v13, %v9749_v8 }
 0x492   :  { %v7313_v5 = vpop.permute.xlu1 %1360  ;;  %v7315_v58 = vpop.permute.xlu0 %602  ;;  %v806_v18 = vrot.slane %v792_v39, %v6020_v62 }
 0x493   :  { %9739 = vst [vmem:[#allocation152_spill] sm:$0xff] %v7313_v5  ;;  %9740 = vst [vmem:[#allocation153_spill] sm:$0xff] %v7315_v58  ;;  %v9772_v58 = vld [vmem:[#allocation27_spill] sm:$0xff] }
 0x494   :  { %3859 = vrot.lane.b32.xlu1 %v3765_v3, %s5878_s28  ;;  %3138 = vrot.lane.b32.xlu0 %v3044_v33, %s5878_s28  ;;  %v1060_v3 = vcombine.high %v6323_v28, %v6333_v61  ;;  %v839_v28 = vcombine.low %v806_v18, %v822_v22  ;;  %v840_v25 = vcombine.high %v806_v18, %v822_v22  ;;  %v9762_v22 = vld [vmem:[#allocation8_spill] sm:$0xff] }
 0x496   :  { %v7327_v51 = vpop.permute.xlu1 %638  ;;  %v7329_v43 = vpop.permute.xlu0 %1332  ;;  %v1074_v61 = vrot.slane %v1060_v3, %v6020_v62  ;;  %v9748_v3 = vld [vmem:[#allocation5_spill] sm:$0xff]  ;;  %v7384_v21 = vrot.slane %v839_v28, %v6027_v11 }
 0x497   :  { %9741 = vst [vmem:[#allocation154_spill] sm:$0xff] %v7327_v51  ;;  %9742 = vst [vmem:[#allocation155_spill] sm:$0xff] %v7329_v43 }
 0x498   :  { %4600 = vrot.lane.b32.xlu1 %v4553_v56, %s5879_s29  ;;  %4564 = vrot.lane.b32.xlu0 %v4484_v34, %s5880_s30  ;;  %v4554_v34 = vcombine.high %v7178_v52, %v9653_v32  ;;  %v1091_v39 = vcombine.low %v1058_v24, %v1074_v61 }
 0x49a   :  { %v7346_v33 = vpop.permute.xlu1 %1368  ;;  %v7348_v35 = vpop.permute.xlu0 %610 }
 0x49b   :  { %9743 = vst [vmem:[#allocation156_spill] sm:$0xff] %v7346_v33  ;;  %9744 = vst [vmem:[#allocation157_spill] sm:$0xff] %v7348_v35 }
 0x49c   :  { %892 = vrot.lane.b32.xlu1 %v7351_v14, %s5883_s8  ;;  %4572 = vrot.lane.b32.xlu0 %v4485_v17, %s5879_s29  ;;  %v9747_v17 = vld [vmem:[#allocation7_spill] sm:$0xff] }
 0x49d   :  { %v740_v4 = vcombine.high %v9748_v3, %v9747_v17  ;;  %v9755_v17 = vld [vmem:[#allocation13_spill] sm:$0xff]  ;;  %v9756_v3 = vld [vmem:[#allocation11_spill] sm:$0xff] }
 0x49e   :  { %v7360_v2 = vpop.permute.xlu1 %646  ;;  %v7362_v56 = vpop.permute.xlu0 %1340  ;;  %v992_v12 = vcombine.high %v9756_v3, %v9755_v17 }
 0x49f   :  { %9745 = vst [vmem:[#allocation158_spill] sm:$0xff] %v7360_v2  ;;  %9746 = vst [vmem:[#allocation159_spill] sm:$0xff] %v7362_v56  ;;  %v754_v47 = vrot.slane %v740_v4, %v6020_v62  ;;  %v1092_v4 = vcombine.high %v1058_v24, %v1074_v61  ;;  %v9764_v56 = vld [vmem:[#allocation23_spill] sm:$0xff]  ;;  %v9768_v61 = vld [vmem:[#allocation20_spill] sm:$0xff] }
 0x4a0   :  { %1144 = vrot.lane.b32.xlu1 %v7365_v1, %s5883_s8  ;;  %4608 = vrot.lane.b32.xlu0 %v4554_v34, %s5878_s28  ;;  %v724_v34 = vcombine.high %v9754_v45, %v9753_v38  ;;  %v7401_v38 = vrot.slane %v1091_v39, %v6027_v11  ;;  %v7404_v45 = vrot.slane %v756_v50, %v6027_v11  ;;  %v9763_v39 = vld [vmem:[#allocation25_spill] sm:$0xff] }
 0x4a1   :  { %v1006_v3 = vrot.slane %v992_v12, %v6020_v62  ;;  %v1783_v35 = vcombine.low %v9764_v56, %v9763_v39  ;;  %v1767_v24 = vcombine.low %v9768_v61, %v9767_v59 }
 0x4a2   :  { %v7379_v49 = vpop.permute.xlu1 %1376  ;;  %v7381_v52 = vpop.permute.xlu0 %2084  ;;  %v738_v17 = vrot.slane %v724_v34, %v6020_v62 }
 0x4a3   :  { %9751 = vst [vmem:[#allocation7_spill] sm:$0xff] %v7379_v49  ;;  %9752 = vst [vmem:[#allocation5_spill] sm:$0xff] %v7381_v52  ;;  %v1008_v52 = vcombine.high %v9758_v44, %v9757_v9  ;;  %v7451_v48 = vrot.slane %v1767_v24, %v6020_v62 }
 0x4a4   :  { %900 = vrot.lane.b32.xlu1 %v7384_v21, %s5881_s6  ;;  %4580 = vrot.lane.b32.xlu0 %v4486_v29, %s5878_s28  ;;  %v9761_v29 = vld [vmem:[#allocation12_spill] sm:$0xff] }
 0x4a5   :  { %v976_v18 = vcombine.high %v9762_v22, %v9761_v29  ;;  %v7421_v29 = vrot.slane %v840_v25, %v6027_v11  ;;  %v7424_v34 = vrot.slane %v1008_v52, %v6027_v11  ;;  %v9769_v25 = vld [vmem:[#allocation22_spill] sm:$0xff]  ;;  %v7439_v52 = vrot.slane %v1783_v35, %v6020_v62 }
 0x4a6   :  { %v7396_v42 = vpop.permute.xlu1 %654  ;;  %v7398_v28 = vpop.permute.xlu0 %618  ;;  %v1548_v43 = vcombine.high %v9770_v10, %v9769_v25  ;;  %v772_v35 = vcombine.high %v738_v17, %v754_v47 }
 0x4a7   :  { %9759 = vst [vmem:[#allocation10_spill] sm:$0xff] %v7396_v42  ;;  %9760 = vst [vmem:[#allocation9_spill] sm:$0xff] %v7398_v28  ;;  %v771_v28 = vcombine.low %v738_v17, %v754_v47  ;;  %v990_v22 = vrot.slane %v976_v18, %v6020_v62  ;;  %v9771_v18 = vld [vmem:[#allocation29_spill] sm:$0xff]  ;;  %v1800_v24 = vcombine.high %v7451_v48, %v7439_v52  ;;  %v9781_v47 = vld [vmem:[#allocation18_spill] sm:$0xff] }
 0x4a8   :  { %1152 = vrot.lane.b32.xlu1 %v7401_v38, %s5881_s6  ;;  %864 = vrot.lane.b32.xlu0 %v7404_v45, %s5883_s8  ;;  %v7474_v37 = vrot.slane %v1548_v43, %v6027_v11  ;;  %v9782_v17 = vld [vmem:[#allocation14_spill] sm:$0xff] }
 0x4a9   :  { %v1023_v12 = vcombine.low %v990_v22, %v1006_v3  ;;  %v7448_v23 = vrot.slane %v771_v28, %v6027_v11  ;;  %v1024_v43 = vcombine.high %v990_v22, %v1006_v3 }
 0x4aa   :  { %v7416_v50 = vpop.permute.xlu1 %1384  ;;  %v7418_v31 = vpop.permute.xlu0 %1348 }
 0x4ab   :  { %9765 = vst [vmem:[#allocation6_spill] sm:$0xff] %v7416_v50  ;;  %9766 = vst [vmem:[#allocation4_spill] sm:$0xff] %v7418_v31  ;;  %v7434_v31 = vrot.slane %v1092_v4, %v6027_v11  ;;  %v2255_v50 = vcombine.low %v9772_v58, %v9771_v18  ;;  %v9775_v4 = vld [vmem:[#allocation28_spill] sm:$0xff] }
 0x4ac   :  { %908 = vrot.lane.b32.xlu1 %v7421_v29, %s5877_s1  ;;  %1116 = vrot.lane.b32.xlu0 %v7424_v34, %s5883_s8  ;;  %v2239_v0 = vcombine.low %v9776_v16, %v9775_v4 }
 0x4ad   :  { %v7467_v49 = vrot.slane %v2255_v50, %v6020_v62 }
 0x4ae   :  { %v7443_v42 = vpop.permute.xlu1 %2092  ;;  %v7445_v30 = vpop.permute.xlu0 %2056  ;;  %v7479_v40 = vrot.slane %v2239_v0, %v6020_v62 }
 0x4af   :  { %9773 = vst [vmem:[#allocation13_spill] sm:$0xff] %v7443_v42  ;;  %9774 = vst [vmem:[#allocation11_spill] sm:$0xff] %v7445_v30  ;;  %v7460_v42 = vrot.slane %v1023_v12, %v6027_v11  ;;  %v9777_v30 = vld [vmem:[#allocation19_spill] sm:$0xff]  ;;  %v1516_v12 = vcombine.high %v9782_v17, %v9781_v47 }
 0x4b0   :  { %1160 = vrot.lane.b32.xlu1 %v7434_v31, %s5877_s1  ;;  %872 = vrot.lane.b32.xlu0 %v7448_v23, %s5881_s6  ;;  %v1532_v28 = vcombine.high %v9778_v36, %v9777_v30  ;;  %v1784_v36 = vcombine.high %v9764_v56, %v9763_v39  ;;  %v7488_v30 = vrot.slane %v772_v35, %v6027_v11  ;;  %v9785_v35 = vld [vmem:[#allocation36_spill] sm:$0xff] }
 0x4b1   :  { %v2272_v47 = vcombine.high %v7479_v40, %v7467_v49  ;;  %v1530_v56 = vrot.slane %v1516_v12, %v6020_v62  ;;  %v2256_v39 = vcombine.high %v9772_v58, %v9771_v18  ;;  %v7522_v12 = vrot.slane %v1024_v43, %v6027_v11  ;;  %v9792_v43 = vld [vmem:[#allocation42_spill] sm:$0xff] }
 0x4b2   :  { %v7469_v2 = vpop.permute.xlu1 %1356  ;;  %v7471_v6 = vpop.permute.xlu0 %626  ;;  %v1546_v50 = vrot.slane %v1532_v28, %v6020_v62  ;;  %v7508_v3 = vrot.slane %v1784_v36, %v6020_v62  ;;  %v9786_v28 = vld [vmem:[#allocation35_spill] sm:$0xff]  ;;  %v1732_v33 = vcombine.high %v9793_v46, %v9792_v43 }
 0x4b3   :  { %9779 = vst [vmem:[#allocation16_spill] sm:$0xff] %v7469_v2  ;;  %9780 = vst [vmem:[#allocation15_spill] sm:$0xff] %v7471_v6  ;;  %v7498_v6 = vrot.slane %v1800_v24, %v6027_v11  ;;  %v1768_v2 = vcombine.high %v9768_v61, %v9767_v59  ;;  %v1480_v24 = vcombine.high %v9786_v28, %v9785_v35 }
 0x4b4   :  { %1616 = vrot.lane.b32.xlu1 %v7474_v37, %s5883_s8  ;;  %1124 = vrot.lane.b32.xlu0 %v7460_v42, %s5881_s6  ;;  %v1563_v22 = vcombine.low %v1530_v56, %v1546_v50  ;;  %v7519_v61 = vrot.slane %v2272_v47, %v6027_v11  ;;  %9789 = vst [vmem:[#allocation24_spill] sm:$0xff] %v7522_v12  ;;  %v9790_v47 = vld [vmem:[#allocation33_spill] sm:$0xff] }
 0x4b5   :  { %v1782_v36 = vrot.slane %v1768_v2, %v6020_v62  ;;  %v2270_v18 = vrot.slane %v2256_v39, %v6020_v62  ;;  %v9799_v39 = vld [vmem:[#allocation30_spill] sm:$0xff] }
 0x4b6   :  { %v7493_v0 = vpop.permute.xlu1 %2100  ;;  %v7495_v17 = vpop.permute.xlu0 %2064  ;;  %v1448_v5 = vcombine.high %v9799_v39, %v9798_v60  ;;  %v7567_v39 = vrot.slane %v1732_v33, %v6027_v11  ;;  %v9809_v33 = vld [vmem:[#allocation45_spill] sm:$0xff] }
 0x4b7   :  { %9783 = vst [vmem:[#allocation12_spill] sm:$0xff] %v7493_v0  ;;  %9784 = vst [vmem:[#allocation8_spill] sm:$0xff] %v7495_v17  ;;  %v2240_v0 = vcombine.high %v9776_v16, %v9775_v4  ;;  %v1815_v58 = vcombine.low %v1782_v36, %v7508_v3  ;;  %v7542_v16 = vrot.slane %v1563_v22, %v6027_v11 }
 0x4b8   :  { %1868 = vrot.lane.b32.xlu1 %v7498_v6, %s5883_s8  ;;  %880 = vrot.lane.b32.xlu0 %v7488_v30, %s5877_s1  ;;  %v7545_v4 = vrot.slane %v1480_v24, %v6027_v11  ;;  %v9801_v24 = vld [vmem:[#allocation37_spill] sm:$0xff]  ;;  %9806 = vst [vmem:[#allocation26_spill] sm:$0xff] %v7567_v39  ;;  %v1462_v15 = vrot.slane %v1448_v5, %v6020_v62 }
 0x4b9   :  { %9796 = vst [vmem:[#allocation21_spill] sm:$0xff] %v7542_v16  ;;  %v2254_v19 = vrot.slane %v2240_v0, %v6020_v62  ;;  %v9803_v0 = vld [vmem:[#allocation47_spill] sm:$0xff] }
 0x4ba   :  { %v7514_v17 = vpop.permute.xlu1 %2108  ;;  %v7516_v59 = vpop.permute.xlu0 %2072  ;;  %9797 = vst [vmem:[#allocation29_spill] sm:$0xff] %v7545_v4  ;;  %v2204_v63 = vcombine.high %v9803_v0, %v9802_v57 }
 0x4bb   :  { %9787 = vst [vmem:[#allocation25_spill] sm:$0xff] %v7514_v17  ;;  %9788 = vst [vmem:[#allocation23_spill] sm:$0xff] %v7516_v59  ;;  %v9791_v59 = vld [vmem:[#allocation31_spill] sm:$0xff] }
 0x4bc   :  { %2340 = vrot.lane.b32.xlu1 %v7519_v61, %s5883_s8  ;;  %1132 = vrot.lane.b32.xlu0 %v7522_v12, %s5877_s1  ;;  %v1464_v17 = vcombine.high %v9791_v59, %v9790_v47  ;;  %v2287_v59 = vcombine.low %v2254_v19, %v2270_v18  ;;  %v7555_v47 = vrot.slane %v1815_v58, %v6027_v11  ;;  %v9808_v58 = vld [vmem:[#allocation34_spill] sm:$0xff] }
 0x4be   :  { %v7537_v2 = vpop.permute.xlu1 %3146  ;;  %v7539_v51 = vpop.permute.xlu0 %2080  ;;  %v1478_v22 = vrot.slane %v1464_v17, %v6020_v62  ;;  %v1564_v17 = vcombine.high %v1530_v56, %v1546_v50  ;;  %v9815_v50 = vld [vmem:[#allocation40_spill] sm:$0xff] }
 0x4bf   :  { %9794 = vst [vmem:[#allocation20_spill] sm:$0xff] %v7537_v2  ;;  %9795 = vst [vmem:[#allocation22_spill] sm:$0xff] %v7539_v51  ;;  %v9800_v2 = vld [vmem:[#allocation39_spill] sm:$0xff] }
 0x4c0   :  { %1624 = vrot.lane.b32.xlu1 %v7542_v16, %s5881_s6  ;;  %1588 = vrot.lane.b32.xlu0 %v7545_v4, %s5883_s8  ;;  %v1716_v51 = vcombine.high %v9801_v24, %v9800_v2  ;;  %v9807_v4 = vld [vmem:[#allocation38_spill] sm:$0xff]  ;;  %v7577_v2 = vrot.slane %v2287_v59, %v6027_v11  ;;  %v1495_v24 = vcombine.low %v1462_v15, %v1478_v22 }
 0x4c1   :  { %v1700_v12 = vcombine.high %v9808_v58, %v9807_v4  ;;  %v7587_v4 = vrot.slane %v2204_v63, %v6027_v11 }
 0x4c2   :  { %v7562_v41 = vpop.permute.xlu1 %3867  ;;  %v7564_v60 = vpop.permute.xlu0 %3118 }
 0x4c3   :  { %9804 = vst [vmem:[#allocation27_spill] sm:$0xff] %v7562_v41  ;;  %9805 = vst [vmem:[#allocation28_spill] sm:$0xff] %v7564_v60  ;;  %v1730_v60 = vrot.slane %v1716_v51, %v6020_v62  ;;  %v9810_v41 = vld [vmem:[#allocation43_spill] sm:$0xff]  ;;  %v1714_v58 = vrot.slane %v1700_v12, %v6020_v62  ;;  %v1816_v51 = vcombine.high %v1782_v36, %v7508_v3 }
 0x4c4   :  { %1876 = vrot.lane.b32.xlu1 %v7555_v47, %s5881_s6  ;;  %1840 = vrot.lane.b32.xlu0 %v7567_v39, %s5883_s8  ;;  %v2188_v16 = vcombine.high %v9810_v41, %v9809_v33  ;;  %9813 = vst [vmem:[#allocation18_spill] sm:$0xff] %v7587_v4  ;;  %v9814_v39 = vld [vmem:[#allocation44_spill] sm:$0xff]  ;;  %v7597_v41 = vrot.slane %v1564_v17, %v6027_v11  ;;  %v9819_v36 = vld [vmem:[#allocation51_spill] sm:$0xff] }
 0x4c5   :  { %v2172_v56 = vcombine.high %v9815_v50, %v9814_v39  ;;  %v1747_v59 = vcombine.low %v1714_v58, %v1730_v60  ;;  %v7606_v39 = vrot.slane %v1495_v24, %v6027_v11  ;;  %v2288_v17 = vcombine.high %v2254_v19, %v2270_v18 }
 0x4c6   :  { %v7582_v5 = vpop.permute.xlu1 %3154  ;;  %v7584_v57 = vpop.permute.xlu0 %3839  ;;  %9816 = vst [vmem:[#allocation14_spill] sm:$0xff] %v7597_v41  ;;  %v2202_v63 = vrot.slane %v2188_v16, %v6020_v62  ;;  %v7620_v24 = vrot.slane %v1816_v51, %v6027_v11  ;;  %v2524_v51 = vcombine.high %v6615_v55, %v6618_v7 }
 0x4c7   :  { %9811 = vst [vmem:[#allocation19_spill] sm:$0xff] %v7582_v5  ;;  %9812 = vst [vmem:[#allocation17_spill] sm:$0xff] %v7584_v57  ;;  %v2186_v50 = vrot.slane %v2172_v56, %v6020_v62  ;;  %v9820_v57 = vld [vmem:[#allocation49_spill] sm:$0xff]  ;;  %v7623_v56 = vrot.slane %v1747_v59, %v6027_v11  ;;  %v7632_v19 = vrot.slane %v2288_v17, %v6027_v11 }
 0x4c8   :  { %2348 = vrot.lane.b32.xlu1 %v7577_v2, %s5881_s6  ;;  %2312 = vrot.lane.b32.xlu0 %v7587_v4, %s5883_s8  ;;  %v2508_v16 = vcombine.high %v9820_v57, %v9819_v36  ;;  %v9824_v4 = vld [vmem:[#allocation46_spill] sm:$0xff]  ;;  %v1496_v57 = vcombine.high %v1462_v15, %v1478_v22  ;;  %v1748_v15 = vcombine.high %v1714_v58, %v1730_v60 }
 0x4c9   :  { %v2219_v3 = vcombine.low %v2186_v50, %v2202_v63  ;;  %v2220_v60 = vcombine.high %v2186_v50, %v2202_v63 }
 0x4ca   :  { %v7601_v33 = vpop.permute.xlu1 %3875  ;;  %v7603_v12 = vpop.permute.xlu0 %3126  ;;  %v2522_v18 = vrot.slane %v2508_v16, %v6020_v62 }
 0x4cb   :  { %9817 = vst [vmem:[#allocation36_spill] sm:$0xff] %v7601_v33  ;;  %9818 = vst [vmem:[#allocation35_spill] sm:$0xff] %v7603_v12  ;;  %v9823_v12 = vld [vmem:[#allocation50_spill] sm:$0xff] }
 0x4cc   :  { %1632 = vrot.lane.b32.xlu1 %v7597_v41, %s5877_s1  ;;  %1596 = vrot.lane.b32.xlu0 %v7606_v39, %s5881_s6  ;;  %v2492_v41 = vcombine.high %v9824_v4, %v9823_v12  ;;  %v7642_v4 = vrot.slane %v2219_v3, %v6027_v11  ;;  %v7657_v3 = vrot.slane %v1496_v57, %v6027_v11 }
 0x4ce   :  { %v7615_v5 = vpop.permute.xlu1 %3162  ;;  %v7617_v33 = vpop.permute.xlu0 %3847  ;;  %v2506_v12 = vrot.slane %v2492_v41, %v6020_v62  ;;  %v7664_v41 = vrot.slane %v1748_v15, %v6027_v11 }
 0x4cf   :  { %9821 = vst [vmem:[#allocation33_spill] sm:$0xff] %v7615_v5  ;;  %9822 = vst [vmem:[#allocation31_spill] sm:$0xff] %v7617_v33  ;;  %v7654_v33 = vrot.slane %v2524_v51, %v6027_v11  ;;  %v9834_v5 = vld [vmem:[#allocation52_spill] sm:$0xff] }
 0x4d0   :  { %1884 = vrot.lane.b32.xlu1 %v7620_v24, %s5877_s1  ;;  %1848 = vrot.lane.b32.xlu0 %v7623_v56, %s5881_s6  ;;  %v2539_v22 = vcombine.low %v2506_v12, %v2522_v18  ;;  %v2540_v58 = vcombine.high %v2506_v12, %v2522_v18  ;;  %v9836_v18 = vld [vmem:[#allocation57_spill] sm:$0xff]  ;;  %v9837_v12 = vld [vmem:[#allocation56_spill] sm:$0xff] }
 0x4d1   :  { %9829 = vst [vmem:[#allocation39_spill] sm:$0xff] %v7654_v33  ;;  %v2456_v15 = vcombine.high %v9837_v12, %v9836_v18 }
 0x4d2   :  { %v7637_v59 = vpop.permute.xlu1 %3883  ;;  %v7639_v36 = vpop.permute.xlu0 %3134  ;;  %v7673_v57 = vrot.slane %v2539_v22, %v6027_v11 }
 0x4d3   :  { %9825 = vst [vmem:[#allocation42_spill] sm:$0xff] %v7637_v59  ;;  %9826 = vst [vmem:[#allocation41_spill] sm:$0xff] %v7639_v36  ;;  %v9833_v59 = vld [vmem:[#allocation54_spill] sm:$0xff] }
 0x4d4   :  { %2356 = vrot.lane.b32.xlu1 %v7632_v19, %s5877_s1  ;;  %2320 = vrot.lane.b32.xlu0 %v7642_v4, %s5881_s6 }
 0x4d6   :  { %v7649_v17 = vpop.permute.xlu1 %4588  ;;  %v7651_v16 = vpop.permute.xlu0 %3855 }
 0x4d7   :  { %9827 = vst [vmem:[#allocation32_spill] sm:$0xff] %v7649_v17  ;;  %9828 = vst [vmem:[#allocation30_spill] sm:$0xff] %v7651_v16  ;;  %v9830_v17 = vld [vmem:[#allocation53_spill] sm:$0xff] }
 0x4d8   :  { %2592 = vrot.lane.b32.xlu1 %v7654_v33, %s5883_s8  ;;  %1604 = vrot.lane.b32.xlu0 %v7657_v3, %s5877_s1  ;;  %v2440_v36 = vcombine.high %v9830_v17, %v6664_v20  ;;  %v2424_v33 = vcombine.high %v9834_v5, %v9833_v59  ;;  %v9835_v20 = vcombine.low %v6318_v26, %v6321_v27 }
 0x4d9   :  { %v7695_v59 = vrot.slane %v2540_v58, %v6027_v11  ;;  %v7698_v17 = vrot.slane %v2220_v60, %v6027_v11 }
 0x4da   :  { %v7668_v16 = vpop.permute.xlu1 %4596  ;;  %v7670_v51 = vpop.permute.xlu0 %4560  ;;  %v7685_v63 = vrot.slane %v9835_v20, %v6027_v11  ;;  %v2454_v50 = vrot.slane %v2440_v36, %v6020_v62  ;;  %v7712_v20 = vrot.slane %v2456_v15, %v6027_v11 }
 0x4db   :  { %9831 = vst [vmem:[#allocation37_spill] sm:$0xff] %v7668_v16  ;;  %9832 = vst [vmem:[#allocation47_spill] sm:$0xff] %v7670_v51  ;;  %v2438_v51 = vrot.slane %v2424_v33, %v6020_v62 }
 0x4dc   :  { %2600 = vrot.lane.b32.xlu1 %v7673_v57, %s5881_s6  ;;  %1856 = vrot.lane.b32.xlu0 %v7664_v41, %s5877_s1  ;;  %v855_v58 = vcombine.high %v7685_v63, %v9653_v32 }
 0x4dd   :  { %v2471_v26 = vcombine.low %v2438_v51, %v2454_v50  ;;  %v2472_v33 = vcombine.high %v2438_v51, %v2454_v50  ;;  %v1108_v51 = vcombine.high %v7365_v1, %v9653_v32 }
 0x4de   :  { %v7690_v22 = vpop.permute.xlu1 %4604  ;;  %v7692_v5 = vpop.permute.xlu0 %4568 }
 0x4df   :  { %9838 = vst [vmem:[#allocation38_spill] sm:$0xff] %v7690_v22  ;;  %9839 = vst [vmem:[#allocation34_spill] sm:$0xff] %v7692_v5  ;;  %v7724_v22 = vrot.slane %v2471_v26, %v6027_v11  ;;  %v7736_v50 = vrot.slane %v2472_v33, %v6027_v11  ;;  %v857_v33 = vcombine.high %v7384_v21, %v9653_v32 }
 0x4e0   :  { %2608 = vrot.lane.b32.xlu1 %v7695_v59, %s5877_s1  ;;  %2328 = vrot.lane.b32.xlu0 %v7698_v17, %s5877_s1 }
 0x4e1   :  { %9846 = vst [vmem:[#allocation50_spill] sm:$0xff] %v7736_v50 }
 0x4e2   :  { %v7705_v27 = vpop.permute.xlu1 %4576  ;;  %v7707_v36 = vpop.permute.xlu0 %3142 }
 0x4e3   :  { %9840 = vst [vmem:[#allocation45_spill] sm:$0xff] %v7705_v27  ;;  %9841 = vst [vmem:[#allocation43_spill] sm:$0xff] %v7707_v36  ;;  %v856_v27 = vcombine.high %v7351_v14, %v9653_v32  ;;  %v9847_v14 = vcombine.low %v6342_v53, %v6345_v54  ;;  %v9850_v54 = vcombine.low %v9750_v13, %v9749_v8 }
 0x4e4   :  { %888 = vrot.lane.b32.xlu1 %v855_v58, %s5882_s7  ;;  %2564 = vrot.lane.b32.xlu0 %v7712_v20, %s5883_s8  ;;  %v9853_v13 = vcombine.low %v9758_v44, %v9757_v9 }
 0x4e5   :  { %v7742_v26 = vrot.slane %v9847_v14, %v6027_v11 }
 0x4e6   :  { %v7717_v60 = vpop.permute.xlu1 %3863  ;;  %v7719_v5 = vpop.permute.xlu0 %3114 }
 0x4e7   :  { %9842 = vst [vmem:[#allocation44_spill] sm:$0xff] %v7717_v60  ;;  %9843 = vst [vmem:[#allocation40_spill] sm:$0xff] %v7719_v5  ;;  %v1107_v53 = vcombine.high %v7742_v26, %v9653_v32  ;;  %v9914_v60 = vld [vmem:[#allocation68_spill] sm:$0xff] }
 0x4e8   :  { %896 = vrot.lane.b32.xlu1 %v856_v27, %s5880_s30  ;;  %2572 = vrot.lane.b32.xlu0 %v7724_v22, %s5881_s6  ;;  %v1799_v27 = vcombine.low %v7451_v48, %v7439_v52  ;;  %v1109_v48 = vcombine.high %v7401_v38, %v9653_v32  ;;  %v2271_v52 = vcombine.low %v7479_v40, %v7467_v49 }
 0x4ea   :  { %v7729_v15 = vpop.permute.xlu1 %3150  ;;  %v7731_v58 = vpop.permute.xlu0 %3835  ;;  %v7776_v8 = vrot.slane %v1799_v27, %v6027_v11 }
 0x4eb   :  { %9844 = vst [vmem:[#allocation51_spill] sm:$0xff] %v7729_v15  ;;  %9845 = vst [vmem:[#allocation49_spill] sm:$0xff] %v7731_v58  ;;  %v9904_v58 = vld [vmem:[#allocation58_spill] sm:$0xff]  ;;  %v9913_v15 = vld [vmem:[#allocation72_spill] sm:$0xff] }
 0x4ec   :  { %1148 = vrot.lane.b32.xlu1 %v1108_v51, %s5880_s30  ;;  %2580 = vrot.lane.b32.xlu0 %v7736_v50, %s5877_s1  ;;  %v7761_v51 = vrot.slane %v9850_v54, %v6027_v11  ;;  %v1831_v38 = vcombine.high %v7776_v8, %v9653_v32  ;;  %v788_v54 = vcombine.high %v7404_v45, %v9653_v32 }
 0x4ee   :  { %v7749_v16 = vpop.permute.xlu1 %3871  ;;  %v7751_v1 = vpop.permute.xlu0 %3122 }
 0x4ef   :  { %9848 = vst [vmem:[#allocation46_spill] sm:$0xff] %v7749_v16  ;;  %9849 = vst [vmem:[#allocation53_spill] sm:$0xff] %v7751_v1  ;;  %v787_v1 = vcombine.high %v7761_v51, %v9653_v32 }
 0x4f0   :  { %904 = vrot.lane.b32.xlu1 %v857_v33, %s5879_s29  ;;  %1140 = vrot.lane.b32.xlu0 %v1107_v53, %s5882_s7  ;;  %v7782_v33 = vrot.slane %v9853_v13, %v6027_v11  ;;  %v7795_v53 = vrot.slane %v2271_v52, %v6027_v11  ;;  %v858_v13 = vcombine.high %v7421_v29, %v9653_v32 }
 0x4f1   :  { %v1110_v29 = vcombine.high %v7434_v31, %v9653_v32 }
 0x4f2   :  { %v7769_v21 = vpop.permute.xlu1 %3158  ;;  %v7771_v14 = vpop.permute.xlu0 %3843  ;;  %v1039_v27 = vcombine.high %v7782_v33, %v9653_v32  ;;  %9856 = vst [vmem:[#allocation160_spill] sm:$0xff] %v7795_v53 }
 0x4f3   :  { %9851 = vst [vmem:[#allocation54_spill] sm:$0xff] %v7769_v21  ;;  %9852 = vst [vmem:[#allocation52_spill] sm:$0xff] %v7771_v14  ;;  %v9903_v14 = vld [vmem:[#allocation60_spill] sm:$0xff] }
 0x4f4   :  { %1156 = vrot.lane.b32.xlu1 %v1109_v48, %s5879_s29  ;;  %860 = vrot.lane.b32.xlu0 %v787_v1, %s5882_s7  ;;  %v2303_v1 = vcombine.high %v7795_v53, %v9653_v32  ;;  %v3313_v5 = vcombine.high %v9904_v58, %v9903_v14  ;;  %v9911_v58 = vld [vmem:[#allocation59_spill] sm:$0xff] }
 0x4f5   :  { %v9912_v14 = vld [vmem:[#allocation55_spill] sm:$0xff] }
 0x4f6   :  { %v7786_v40 = vpop.permute.xlu1 %3879  ;;  %v7788_v49 = vpop.permute.xlu0 %4584  ;;  %v3297_v16 = vcombine.high %v9912_v14, %v9911_v58  ;;  %v3327_v36 = vrot.slane %v3313_v5, %v6020_v62  ;;  %v9915_v14 = vld [vmem:[#allocation78_spill] sm:$0xff] }
 0x4f7   :  { %9854 = vst [vmem:[#allocation57_spill] sm:$0xff] %v7786_v40  ;;  %9855 = vst [vmem:[#allocation56_spill] sm:$0xff] %v7788_v49 }
 0x4f8   :  { %1864 = vrot.lane.b32.xlu1 %v1831_v38, %s5882_s7  ;;  %1112 = vrot.lane.b32.xlu0 %v1039_v27, %s5882_s7  ;;  %v1040_v38 = vcombine.high %v7424_v34, %v9653_v32  ;;  %v9861_v27 = vcombine.low %v9770_v10, %v9769_v25 }
 0x4fa   :  { %v7799_v44 = vpop.permute.xlu1 %3166  ;;  %v7801_v9 = vpop.permute.xlu0 %3130  ;;  %v7821_v49 = vrot.slane %v9861_v27, %v6027_v11  ;;  %v1832_v27 = vcombine.high %v7498_v6, %v9653_v32  ;;  %v2304_v6 = vcombine.high %v7519_v61, %v9653_v32  ;;  %v790_v61 = vcombine.high %v7488_v30, %v9653_v32 }
 0x4fb   :  { %9857 = vst [vmem:[#allocation161_spill] sm:$0xff] %v7799_v44  ;;  %9858 = vst [vmem:[#allocation162_spill] sm:$0xff] %v7801_v9 }
 0x4fc   :  { %2336 = vrot.lane.b32.xlu1 %v2303_v1, %s5882_s7  ;;  %868 = vrot.lane.b32.xlu0 %v788_v54, %s5880_s30  ;;  %9862 = vst [vmem:[#allocation165_spill] sm:$0xff] %v7821_v49  ;;  %v1579_v34 = vcombine.high %v7821_v49, %v9653_v32  ;;  %v1580_v54 = vcombine.high %v7474_v37, %v9653_v32  ;;  %v9985_v49 = vld [vmem:[#allocation152_spill] sm:$0xff] }
 0x4fd   :  { %v9869_v37 = vcombine.low %v9786_v28, %v9785_v35  ;;  %v9872_v35 = vcombine.low %v9793_v46, %v9792_v43 }
 0x4fe   :  { %v7809_v48 = vpop.permute.xlu1 %3887  ;;  %v7811_v52 = vpop.permute.xlu0 %3851 }
 0x4ff   :  { %9859 = vst [vmem:[#allocation163_spill] sm:$0xff] %v7809_v48  ;;  %9860 = vst [vmem:[#allocation164_spill] sm:$0xff] %v7811_v52  ;;  %v7873_v28 = vrot.slane %v9872_v35, %v6027_v11  ;;  %v9879_v35 = vld [vmem:[#allocation21_spill] sm:$0xff]  ;;  %v9906_v48 = vld [vmem:[#allocation62_spill] sm:$0xff] }
 0x500   :  { %912 = vrot.lane.b32.xlu1 %v858_v13, %s5878_s28  ;;  %1120 = vrot.lane.b32.xlu0 %v1040_v38, %s5880_s30  ;;  %v789_v13 = vcombine.high %v7448_v23, %v9653_v32  ;;  %v1581_v30 = vcombine.high %v9879_v35, %v9653_v32  ;;  %v9902_v52 = vld [vmem:[#allocation61_spill] sm:$0xff] }
 0x501   :  { %9873 = vst [vmem:[#allocation174_spill] sm:$0xff] %v7873_v28 }
 0x502   :  { %v7825_v45 = vpop.permute.xlu1 %4592  ;;  %v7827_v1 = vpop.permute.xlu0 %4556 }
 0x503   :  { %9863 = vst [vmem:[#allocation166_spill] sm:$0xff] %v7825_v45  ;;  %9864 = vst [vmem:[#allocation167_spill] sm:$0xff] %v7827_v1 }
 0x504   :  { %1164 = vrot.lane.b32.xlu1 %v1110_v29, %s5878_s28  ;;  %1612 = vrot.lane.b32.xlu0 %v1579_v34, %s5882_s7  ;;  %v1041_v29 = vcombine.high %v7460_v42, %v9653_v32  ;;  %v7857_v34 = vrot.slane %v9869_v37, %v6027_v11  ;;  %v9875_v37 = vld [vmem:[#allocation48_spill] sm:$0xff] }
 0x505   :  { %v9876_v46 = vcombine.low %v9803_v0, %v9875_v37 }
 0x506   :  { %v7835_v10 = vpop.permute.xlu1 %3859  ;;  %v7837_v25 = vpop.permute.xlu0 %3138  ;;  %9870 = vst [vmem:[#allocation172_spill] sm:$0xff] %v7857_v34  ;;  %v1511_v42 = vcombine.high %v7857_v34, %v9653_v32 }
 0x507   :  { %9865 = vst [vmem:[#allocation168_spill] sm:$0xff] %v7835_v10  ;;  %9866 = vst [vmem:[#allocation169_spill] sm:$0xff] %v7837_v25  ;;  %v7889_v43 = vrot.slane %v9876_v46, %v6027_v11  ;;  %v2557_v25 = vcombine.high %v7673_v57, %v9653_v32  ;;  %v9899_v10 = vcombine.low %v9837_v12, %v9836_v18  ;;  %v9907_v12 = vld [vmem:[#allocation74_spill] sm:$0xff] }
 0x508   :  { %1620 = vrot.lane.b32.xlu1 %v1580_v54, %s5880_s30  ;;  %876 = vrot.lane.b32.xlu0 %v789_v13, %s5879_s29  ;;  %v2558_v57 = vcombine.high %v7695_v59, %v9653_v32 }
 0x509   :  { %9877 = vst [vmem:[#allocation48_spill] sm:$0xff] %v7889_v43 }
 0x50a   :  { %v7845_v31 = vpop.permute.xlu1 %4600  ;;  %v7847_v38 = vpop.permute.xlu0 %4564 }
 0x50b   :  { %9867 = vst [vmem:[#allocation170_spill] sm:$0xff] %v7845_v31  ;;  %9868 = vst [vmem:[#allocation171_spill] sm:$0xff] %v7847_v38  ;;  %v9883_v38 = vld [vmem:[#allocation26_spill] sm:$0xff] }
 0x50c   :  { %1872 = vrot.lane.b32.xlu1 %v1832_v27, %s5880_s30  ;;  %1128 = vrot.lane.b32.xlu0 %v1041_v29, %s5879_s29  ;;  %v1763_v29 = vcombine.high %v7873_v28, %v9653_v32  ;;  %v1764_v31 = vcombine.high %v9883_v38, %v9653_v32 }
 0x50e   :  { %v7861_v23 = vpop.permute.xlu1 %892  ;;  %v7863_v54 = vpop.permute.xlu0 %4572 }
 0x50f   :  { %9871 = vst [vmem:[#allocation173_spill] sm:$0xff] %v7863_v54  ;;  %v2235_v54 = vcombine.high %v7889_v43, %v9653_v32 }
 0x510   :  { %2344 = vrot.lane.b32.xlu1 %v2304_v6, %s5880_s30  ;;  %1584 = vrot.lane.b32.xlu0 %v1511_v42, %s5882_s7 }
 0x512   :  { %v7877_v13 = vpop.permute.xlu1 %1144  ;;  %v7879_v27 = vpop.permute.xlu0 %4608 }
 0x513   :  { %9874 = vst [vmem:[#allocation175_spill] sm:$0xff] %v7879_v27 }
 0x514   :  { %884 = vrot.lane.b32.xlu1 %v790_v61, %s5878_s28  ;;  %1836 = vrot.lane.b32.xlu0 %v1763_v29, %s5882_s7  ;;  %v1833_v61 = vcombine.high %v7555_v47, %v9653_v32  ;;  %v9880_v29 = vld [vmem:[#allocation24_spill] sm:$0xff] }
 0x515   :  { %v1042_v46 = vcombine.high %v9880_v29, %v9653_v32 }
 0x516   :  { %v7893_v6 = vpop.permute.xlu1 %900  ;;  %v7895_v42 = vpop.permute.xlu0 %4580 }
 0x517   :  { %9878 = vst [vmem:[#allocation176_spill] sm:$0xff] %v7895_v42 }
 0x518   :  { %1628 = vrot.lane.b32.xlu1 %v1581_v30, %s5879_s29  ;;  %2308 = vrot.lane.b32.xlu0 %v2235_v54, %s5882_s7  ;;  %v2305_v54 = vcombine.high %v7577_v2, %v9653_v32  ;;  %v9881_v30 = vld [vmem:[#allocation29_spill] sm:$0xff] }
 0x519   :  { %v1512_v27 = vcombine.high %v9881_v30, %v9653_v32 }
 0x51a   :  { %v7903_v0 = vpop.permute.xlu1 %1152  ;;  %v7905_v37 = vpop.permute.xlu0 %864 }
 0x51c   :  { %1880 = vrot.lane.b32.xlu1 %v1833_v61, %s5879_s29  ;;  %1136 = vrot.lane.b32.xlu0 %v1042_v46, %s5878_s28  ;;  %v9882_v61 = vld [vmem:[#allocation14_spill] sm:$0xff] }
 0x51d   :  { %v1582_v46 = vcombine.high %v9882_v61, %v9653_v32 }
 0x51e   :  { %v7913_v35 = vpop.permute.xlu1 %908  ;;  %v7915_v42 = vpop.permute.xlu0 %1116 }
 0x520   :  { %2352 = vrot.lane.b32.xlu1 %v2305_v54, %s5879_s29  ;;  %1592 = vrot.lane.b32.xlu0 %v1512_v27, %s5880_s30  ;;  %v1834_v27 = vcombine.high %v7620_v24, %v9653_v32  ;;  %v9885_v54 = vld [vmem:[#allocation18_spill] sm:$0xff] }
 0x521   :  { %v2236_v1 = vcombine.high %v9885_v54, %v9653_v32 }
 0x522   :  { %v7923_v47 = vpop.permute.xlu1 %1160  ;;  %v7925_v29 = vpop.permute.xlu0 %872 }
 0x524   :  { %1636 = vrot.lane.b32.xlu1 %v1582_v46, %s5878_s28  ;;  %1844 = vrot.lane.b32.xlu0 %v1764_v31, %s5880_s30  ;;  %v2306_v31 = vcombine.high %v7632_v19, %v9653_v32  ;;  %v1513_v46 = vcombine.high %v7606_v39, %v9653_v32 }
 0x526   :  { %v7933_v2 = vpop.permute.xlu1 %1616  ;;  %v7935_v30 = vpop.permute.xlu0 %1124 }
 0x527   :  { %9884 = vst [vmem:[#allocation21_spill] sm:$0xff] %v7933_v2  ;;  %v9977_v2 = vld [vmem:[#allocation105_spill] sm:$0xff] }
 0x528   :  { %1888 = vrot.lane.b32.xlu1 %v1834_v27, %s5878_s28  ;;  %2316 = vrot.lane.b32.xlu0 %v2236_v1, %s5880_s30  ;;  %v1766_v1 = vcombine.high %v7664_v41, %v9653_v32  ;;  %v1765_v27 = vcombine.high %v7623_v56, %v9653_v32  ;;  %v9890_v41 = vcombine.low %v6615_v55, %v6618_v7  ;;  %v9895_v55 = vld [vmem:[#allocation67_spill] sm:$0xff]  ;;  %v9896_v7 = vld [vmem:[#allocation64_spill] sm:$0xff] }
 0x529   :  { %v3564_v50 = vcombine.high %v9896_v7, %v9895_v55 }
 0x52a   :  { %v7943_v61 = vpop.permute.xlu1 %1868  ;;  %v7945_v38 = vpop.permute.xlu0 %880  ;;  %v7975_v45 = vrot.slane %v9890_v41, %v6027_v11  ;;  %v3563_v41 = vcombine.low %v9896_v7, %v9895_v55  ;;  %v3311_v55 = vrot.slane %v3297_v16, %v6020_v62  ;;  %v2489_v16 = vcombine.high %v7724_v22, %v9653_v32 }
 0x52b   :  { %9886 = vst [vmem:[#allocation24_spill] sm:$0xff] %v7943_v61  ;;  %v3229_v22 = vcombine.high %v9914_v60, %v9913_v15 }
 0x52c   :  { %2360 = vrot.lane.b32.xlu1 %v2306_v31, %s5878_s28  ;;  %1600 = vrot.lane.b32.xlu0 %v1513_v46, %s5879_s29  ;;  %v2238_v31 = vcombine.high %v7698_v17, %v9653_v32  ;;  %v2237_v46 = vcombine.high %v7642_v4, %v9653_v32  ;;  %9891 = vst [vmem:[#allocation18_spill] sm:$0xff] %v7975_v45 }
 0x52d   :  { %v2555_v4 = vcombine.high %v7975_v45, %v9653_v32  ;;  %v8016_v18 = vrot.slane %v3563_v41, %v6020_v62  ;;  %v3228_v41 = vcombine.low %v9914_v60, %v9913_v15  ;;  %v9916_v45 = vld [vmem:[#allocation76_spill] sm:$0xff] }
 0x52e   :  { %v7953_v24 = vpop.permute.xlu1 %2340  ;;  %v7955_v54 = vpop.permute.xlu0 %1132 }
 0x52f   :  { %9887 = vst [vmem:[#allocation29_spill] sm:$0xff] %v7953_v24  ;;  %v8058_v7 = vrot.slane %v3228_v41, %v6020_v62 }
 0x530   :  { %1860 = vrot.lane.b32.xlu1 %v1766_v1, %s5878_s28  ;;  %1852 = vrot.lane.b32.xlu0 %v1765_v27, %s5879_s29  ;;  %v9894_v27 = vld [vmem:[#allocation39_spill] sm:$0xff] }
 0x531   :  { %v2556_v17 = vcombine.high %v9894_v27, %v9653_v32  ;;  %v1514_v27 = vcombine.high %v7657_v3, %v9653_v32  ;;  %v9905_v3 = vld [vmem:[#allocation63_spill] sm:$0xff] }
 0x532   :  { %v7963_v19 = vpop.permute.xlu1 %1624  ;;  %v7965_v39 = vpop.permute.xlu0 %1588  ;;  %v3329_v44 = vcombine.high %v9906_v48, %v9905_v3 }
 0x533   :  { %9888 = vst [vmem:[#allocation14_spill] sm:$0xff] %v7963_v19  ;;  %9889 = vst [vmem:[#allocation26_spill] sm:$0xff] %v7965_v39  ;;  %v9921_v39 = vld [vmem:[#allocation75_spill] sm:$0xff]  ;;  %v9967_v19 = vld [vmem:[#allocation93_spill] sm:$0xff] }
 0x534   :  { %2332 = vrot.lane.b32.xlu1 %v2238_v31, %s5878_s28  ;;  %2324 = vrot.lane.b32.xlu0 %v2237_v46, %s5879_s29  ;;  %v8052_v5 = vrot.slane %v3329_v44, %v6027_v11  ;;  %v3578_v44 = vrot.slane %v3564_v50, %v6020_v62 }
 0x536   :  { %v7979_v56 = vpop.permute.xlu1 %1876  ;;  %v7981_v1 = vpop.permute.xlu0 %1840  ;;  %9919 = vst [vmem:[#allocation63_spill] sm:$0xff] %v8052_v5 }
 0x537   :  { %9892 = vst [vmem:[#allocation177_spill] sm:$0xff] %v7979_v56  ;;  %9893 = vst [vmem:[#allocation178_spill] sm:$0xff] %v7981_v1 }
 0x538   :  { %2596 = vrot.lane.b32.xlu1 %v2556_v17, %s5880_s30  ;;  %2588 = vrot.lane.b32.xlu0 %v2555_v4, %s5882_s7  ;;  %v8003_v17 = vrot.slane %v9899_v10, %v6027_v11  ;;  %v9901_v4 = vld [vmem:[#allocation65_spill] sm:$0xff]  ;;  %v9908_v10 = vld [vmem:[#allocation71_spill] sm:$0xff] }
 0x539   :  { %v3547_v9 = vcombine.low %v9902_v52, %v9901_v4  ;;  %v3244_v40 = vcombine.low %v9908_v10, %v9907_v12 }
 0x53a   :  { %v7991_v31 = vpop.permute.xlu1 %2348  ;;  %v7993_v46 = vpop.permute.xlu0 %2312  ;;  %9900 = vst [vmem:[#allocation64_spill] sm:$0xff] %v8003_v17 }
 0x53b   :  { %9897 = vst [vmem:[#allocation39_spill] sm:$0xff] %v7991_v31  ;;  %9898 = vst [vmem:[#allocation67_spill] sm:$0xff] %v7993_v46  ;;  %v8029_v59 = vrot.slane %v3547_v9, %v6020_v62  ;;  %v8043_v9 = vrot.slane %v3244_v40, %v6020_v62  ;;  %v9920_v40 = vld [vmem:[#allocation77_spill] sm:$0xff] }
 0x53c   :  { %2604 = vrot.lane.b32.xlu1 %v2557_v25, %s5879_s29  ;;  %1608 = vrot.lane.b32.xlu0 %v1514_v27, %s5878_s28  ;;  %v2487_v27 = vcombine.high %v8003_v17, %v9653_v32  ;;  %v2488_v17 = vcombine.high %v7712_v20, %v9653_v32  ;;  %v3548_v20 = vcombine.high %v9902_v52, %v9901_v4 }
 0x53d   :  { %v3580_v58 = vcombine.high %v8029_v59, %v8016_v18  ;;  %v3479_v1 = vcombine.low %v9921_v39, %v9920_v40  ;;  %v3245_v52 = vcombine.high %v9908_v10, %v9907_v12  ;;  %v3261_v4 = vcombine.high %v8058_v7, %v8043_v9 }
 0x53e   :  { %v8020_v21 = vpop.permute.xlu1 %1632  ;;  %v8022_v25 = vpop.permute.xlu0 %1596  ;;  %v3562_v50 = vrot.slane %v3548_v20, %v6020_v62  ;;  %v3496_v20 = vcombine.high %v9916_v45, %v9915_v14 }
 0x53f   :  { %9909 = vst [vmem:[#allocation65_spill] sm:$0xff] %v8020_v21  ;;  %9910 = vst [vmem:[#allocation61_spill] sm:$0xff] %v8022_v25  ;;  %v3495_v25 = vcombine.low %v9916_v45, %v9915_v14  ;;  %v8086_v12 = vrot.slane %v3479_v1, %v6020_v62  ;;  %v3345_v45 = vcombine.high %v3311_v55, %v3327_v36 }
 0x540   :  { %2612 = vrot.lane.b32.xlu1 %v2558_v57, %s5878_s28  ;;  %2560 = vrot.lane.b32.xlu0 %v2487_v27, %s5882_s7  ;;  %v3595_v10 = vcombine.low %v3562_v50, %v3578_v44 }
 0x541   :  { %v8073_v41 = vrot.slane %v3495_v25, %v6020_v62 }
 0x542   :  { %v8047_v57 = vpop.permute.xlu1 %1884  ;;  %v8049_v27 = vpop.permute.xlu0 %1848  ;;  %v8114_v14 = vrot.slane %v3595_v10, %v6027_v11  ;;  %v8134_v10 = vrot.slane %v3345_v45, %v6027_v11 }
 0x543   :  { %9917 = vst [vmem:[#allocation60_spill] sm:$0xff] %v8047_v57  ;;  %9918 = vst [vmem:[#allocation58_spill] sm:$0xff] %v8049_v27  ;;  %v3344_v27 = vcombine.low %v3311_v55, %v3327_v36  ;;  %v3512_v60 = vcombine.high %v8086_v12, %v8073_v41  ;;  %v9935_v36 = vld [vmem:[#allocation79_spill] sm:$0xff] }
 0x544   :  { %3397 = vrot.lane.b32.xlu1 %v8052_v5, %s5883_s8  ;;  %2568 = vrot.lane.b32.xlu0 %v2488_v17, %s5880_s30  ;;  %v8080_v17 = vrot.slane %v3580_v58, %v6027_v11  ;;  %v3259_v58 = vrot.slane %v3245_v52, %v6020_v62  ;;  %9928 = vst [vmem:[#allocation68_spill] sm:$0xff] %v8114_v14  ;;  %9936 = vst [vmem:[#allocation75_spill] sm:$0xff] %v8134_v10  ;;  %v9969_v5 = vld [vmem:[#allocation99_spill] sm:$0xff] }
 0x545   :  { %v8092_v25 = vrot.slane %v3344_v27, %v6027_v11  ;;  %v3480_v27 = vcombine.high %v9921_v39, %v9920_v40  ;;  %v8124_v39 = vrot.slane %v3512_v60, %v6027_v11 }
 0x546   :  { %v8075_v34 = vpop.permute.xlu1 %2356  ;;  %v8077_v46 = vpop.permute.xlu0 %2320  ;;  %9924 = vst [vmem:[#allocation71_spill] sm:$0xff] %v8080_v17 }
 0x547   :  { %9922 = vst [vmem:[#allocation62_spill] sm:$0xff] %v8075_v34  ;;  %9923 = vst [vmem:[#allocation74_spill] sm:$0xff] %v8077_v46  ;;  %v8104_v46 = vrot.slane %v3261_v4, %v6027_v11  ;;  %v9929_v4 = vld [vmem:[#allocation83_spill] sm:$0xff]  ;;  %v3494_v40 = vrot.slane %v3480_v27, %v6020_v62 }
 0x548   :  { %3648 = vrot.lane.b32.xlu1 %v8080_v17, %s5883_s8  ;;  %2576 = vrot.lane.b32.xlu0 %v2489_v16, %s5879_s29  ;;  %9925 = vst [vmem:[#allocation59_spill] sm:$0xff] %v8092_v25  ;;  %v3243_v16 = vrot.slane %v3229_v22, %v6020_v62  ;;  %9933 = vst [vmem:[#allocation77_spill] sm:$0xff] %v8124_v39  ;;  %v9963_v17 = vld [vmem:[#allocation109_spill] sm:$0xff] }
 0x54a   :  { %v8099_v15 = vpop.permute.xlu1 %2592  ;;  %v8101_v1 = vpop.permute.xlu0 %1604  ;;  %v3276_v52 = vcombine.low %v3243_v16, %v3259_v58 }
 0x54b   :  { %9926 = vst [vmem:[#allocation55_spill] sm:$0xff] %v8099_v15  ;;  %9927 = vst [vmem:[#allocation72_spill] sm:$0xff] %v8101_v1  ;;  %v3510_v1 = vrot.slane %v3496_v20, %v6020_v62  ;;  %v9930_v15 = vld [vmem:[#allocation81_spill] sm:$0xff]  ;;  %v3596_v20 = vcombine.high %v3562_v50, %v3578_v44  ;;  %v3277_v44 = vcombine.high %v3243_v16, %v3259_v58 }
 0x54c   :  { %3405 = vrot.lane.b32.xlu1 %v8092_v25, %s5881_s6  ;;  %3369 = vrot.lane.b32.xlu0 %v8104_v46, %s5883_s8  ;;  %v4033_v28 = vcombine.low %v9930_v15, %v9929_v4  ;;  %v9934_v25 = vld [vmem:[#allocation82_spill] sm:$0xff]  ;;  %v8144_v34 = vrot.slane %v3276_v52, %v6027_v11  ;;  %v4034_v58 = vcombine.high %v9930_v15, %v9929_v4  ;;  %v9949_v4 = vld [vmem:[#allocation85_spill] sm:$0xff] }
 0x54d   :  { %v4017_v55 = vcombine.low %v9935_v36, %v9934_v25  ;;  %v3528_v16 = vcombine.high %v3494_v40, %v3510_v1 }
 0x54e   :  { %v8119_v22 = vpop.permute.xlu1 %2600  ;;  %v8121_v43 = vpop.permute.xlu0 %1856  ;;  %9939 = vst [vmem:[#allocation82_spill] sm:$0xff] %v8144_v34  ;;  %v8188_v15 = vrot.slane %v4034_v58, %v6020_v62 }
 0x54f   :  { %9931 = vst [vmem:[#allocation78_spill] sm:$0xff] %v8119_v22  ;;  %9932 = vst [vmem:[#allocation76_spill] sm:$0xff] %v8121_v43  ;;  %v3527_v22 = vcombine.low %v3494_v40, %v3510_v1  ;;  %v8137_v43 = vrot.slane %v4033_v28, %v6020_v62  ;;  %v9948_v1 = vld [vmem:[#allocation88_spill] sm:$0xff] }
 0x550   :  { %3656 = vrot.lane.b32.xlu1 %v8114_v14, %s5881_s6  ;;  %3620 = vrot.lane.b32.xlu0 %v8124_v39, %s5883_s8  ;;  %v8147_v14 = vrot.slane %v4017_v55, %v6020_v62  ;;  %v9943_v55 = vld [vmem:[#allocation91_spill] sm:$0xff]  ;;  %v4285_v40 = vcombine.high %v9949_v4, %v9948_v1  ;;  %v9958_v1 = vld [vmem:[#allocation84_spill] sm:$0xff]  ;;  %v9984_v39 = vld [vmem:[#allocation66_spill] sm:$0xff] }
 0x551   :  { %v8161_v52 = vrot.slane %v3527_v22, %v6027_v11 }
 0x552   :  { %v8139_v60 = vpop.permute.xlu1 %2608  ;;  %v8141_v27 = vpop.permute.xlu0 %2328  ;;  %v4050_v28 = vcombine.high %v8147_v14, %v8137_v43 }
 0x553   :  { %9937 = vst [vmem:[#allocation83_spill] sm:$0xff] %v8139_v60  ;;  %9938 = vst [vmem:[#allocation81_spill] sm:$0xff] %v8141_v27  ;;  %v8158_v60 = vrot.slane %v3596_v20, %v6027_v11 }
 0x554   :  { %3413 = vrot.lane.b32.xlu1 %v8134_v10, %s5877_s1  ;;  %3377 = vrot.lane.b32.xlu0 %v8144_v34, %s5881_s6  ;;  %9942 = vst [vmem:[#allocation180_spill] sm:$0xff] %v8161_v52  ;;  %v9944_v10 = vld [vmem:[#allocation90_spill] sm:$0xff]  ;;  %v8176_v22 = vrot.slane %v4050_v28, %v6027_v11  ;;  %v8179_v34 = vrot.slane %v3277_v44, %v6027_v11  ;;  %v9950_v28 = vld [vmem:[#allocation97_spill] sm:$0xff]  ;;  %v9952_v44 = vld [vmem:[#allocation103_spill] sm:$0xff] }
 0x555   :  { %9941 = vst [vmem:[#allocation179_spill] sm:$0xff] %v8158_v60  ;;  %v4301_v27 = vcombine.high %v9944_v10, %v9943_v55  ;;  %v9953_v10 = vld [vmem:[#allocation102_spill] sm:$0xff] }
 0x556   :  { %v889_v50 = vpop.permute.xlu1 %888  ;;  %v8155_v45 = vpop.permute.xlu0 %2564  ;;  %9946 = vst [vmem:[#allocation182_spill] sm:$0xff] %v8176_v22  ;;  %9947 = vst [vmem:[#allocation183_spill] sm:$0xff] %v8179_v34 }
 0x557   :  { %9940 = vst [vmem:[#allocation79_spill] sm:$0xff] %v8155_v45 }
 0x558   :  { %3664 = vrot.lane.b32.xlu1 %v8158_v60, %s5877_s1  ;;  %3628 = vrot.lane.b32.xlu0 %v8161_v52, %s5881_s6  ;;  %v4018_v60 = vcombine.high %v9935_v36, %v9934_v25  ;;  %v3982_v52 = vcombine.high %v9953_v10, %v9952_v44  ;;  %v8199_v36 = vrot.slane %v4301_v27, %v6027_v11  ;;  %v9962_v44 = vld [vmem:[#allocation98_spill] sm:$0xff] }
 0x559   :  { %v8216_v27 = vrot.slane %v4285_v40, %v6020_v62 }
 0x55a   :  { %v8171_v45 = vpop.permute.xlu1 %896  ;;  %v8173_v20 = vpop.permute.xlu0 %2572  ;;  %9955 = vst [vmem:[#allocation85_spill] sm:$0xff] %v8199_v36  ;;  %v8205_v58 = vrot.slane %v4018_v60, %v6020_v62  ;;  %v9961_v60 = vld [vmem:[#allocation100_spill] sm:$0xff]  ;;  %v8230_v31 = vrot.slane %v3982_v52, %v6027_v11 }
 0x55b   :  { %9945 = vst [vmem:[#allocation181_spill] sm:$0xff] %v8173_v20  ;;  %v9951_v20 = vld [vmem:[#allocation96_spill] sm:$0xff]  ;;  %v3966_v10 = vcombine.high %v9962_v44, %v9961_v60  ;;  %v9970_v44 = vld [vmem:[#allocation95_spill] sm:$0xff] }
 0x55c   :  { %4118 = vrot.lane.b32.xlu1 %v8176_v22, %s5883_s8  ;;  %3385 = vrot.lane.b32.xlu0 %v8179_v34, %s5877_s1  ;;  %v4771_v55 = vcombine.high %v9951_v20, %v9950_v28  ;;  %v8202_v34 = vrot.slane %v3528_v16, %v6027_v11  ;;  %v9957_v22 = vld [vmem:[#allocation86_spill] sm:$0xff]  ;;  %v9960_v28 = vld [vmem:[#allocation92_spill] sm:$0xff]  ;;  %9966 = vst [vmem:[#allocation84_spill] sm:$0xff] %v8230_v31 }
 0x55d   :  { %v4269_v4 = vcombine.high %v9958_v1, %v9957_v22  ;;  %v9959_v16 = vld [vmem:[#allocation94_spill] sm:$0xff]  ;;  %v9964_v22 = vld [vmem:[#allocation108_spill] sm:$0xff]  ;;  %v3950_v60 = vcombine.high %v9970_v44, %v9969_v5 }
 0x55e   :  { %v1149_v21 = vpop.permute.xlu1 %1148  ;;  %v8196_v25 = vpop.permute.xlu0 %2580  ;;  %9956 = vst [vmem:[#allocation184_spill] sm:$0xff] %v8202_v34  ;;  %v4755_v20 = vcombine.high %v9960_v28, %v9959_v16  ;;  %v4233_v1 = vcombine.high %v9964_v22, %v9963_v17  ;;  %v9968_v28 = vld [vmem:[#allocation89_spill] sm:$0xff]  ;;  %v9972_v5 = vld [vmem:[#allocation106_spill] sm:$0xff] }
 0x55f   :  { %9954 = vst [vmem:[#allocation88_spill] sm:$0xff] %v8196_v25  ;;  %v4065_v25 = vcombine.low %v8205_v58, %v8188_v15  ;;  %v8233_v40 = vrot.slane %v4269_v4, %v6020_v62  ;;  %v4739_v16 = vcombine.high %v9968_v28, %v9967_v19  ;;  %v8252_v19 = vrot.slane %v3966_v10, %v6020_v62  ;;  %v9973_v28 = vld [vmem:[#allocation104_spill] sm:$0xff]  ;;  %v9975_v17 = vld [vmem:[#allocation114_spill] sm:$0xff] }
 0x560   :  { %4369 = vrot.lane.b32.xlu1 %v8199_v36, %s5883_s8  ;;  %3636 = vrot.lane.b32.xlu0 %v8202_v34, %s5877_s1  ;;  %v8227_v34 = vrot.slane %v4771_v55, %v6027_v11  ;;  %v8246_v52 = vrot.slane %v4755_v20, %v6020_v62  ;;  %v4217_v44 = vcombine.high %v9973_v28, %v9972_v5  ;;  %v9978_v5 = vld [vmem:[#allocation101_spill] sm:$0xff] }
 0x561   :  { %v4316_v55 = vcombine.low %v8233_v40, %v8216_v27  ;;  %v8249_v4 = vrot.slane %v4065_v25, %v6027_v11  ;;  %v8261_v24 = vrot.slane %v4233_v1, %v6027_v11  ;;  %v8264_v20 = vrot.slane %v4739_v16, %v6020_v62  ;;  %v9979_v16 = vld [vmem:[#allocation112_spill] sm:$0xff] }
 0x562   :  { %v8224_v57 = vpop.permute.xlu1 %904  ;;  %v1141_v36 = vpop.permute.xlu0 %1140  ;;  %9965 = vst [vmem:[#allocation86_spill] sm:$0xff] %v8227_v34  ;;  %v8269_v10 = vrot.slane %v3950_v60, %v6020_v62  ;;  %v4201_v28 = vcombine.high %v9978_v5, %v9977_v2  ;;  %v8289_v60 = vrot.slane %v4217_v44, %v6020_v62  ;;  %v9986_v44 = vld [vmem:[#allocation69_spill] sm:$0xff] }
 0x563   :  { %9971 = vst [vmem:[#allocation94_spill] sm:$0xff] %v8249_v4  ;;  %9976 = vst [vmem:[#allocation92_spill] sm:$0xff] %v8261_v24  ;;  %v1174_v25 = vsel %vm657_vm5, %v7742_v26, %v1141_v36  ;;  %v4786_v1 = vcombine.low %v8264_v20, %v8246_v52  ;;  %v922_v26 = vsel %vm657_vm5, %v7685_v63, %v889_v50  ;;  %v9981_v63 = vld [vmem:[#allocation111_spill] sm:$0xff] }
 0x564   :  { %4839 = vrot.lane.b32.xlu1 %v8227_v34, %s5883_s8  ;;  %4090 = vrot.lane.b32.xlu0 %v8230_v31, %s5883_s8  ;;  %v9974_v34 = vld [vmem:[#allocation115_spill] sm:$0xff]  ;;  %v8284_v36 = vrot.slane %v4316_v55, %v6027_v11  ;;  %v3997_v2 = vcombine.low %v8269_v10, %v8252_v19  ;;  %v1175_v5 = vsel %vm659_vm6, %v1174_v25, %v7877_v13 }
 0x565   :  { %v4703_v22 = vcombine.high %v9975_v17, %v9974_v34  ;;  %v9980_v34 = vld [vmem:[#allocation110_spill] sm:$0xff]  ;;  %v9982_v50 = vld [vmem:[#allocation107_spill] sm:$0xff]  ;;  %v1394_v53 = vsel %vm657_vm5, %v9986_v44, %v9985_v49  ;;  %v4066_v13 = vcombine.high %v8205_v58, %v8188_v15  ;;  %v8311_v25 = vrot.slane %v4201_v28, %v6020_v62  ;;  %v9988_v28 = vld [vmem:[#allocation129_spill] sm:$0xff] }
 0x566   :  { %v1157_v31 = vpop.permute.xlu1 %1156  ;;  %v8258_v56 = vpop.permute.xlu0 %860  ;;  %v4687_v17 = vcombine.high %v9980_v34, %v9979_v16  ;;  %v4671_v55 = vcombine.high %v9982_v50, %v9981_v63  ;;  %v9983_v16 = vld [vmem:[#allocation151_spill] sm:$0xff]  ;;  %v1176_v15 = vsel %vm661_vm7, %v1175_v5, %v1149_v21  ;;  %v8326_v58 = vrot.slane %v4786_v1, %v6027_v11  ;;  %v9989_v63 = vld [vmem:[#allocation133_spill] sm:$0xff]  ;;  %v9990_v1 = vld [vmem:[#allocation154_spill] sm:$0xff] }
 0x567   :  { %v8298_v34 = vrot.slane %v4703_v22, %v6027_v11  ;;  %v671_v61 = vsel %vm657_vm5, %v9984_v39, %v9983_v16  ;;  %v923_v22 = vsel %vm659_vm6, %v922_v26, %v7861_v23  ;;  %v4248_v23 = vcombine.low %v8311_v25, %v8289_v60  ;;  %v9991_v44 = vld [vmem:[#allocation156_spill] sm:$0xff] }
 0x568   :  { %4126 = vrot.lane.b32.xlu1 %v8249_v4, %s5881_s6  ;;  %4341 = vrot.lane.b32.xlu0 %v8261_v24, %s5883_s8  ;;  %v8320_v39 = vrot.slane %v4687_v17, %v6020_v62  ;;  %v924_v49 = vsel %vm661_vm7, %v923_v22, %v8171_v45  ;;  %9987 = vst [vmem:[#allocation100_spill] sm:$0xff] %v8326_v58 }
 0x569   :  { %v672_v26 = vsel %vm659_vm6, %v671_v61, %v9988_v28  ;;  %v1395_v50 = vsel %vm659_vm6, %v1394_v53, %v9989_v63  ;;  %v8339_v45 = vrot.slane %v3997_v2, %v6027_v11  ;;  %v8342_v21 = vrot.slane %v4671_v55, %v6020_v62  ;;  %v9992_v28 = vld [vmem:[#allocation124_spill] sm:$0xff] }
 0x56a   :  { %v8293_v4 = vpop.permute.xlu1 %1864  ;;  %v8295_v24 = vpop.permute.xlu0 %1112  ;;  %v673_v5 = vsel %vm661_vm7, %v672_v26, %v9990_v1  ;;  %v1396_v22 = vsel %vm661_vm7, %v1395_v50, %v9991_v44  ;;  %v4317_v53 = vcombine.high %v8233_v40, %v8216_v27  ;;  %v925_v61 = vsel %vm663_vm8, %v924_v49, %v7893_v6  ;;  %v9993_v26 = vld [vmem:[#allocation122_spill] sm:$0xff]  ;;  %v9994_v40 = vld [vmem:[#allocation136_spill] sm:$0xff] }
 0x56b   :  { %v1177_v2 = vsel %vm663_vm8, %v1176_v15, %v7903_v0  ;;  %v4718_v55 = vcombine.low %v8342_v21, %v8320_v39  ;;  %v4938_v63 = vcombine.high %v9993_v26, %v9992_v28  ;;  %v926_v27 = vsel %vm665_vm9, %v925_v61, %v8224_v57  ;;  %v9995_v49 = vld [vmem:[#allocation138_spill] sm:$0xff]  ;;  %v9997_v26 = vld [vmem:[#allocation7_spill] sm:$0xff] }
 0x56c   :  { %4377 = vrot.lane.b32.xlu1 %v8284_v36, %s5881_s6  ;;  %4811 = vrot.lane.b32.xlu0 %v8298_v34, %s5883_s8  ;;  %v674_v6 = vsel %vm663_vm8, %v673_v5, %v9994_v40  ;;  %v1397_v0 = vsel %vm663_vm8, %v1396_v22, %v9995_v49  ;;  %v8371_v1 = vrot.slane %v4066_v13, %v6027_v11  ;;  %v9998_v61 = vld [vmem:[#allocation123_spill] sm:$0xff] }
 0x56d   :  { %v8374_v44 = vrot.slane %v4248_v23, %v6027_v11  ;;  %v1398_v57 = vsel %vm665_vm9, %v1397_v0, %v9997_v26  ;;  %v1178_v5 = vsel %vm665_vm9, %v1177_v2, %v1157_v31  ;;  %v9999_v22 = vld [vmem:[#allocation119_spill] sm:$0xff]  ;;  %v927_v13 = vsel %vm667_vm10, %v926_v27, %v7913_v35  ;;  %v10000_v35 = vld [vmem:[#allocation128_spill] sm:$0xff] }
 0x56e   :  { %v8334_v16 = vpop.permute.xlu1 %2336  ;;  %v8336_v17 = vpop.permute.xlu0 %868  ;;  %v4922_v40 = vcombine.high %v9999_v22, %v9998_v61  ;;  %v4787_v23 = vcombine.high %v8264_v20, %v8246_v52  ;;  %v4952_v31 = vrot.slane %v4938_v63, %v6020_v62  ;;  %v10001_v27 = vld [vmem:[#allocation127_spill] sm:$0xff]  ;;  %v10002_v0 = vld [vmem:[#allocation140_spill] sm:$0xff]  ;;  %v1179_v52 = vsel %vm667_vm10, %v1178_v5, %v7923_v47  ;;  %v10004_v63 = vld [vmem:[#allocation10_spill] sm:$0xff] }
 0x56f   :  { %v4954_v49 = vcombine.high %v10001_v27, %v10000_v35  ;;  %v10003_v61 = vld [vmem:[#allocation143_spill] sm:$0xff] }
 0x570   :  { %4847 = vrot.lane.b32.xlu1 %v8326_v58, %s5881_s6  ;;  %4098 = vrot.lane.b32.xlu0 %v8339_v45, %s5881_s6  ;;  %v9996_v58 = vld [vmem:[#allocation158_spill] sm:$0xff]  ;;  %v4936_v27 = vrot.slane %v4922_v40, %v6020_v62  ;;  %v8420_v47 = vrot.slane %v4787_v23, %v6027_v11 }
 0x571   :  { %v675_v28 = vsel %vm665_vm9, %v674_v6, %v9996_v58  ;;  %v8390_v58 = vrot.slane %v4317_v53, %v6027_v11  ;;  %v8397_v6 = vrot.slane %v4718_v55, %v6027_v11  ;;  %v1399_v53 = vsel %vm667_vm10, %v1398_v57, %v10003_v61  ;;  %v10005_v55 = vld [vmem:[#allocation6_spill] sm:$0xff] }
 0x572   :  { %v913_v15 = vpop.permute.xlu1 %912  ;;  %v8368_v50 = vpop.permute.xlu0 %1120  ;;  %v676_v26 = vsel %vm667_vm10, %v675_v28, %v10002_v0  ;;  %v3998_v57 = vcombine.high %v8269_v10, %v8252_v19  ;;  %v4969_v5 = vcombine.low %v4936_v27, %v4952_v31  ;;  %v8427_v40 = vrot.slane %v4954_v49, %v6027_v11 }
 0x573   :  { %v928_v2 = vsel %vm669_vm11, %v927_v13, %v913_v15  ;;  %v677_v15 = vsel %vm669_vm11, %v676_v26, %v10004_v63  ;;  %v1400_v13 = vsel %vm669_vm11, %v1399_v53, %v10005_v55  ;;  %v4249_v19 = vcombine.high %v8311_v25, %v8289_v60  ;;  %v10006_v25 = vld [vmem:[#allocation118_spill] sm:$0xff]  ;;  %v10008_v55 = vld [vmem:[#allocation117_spill] sm:$0xff] }
 0x574   :  { %4134 = vrot.lane.b32.xlu1 %v8371_v1, %s5877_s1  ;;  %4349 = vrot.lane.b32.xlu0 %v8374_v44, %s5881_s6  ;;  %v5784_v28 = vcombine.low %v677_v15, %v928_v2  ;;  %v4970_v10 = vcombine.high %v4936_v27, %v4952_v31  ;;  %v8440_v49 = vrot.slane %v3998_v57, %v6027_v11  ;;  %v10007_v31 = vld [vmem:[#allocation116_spill] sm:$0xff]  ;;  %v10012_v57 = vld [vmem:[#allocation155_spill] sm:$0xff] }
 0x575   :  { %v4719_v60 = vcombine.high %v8342_v21, %v8320_v39  ;;  %v5006_v27 = vcombine.high %v10007_v31, %v10006_v25  ;;  %v8466_v63 = vrot.slane %v4249_v19, %v6027_v11  ;;  %v10010_v21 = vld [vmem:[#allocation153_spill] sm:$0xff]  ;;  %v10015_v31 = vld [vmem:[#allocation120_spill] sm:$0xff] }
 0x576   :  { %v1165_v22 = vpop.permute.xlu1 %1164  ;;  %v8407_v20 = vpop.permute.xlu0 %1612  ;;  %v8469_v15 = vrot.slane %v4970_v10, %v6027_v11  ;;  %v3511_v10 = vcombine.low %v8086_v12, %v8073_v41  ;;  %v10014_v25 = vld [vmem:[#allocation121_spill] sm:$0xff] }
 0x577   :  { %v1180_v35 = vsel %vm669_vm11, %v1179_v52, %v1165_v22  ;;  %v8443_v22 = vrot.slane %v4969_v5, %v6027_v11  ;;  %v915_v52 = vsel %vm657_vm5, %v7761_v51, %v8258_v56  ;;  %v10013_v5 = vld [vmem:[#allocation73_spill] sm:$0xff]  ;;  %v1167_v56 = vsel %vm657_vm5, %v7782_v33, %v8295_v24 }
 0x578   :  { %v5786_v0 = vcombine.low %v1180_v35, %v1400_v13  ;;  %4385 = vrot.lane.b32.xlu1 %v8390_v58, %s5877_s1  ;;  %4819 = vrot.lane.b32.xlu0 %v8397_v6, %s5881_s6  ;;  %v3579_v35 = vcombine.low %v8029_v59, %v8016_v18  ;;  %v3260_v18 = vcombine.low %v8058_v7, %v8043_v9  ;;  %v10009_v13 = vld [vmem:[#allocation113_spill] sm:$0xff] }
 0x579   :  { %v4990_v39 = vcombine.high %v10009_v13, %v10008_v55  ;;  %v1387_v51 = vsel %vm657_vm5, %v10013_v5, %v10012_v57  ;;  %v5020_v33 = vrot.slane %v5006_v27, %v6020_v62  ;;  %v8499_v24 = vrot.slane %v4719_v60, %v6027_v11  ;;  %v10016_v55 = vld [vmem:[#allocation125_spill] sm:$0xff]  ;;  %v10019_v57 = vld [vmem:[#allocation159_spill] sm:$0xff] }
 0x57a   :  { %v8424_v26 = vpop.permute.xlu1 %1620  ;;  %v877_v61 = vpop.permute.xlu0 %876  ;;  %v5801_v2 = vpack.c.bf16 %v5786_v0, %v5784_v28  ;;  %v8452_v59 = vrot.slane %v3579_v35, %v6027_v11  ;;  %v10011_v28 = vld [vmem:[#allocation70_spill] sm:$0xff]  ;;  %v8491_v19 = vrot.slane %v3260_v18, %v6027_v11  ;;  %v1168_v41 = vsel %vm659_vm6, %v1167_v56, %v7915_v42 }
 0x57b   :  { %v658_v0 = vsel %vm657_vm5, %v10011_v28, %v10010_v21  ;;  %v10017_v21 = vld [vmem:[#allocation130_spill] sm:$0xff]  ;;  %v10018_v28 = vld [vmem:[#allocation157_spill] sm:$0xff]  ;;  %v8527_v56 = vrot.slane %v3511_v10, %v6027_v11 }
 0x57c   :  { %4855 = vrot.lane.b32.xlu1 %v8420_v47, %s5877_s1  ;;  %5062 = vrot.lane.b32.xlu0 %v8427_v40, %s5883_s8  ;;  %v3611_v35 = vcombine.high %v8452_v59, %v9653_v32  ;;  %v660_v13 = vsel %vm659_vm6, %v658_v0, %v10016_v55  ;;  %v1388_v18 = vsel %vm659_vm6, %v1387_v51, %v10017_v21  ;;  %v10021_v55 = vld [vmem:[#allocation137_spill] sm:$0xff] }
 0x57d   :  { %5802 = vmatprep.subr.bf16.mxu0 %v5801_v2  ;;  %v916_v2 = vsel %vm659_vm6, %v915_v52, %v7905_v37  ;;  %v5022_v52 = vcombine.high %v10015_v31, %v10014_v25  ;;  %v662_v60 = vsel %vm661_vm7, %v660_v13, %v10018_v28  ;;  %v1389_v5 = vsel %vm661_vm7, %v1388_v18, %v10019_v57  ;;  %v10022_v21 = vld [vmem:[#allocation9_spill] sm:$0xff]  ;;  %v10023_v18 = vld [vmem:[#allocation4_spill] sm:$0xff] }
 0x57e   :  { %v8437_v23 = vpop.permute.xlu1 %1872  ;;  %v1129_v53 = vpop.permute.xlu0 %1128  ;;  %v917_v37 = vsel %vm661_vm7, %v916_v2, %v8336_v17  ;;  %v5004_v17 = vrot.slane %v4990_v39, %v6020_v62  ;;  %v1169_v0 = vsel %vm661_vm7, %v1168_v41, %v8368_v50  ;;  %v3292_v39 = vcombine.high %v8491_v19, %v9653_v32  ;;  %v10020_v2 = vld [vmem:[#allocation134_spill] sm:$0xff] }
 0x57f   :  { %v918_v51 = vsel %vm663_vm8, %v917_v37, %v7925_v29  ;;  %v664_v50 = vsel %vm663_vm8, %v662_v60, %v10020_v2  ;;  %v1390_v29 = vsel %vm663_vm8, %v1389_v5, %v10021_v55  ;;  %v1170_v37 = vsel %vm663_vm8, %v1169_v0, %v7935_v30  ;;  %v10024_v5 = vld [vmem:[#allocation141_spill] sm:$0xff] }
 0x580   :  { %4106 = vrot.lane.b32.xlu1 %v8440_v49, %s5877_s1  ;;  %5070 = vrot.lane.b32.xlu0 %v8443_v22, %s5881_s6  ;;  %v5037_v42 = vcombine.low %v5004_v17, %v5020_v33  ;;  %v919_v62 = vsel %vm665_vm9, %v918_v51, %v877_v61  ;;  %v8540_v61 = vrot.slane %v5022_v52, %v6027_v11  ;;  %v10025_v51 = vld [vmem:[#allocation139_spill] sm:$0xff] }
 0x581   :  { %v666_v10 = vsel %vm665_vm9, %v664_v50, %v10022_v21  ;;  %v1391_v41 = vsel %vm665_vm9, %v1390_v29, %v10023_v18  ;;  %v1171_v28 = vsel %vm665_vm9, %v1170_v37, %v1129_v53  ;;  %v920_v60 = vsel %vm667_vm10, %v919_v62, %v7945_v38 }
 0x582   :  { %v8461_v9 = vpop.permute.xlu1 %2344  ;;  %v8463_v7 = vpop.permute.xlu0 %1584  ;;  %v5038_v30 = vcombine.high %v5004_v17, %v5020_v33  ;;  %v3543_v57 = vcombine.high %v8527_v56, %v9653_v32  ;;  %v1392_v0 = vsel %vm667_vm10, %v1391_v41, %v10024_v5  ;;  %v668_v53 = vsel %vm667_vm10, %v666_v10, %v10025_v51  ;;  %v10026_v33 = vld [vmem:[#allocation16_spill] sm:$0xff]  ;;  %v10027_v17 = vld [vmem:[#allocation15_spill] sm:$0xff] }
 0x583   :  { %v1172_v38 = vsel %vm667_vm10, %v1171_v28, %v7955_v54  ;;  %v8562_v50 = vrot.slane %v5037_v42, %v6027_v11  ;;  %v1898_v54 = vsel %vm657_vm5, %v7776_v8, %v8293_v4  ;;  %v10028_v42 = vcombine.low %v9906_v48, %v9905_v3  ;;  %v10029_v8 = vld [vmem:[#allocation5_spill] sm:$0xff]  ;;  %v10030_v4 = vld [vmem:[#allocation80_spill] sm:$0xff] }
 0x584   :  { %4357 = vrot.lane.b32.xlu1 %v8466_v63, %s5877_s1  ;;  %5078 = vrot.lane.b32.xlu0 %v8469_v15, %s5877_s1  ;;  %v4049_v10 = vcombine.low %v8147_v14, %v8137_v43  ;;  %v10031_v48 = vld [vmem:[#allocation160_spill] sm:$0xff]  ;;  %v10032_v43 = vld [vmem:[#allocation165_spill] sm:$0xff] }
 0x585   :  { %v8579_v21 = vrot.slane %v10028_v42, %v6027_v11  ;;  %v2370_v3 = vsel %vm657_vm5, %v10031_v48, %v8334_v16  ;;  %v1646_v14 = vsel %vm657_vm5, %v10032_v43, %v8407_v20  ;;  %v10033_v5 = vld [vmem:[#allocation24_spill] sm:$0xff]  ;;  %v10034_v16 = vld [vmem:[#allocation77_spill] sm:$0xff]  ;;  %v10042_v48 = vld [vmem:[#allocation14_spill] sm:$0xff] }
 0x586   :  { %v885_v12 = vpop.permute.xlu1 %884  ;;  %v8509_v27 = vpop.permute.xlu0 %1836  ;;  %v3544_v51 = vcombine.high %v10034_v16, %v9653_v32  ;;  %v10039_v42 = vld [vmem:[#allocation177_spill] sm:$0xff]  ;;  %v10045_v16 = vld [vmem:[#allocation60_spill] sm:$0xff] }
 0x587   :  { %v921_v52 = vsel %vm669_vm11, %v920_v60, %v885_v12  ;;  %v1393_v12 = vsel %vm669_vm11, %v1392_v0, %v10026_v33  ;;  %v8586_v60 = vrot.slane %v5038_v30, %v6027_v11  ;;  %v1899_v0 = vsel %vm659_vm6, %v1898_v54, %v10033_v5  ;;  %v10037_v33 = vld [vmem:[#allocation29_spill] sm:$0xff] }
 0x588   :  { %4827 = vrot.lane.b32.xlu1 %v8499_v24, %s5877_s1  ;;  %3644 = vrot.lane.b32.xlu0 %v3611_v35, %s5882_s7  ;;  %v3360_v30 = vcombine.high %v8579_v21, %v9653_v32 }
 0x58a   :  { %v8535_v13 = vpop.permute.xlu1 %1628  ;;  %v8537_v35 = vpop.permute.xlu0 %2308 }
 0x58c   :  { %5090 = vrot.lane.b32.xlu1 %v8540_v61, %s5883_s8  ;;  %3365 = vrot.lane.b32.xlu0 %v3292_v39, %s5882_s7  ;;  %v670_v39 = vsel %vm669_vm11, %v668_v53, %v10027_v17  ;;  %v10035_v53 = vld [vmem:[#allocation145_spill] sm:$0xff] }
 0x58d   :  { %v5783_v29 = vcombine.low %v670_v39, %v921_v52  ;;  %v3293_v52 = vcombine.high %v8104_v46, %v9653_v32  ;;  %v1900_v46 = vsel %vm661_vm7, %v1899_v0, %v8437_v23  ;;  %v8617_v23 = vrot.slane %v4049_v10, %v6027_v11  ;;  %v10040_v10 = vld [vmem:[#allocation63_spill] sm:$0xff]  ;;  %v10044_v0 = vld [vmem:[#allocation12_spill] sm:$0xff] }
 0x58e   :  { %v1881_v2 = vpop.permute.xlu1 %1880  ;;  %v1137_v62 = vpop.permute.xlu0 %1136 }
 0x58f   :  { %v1173_v55 = vsel %vm669_vm11, %v1172_v38, %v1137_v62  ;;  %v10036_v38 = vld [vmem:[#allocation21_spill] sm:$0xff]  ;;  %v4081_v5 = vcombine.high %v8617_v23, %v9653_v32 }
 0x590   :  { %v5785_v37 = vcombine.low %v1173_v55, %v1393_v12  ;;  %5098 = vrot.lane.b32.xlu1 %v8562_v50, %s5881_s6  ;;  %3616 = vrot.lane.b32.xlu0 %v3543_v57, %s5882_s7  ;;  %v2118_v57 = vsel %vm657_vm5, %v10030_v4, %v10029_v8  ;;  %v1647_v62 = vsel %vm659_vm6, %v1646_v14, %v10036_v38  ;;  %v10038_v55 = vld [vmem:[#allocation13_spill] sm:$0xff]  ;;  %v10041_v4 = vld [vmem:[#allocation147_spill] sm:$0xff] }
 0x591   :  { %v2119_v20 = vsel %vm659_vm6, %v2118_v57, %v10035_v53  ;;  %v2371_v12 = vsel %vm659_vm6, %v2370_v3, %v10037_v33  ;;  %v3361_v8 = vcombine.high %v10040_v10, %v9653_v32  ;;  %v10043_v3 = vld [vmem:[#allocation39_spill] sm:$0xff]  ;;  %v10052_v10 = vld [vmem:[#allocation48_spill] sm:$0xff] }
 0x592   :  { %v5803_v18 = vpack.c.bf16 %v5785_v37, %v5783_v29  ;;  %v2353_v41 = vpop.permute.xlu1 %2352  ;;  %v8583_v28 = vpop.permute.xlu0 %1592  ;;  %v2120_v29 = vsel %vm661_vm7, %v2119_v20, %v10038_v55  ;;  %v1648_v37 = vsel %vm661_vm7, %v1647_v62, %v8424_v26  ;;  %v2372_v54 = vsel %vm661_vm7, %v2371_v12, %v8461_v9  ;;  %v10046_v20 = vld [vmem:[#allocation71_spill] sm:$0xff]  ;;  %v10047_v62 = vld [vmem:[#allocation150_spill] sm:$0xff]  ;;  %v10048_v12 = vld [vmem:[#allocation65_spill] sm:$0xff] }
 0x593   :  { %v2121_v57 = vsel %vm663_vm8, %v2120_v29, %v10041_v4  ;;  %v1649_v26 = vsel %vm663_vm8, %v1648_v37, %v10042_v48  ;;  %v2373_v9 = vsel %vm663_vm8, %v2372_v54, %v10043_v3  ;;  %v3612_v38 = vcombine.high %v10046_v20, %v9653_v32  ;;  %v10049_v55 = vld [vmem:[#allocation62_spill] sm:$0xff] }
 0x594   :  { %5106 = vrot.lane.b32.xlu1 %v8586_v60, %s5877_s1  ;;  %3373 = vrot.lane.b32.xlu0 %v3293_v52, %s5880_s30  ;;  %v10050_v54 = vld [vmem:[#allocation82_spill] sm:$0xff] }
 0x595   :  { %5804 = vmatpush1.bf16.msra.mxu0 %v5803_v18  ;;  %v1901_v18 = vsel %vm663_vm8, %v1900_v46, %v10039_v42  ;;  %v1650_v46 = vsel %vm665_vm9, %v1649_v26, %v8535_v13  ;;  %v3294_v42 = vcombine.high %v10050_v54, %v9653_v32  ;;  %v10053_v3 = vld [vmem:[#allocation174_spill] sm:$0xff] }
 0x596   :  { %v1637_v17 = vpop.permute.xlu1 %1636  ;;  %v1845_v39 = vpop.permute.xlu0 %1844  ;;  %v1902_v52 = vsel %vm665_vm9, %v1901_v18, %v1881_v2  ;;  %v2122_v2 = vsel %vm665_vm9, %v2121_v57, %v10044_v0  ;;  %v1651_v13 = vsel %vm667_vm10, %v1650_v46, %v10048_v12  ;;  %v10051_v18 = vld [vmem:[#allocation25_spill] sm:$0xff]  ;;  %v10055_v0 = vld [vmem:[#allocation67_spill] sm:$0xff]  ;;  %v10056_v46 = vld [vmem:[#allocation180_spill] sm:$0xff] }
 0x597   :  { %v2123_v33 = vsel %vm667_vm10, %v2122_v2, %v10047_v62  ;;  %v1652_v4 = vsel %vm669_vm11, %v1651_v13, %v1637_v17  ;;  %v10060_v62 = vld [vmem:[#allocation11_spill] sm:$0xff]  ;;  %v10062_v12 = vld [vmem:[#allocation172_spill] sm:$0xff] }
 0x598   :  { %3393 = vrot.lane.b32.xlu1 %v3360_v30, %s5882_s7  ;;  %3624 = vrot.lane.b32.xlu0 %v3544_v51, %s5880_s30  ;;  %v2374_v30 = vsel %vm665_vm9, %v2373_v9, %v2353_v41  ;;  %v1903_v51 = vsel %vm667_vm10, %v1902_v52, %v10045_v16  ;;  %v2124_v52 = vsel %vm669_vm11, %v2123_v33, %v10051_v18 }
 0x599   :  { %v2375_v41 = vsel %vm667_vm10, %v2374_v30, %v10049_v55  ;;  %v1891_v9 = vsel %vm657_vm5, %v10053_v3, %v8509_v27  ;;  %v3545_v30 = vcombine.high %v10056_v46, %v9653_v32  ;;  %v10061_v27 = vld [vmem:[#allocation87_spill] sm:$0xff]  ;;  %v1639_v13 = vsel %vm657_vm5, %v10062_v12, %v8463_v7 }
 0x59a   :  { %v1889_v43 = vpop.permute.xlu1 %1888  ;;  %v2317_v14 = vpop.permute.xlu0 %2316  ;;  %v2111_v33 = vsel %vm657_vm5, %v10061_v27, %v10060_v62 }
 0x59b   :  { %v1904_v53 = vsel %vm669_vm11, %v1903_v51, %v1889_v43  ;;  %v10054_v43 = vld [vmem:[#allocation59_spill] sm:$0xff]  ;;  %v10057_v51 = vld [vmem:[#allocation102_spill] sm:$0xff] }
 0x59c   :  { %3401 = vrot.lane.b32.xlu1 %v3361_v8, %s5880_s30  ;;  %4114 = vrot.lane.b32.xlu0 %v4081_v5, %s5882_s7  ;;  %v2363_v8 = vsel %vm657_vm5, %v10052_v10, %v8537_v35  ;;  %v5788_v48 = vcombine.low %v1652_v4, %v1904_v53  ;;  %v3362_v5 = vcombine.high %v10054_v43, %v9653_v32  ;;  %v10058_v53 = vld [vmem:[#allocation103_spill] sm:$0xff]  ;;  %v10069_v4 = vld [vmem:[#allocation109_spill] sm:$0xff] }
 0x59d   :  { %v2364_v35 = vsel %vm659_vm6, %v2363_v8, %v10055_v0  ;;  %v10059_v20 = vcombine.low %v10057_v51, %v10058_v53  ;;  %v10066_v10 = vld [vmem:[#allocation91_spill] sm:$0xff] }
 0x59e   :  { %v2361_v29 = vpop.permute.xlu1 %2360  ;;  %v1601_v37 = vpop.permute.xlu0 %1600  ;;  %v2365_v55 = vsel %vm661_vm7, %v2364_v35, %v2317_v14  ;;  %v10068_v14 = vld [vmem:[#allocation108_spill] sm:$0xff] }
 0x59f   :  { %v2376_v57 = vsel %vm669_vm11, %v2375_v41, %v2361_v29  ;;  %v10063_v41 = vld [vmem:[#allocation178_spill] sm:$0xff] }
 0x5a0   :  { %v5790_v26 = vcombine.low %v2124_v52, %v2376_v57  ;;  %3652 = vrot.lane.b32.xlu1 %v3612_v38, %s5880_s30  ;;  %3381 = vrot.lane.b32.xlu0 %v3294_v42, %s5879_s29  ;;  %v8682_v38 = vrot.slane %v10059_v20, %v6027_v11  ;;  %v1892_v29 = vsel %vm659_vm6, %v1891_v9, %v10063_v41  ;;  %v10064_v42 = vld [vmem:[#allocation68_spill] sm:$0xff]  ;;  %v10065_v52 = vld [vmem:[#allocation90_spill] sm:$0xff] }
 0x5a1   :  { %v1893_v54 = vsel %vm661_vm7, %v1892_v29, %v1845_v39  ;;  %v3613_v18 = vcombine.high %v10064_v42, %v9653_v32  ;;  %v10067_v8 = vcombine.low %v10065_v52, %v10066_v10  ;;  %v10070_v57 = vcombine.low %v10068_v14, %v10069_v4  ;;  %v10072_v39 = vld [vmem:[#allocation26_spill] sm:$0xff]  ;;  %v10080_v42 = vld [vmem:[#allocation61_spill] sm:$0xff]  ;;  %v10083_v4 = vld [vmem:[#allocation115_spill] sm:$0xff] }
 0x5a2   :  { %v1861_v2 = vpop.permute.xlu1 %1860  ;;  %v1853_v17 = vpop.permute.xlu0 %1852  ;;  %v5805_v16 = vpack.c.bf16 %v5790_v26, %v5788_v48  ;;  %v10071_v26 = vld [vmem:[#allocation144_spill] sm:$0xff]  ;;  %v1640_v9 = vsel %vm659_vm6, %v1639_v13, %v10072_v39  ;;  %v4013_v46 = vcombine.high %v8682_v38, %v9653_v32  ;;  %v10075_v20 = vld [vmem:[#allocation58_spill] sm:$0xff]  ;;  %v10081_v52 = vld [vmem:[#allocation81_spill] sm:$0xff] }
 0x5a3   :  { %v8702_v7 = vrot.slane %v10067_v8, %v6027_v11  ;;  %v8708_v48 = vrot.slane %v10070_v57, %v6027_v11  ;;  %v2112_v3 = vsel %vm659_vm6, %v2111_v33, %v10071_v26  ;;  %v1641_v51 = vsel %vm661_vm7, %v1640_v9, %v8583_v28  ;;  %v10076_v13 = vld [vmem:[#allocation96_spill] sm:$0xff]  ;;  %v10077_v28 = vld [vmem:[#allocation97_spill] sm:$0xff]  ;;  %v10079_v29 = vld [vmem:[#allocation146_spill] sm:$0xff] }
 0x5a4   :  { %3409 = vrot.lane.b32.xlu1 %v3362_v5, %s5879_s29  ;;  %3632 = vrot.lane.b32.xlu0 %v3545_v30, %s5879_s29  ;;  %v10073_v5 = vld [vmem:[#allocation74_spill] sm:$0xff]  ;;  %v10074_v30 = vld [vmem:[#allocation8_spill] sm:$0xff]  ;;  %v1894_v62 = vsel %vm663_vm8, %v1893_v54, %v10075_v20 }
 0x5a5   :  { %5806 = vmatprep.subr.bf16.mxu0 %v5805_v16  ;;  %v2366_v0 = vsel %vm663_vm8, %v2365_v55, %v10073_v5  ;;  %v2113_v16 = vsel %vm661_vm7, %v2112_v3, %v10074_v30  ;;  %v1895_v27 = vsel %vm665_vm9, %v1894_v62, %v1853_v17  ;;  %v4332_v33 = vcombine.high %v8702_v7, %v9653_v32  ;;  %v10082_v14 = vld [vmem:[#allocation114_spill] sm:$0xff]  ;;  %v10085_v3 = vld [vmem:[#allocation23_spill] sm:$0xff]  ;;  %v10089_v20 = vld [vmem:[#allocation148_spill] sm:$0xff] }
 0x5a6   :  { %v2333_v43 = vpop.permute.xlu1 %2332  ;;  %v2325_v35 = vpop.permute.xlu0 %2324  ;;  %v4264_v12 = vcombine.high %v8708_v48, %v9653_v32  ;;  %v10078_v55 = vcombine.low %v10076_v13, %v10077_v28  ;;  %v2114_v54 = vsel %vm663_vm8, %v2113_v16, %v10079_v29  ;;  %v10084_v57 = vcombine.low %v10082_v14, %v10083_v4  ;;  %v10086_v5 = vld [vmem:[#allocation18_spill] sm:$0xff]  ;;  %v10088_v30 = vld [vmem:[#allocation55_spill] sm:$0xff] }
 0x5a7   :  { %v2367_v53 = vsel %vm665_vm9, %v2366_v0, %v2325_v35  ;;  %v2115_v39 = vsel %vm665_vm9, %v2114_v54, %v10085_v3  ;;  %v10087_v35 = vld [vmem:[#allocation76_spill] sm:$0xff]  ;;  %v10090_v28 = vld [vmem:[#allocation78_spill] sm:$0xff]  ;;  %v10093_v4 = vld [vmem:[#allocation83_spill] sm:$0xff] }
 0x5a8   :  { %3660 = vrot.lane.b32.xlu1 %v3613_v18, %s5879_s29  ;;  %4086 = vrot.lane.b32.xlu0 %v4013_v46, %s5882_s7  ;;  %v8736_v41 = vrot.slane %v10078_v55, %v6027_v11  ;;  %v1642_v18 = vsel %vm663_vm8, %v1641_v51, %v10080_v42  ;;  %v2368_v17 = vsel %vm667_vm10, %v2367_v53, %v10081_v52  ;;  %v10091_v55 = vld [vmem:[#allocation72_spill] sm:$0xff] }
 0x5a9   :  { %v8748_v26 = vrot.slane %v10084_v57, %v6027_v11  ;;  %v1643_v9 = vsel %vm665_vm9, %v1642_v18, %v1601_v37  ;;  %v1896_v46 = vsel %vm667_vm10, %v1895_v27, %v10087_v35  ;;  %v2369_v51 = vsel %vm669_vm11, %v2368_v17, %v2333_v43  ;;  %v10092_v43 = vld [vmem:[#allocation22_spill] sm:$0xff] }
 0x5aa   :  { %v2597_v10 = vpop.permute.xlu1 %2596  ;;  %v2589_v8 = vpop.permute.xlu0 %2588  ;;  %v4802_v37 = vcombine.high %v8736_v41, %v9653_v32  ;;  %v2116_v62 = vsel %vm667_vm10, %v2115_v39, %v10089_v20  ;;  %v1644_v29 = vsel %vm667_vm10, %v1643_v9, %v10091_v55  ;;  %v1897_v18 = vsel %vm669_vm11, %v1896_v46, %v1861_v2  ;;  %v10095_v39 = vld [vmem:[#allocation75_spill] sm:$0xff]  ;;  %v10096_v2 = vld [vmem:[#allocation184_spill] sm:$0xff] }
 0x5ab   :  { %v2622_v0 = vsel %vm657_vm5, %v10086_v5, %v2589_v8  ;;  %v2117_v54 = vsel %vm669_vm11, %v2116_v62, %v10092_v43  ;;  %v3363_v9 = vcombine.high %v10095_v39, %v9653_v32  ;;  %v3546_v5 = vcombine.high %v10096_v2, %v9653_v32 }
 0x5ac   :  { %v2623_v16 = vsel %vm659_vm6, %v2622_v0, %v10088_v30  ;;  %4365 = vrot.lane.b32.xlu1 %v4332_v33, %s5882_s7  ;;  %4337 = vrot.lane.b32.xlu0 %v4264_v12, %s5882_s7  ;;  %v4734_v12 = vcombine.high %v8748_v26, %v9653_v32  ;;  %v5789_v17 = vcombine.low %v2117_v54, %v2369_v51 }
 0x5ad   :  { %v2624_v53 = vsel %vm661_vm7, %v2623_v16, %v2597_v10  ;;  %v10099_v16 = vld [vmem:[#allocation179_spill] sm:$0xff]  ;;  %v4735_v54 = vcombine.high %v8298_v34, %v9653_v32 }
 0x5ae   :  { %v2605_v13 = vpop.permute.xlu1 %2604  ;;  %v2625_v27 = vsel %vm663_vm8, %v2624_v53, %v10090_v28  ;;  %v1609_v33 = vpop.permute.xlu0 %1608  ;;  %v3614_v51 = vcombine.high %v10099_v16, %v9653_v32  ;;  %v10100_v53 = vld [vmem:[#allocation84_spill] sm:$0xff]  ;;  %v4334_v16 = vcombine.high %v8284_v36, %v9653_v32  ;;  %v10109_v36 = vcombine.low %v10015_v31, %v10014_v25 }
 0x5af   :  { %v2626_v42 = vsel %vm665_vm9, %v2625_v27, %v2605_v13  ;;  %v1645_v52 = vsel %vm669_vm11, %v1644_v29, %v1609_v33  ;;  %v10102_v13 = vld [vmem:[#allocation182_spill] sm:$0xff]  ;;  %v10103_v27 = vld [vmem:[#allocation92_spill] sm:$0xff] }
 0x5b0   :  { %v5787_v10 = vcombine.low %v1645_v52, %v1897_v18  ;;  %4835 = vrot.lane.b32.xlu1 %v4802_v37, %s5882_s7  ;;  %4807 = vrot.lane.b32.xlu0 %v4734_v12, %s5882_s7  ;;  %v2627_v57 = vsel %vm667_vm10, %v2626_v42, %v10093_v4  ;;  %v4014_v37 = vcombine.high %v10100_v53, %v9653_v32  ;;  %v10104_v12 = vld [vmem:[#allocation85_spill] sm:$0xff]  ;;  %v10105_v52 = vld [vmem:[#allocation86_spill] sm:$0xff] }
 0x5b1   :  { %v4082_v28 = vcombine.high %v10102_v13, %v9653_v32  ;;  %v4265_v55 = vcombine.high %v10103_v27, %v9653_v32  ;;  %v4333_v43 = vcombine.high %v10104_v12, %v9653_v32  ;;  %v8878_v27 = vrot.slane %v10109_v36, %v6027_v11 }
 0x5b2   :  { %v5807_v8 = vpack.c.bf16 %v5789_v17, %v5787_v10  ;;  %v2613_v14 = vpop.permute.xlu1 %2612  ;;  %v8782_v3 = vpop.permute.xlu0 %2560  ;;  %v4803_v17 = vcombine.high %v10105_v52, %v9653_v32  ;;  %v4015_v10 = vcombine.high %v8339_v45, %v9653_v32  ;;  %v10111_v52 = vld [vmem:[#allocation127_spill] sm:$0xff]  ;;  %v4988_v36 = vcombine.high %v8469_v15, %v9653_v32 }
 0x5b3   :  { %10094 = vst [vmem:[#allocation98_spill] sm:$0xff] %v8782_v3  ;;  %v8789_v0 = vsel %vm669_vm11, %v2627_v57, %v2613_v14  ;;  %v10106_v14 = vld [vmem:[#allocation183_spill] sm:$0xff]  ;;  %v4266_v57 = vcombine.high %v8374_v44, %v9653_v32  ;;  %10110 = vst [vmem:[#allocation95_spill] sm:$0xff] %v8878_v27  ;;  %v5053_v12 = vcombine.high %v8878_v27, %v9653_v32 }
 0x5b4   :  { %10097 = vst [vmem:[#allocation93_spill] sm:$0xff] %v8789_v0  ;;  %v5791_v35 = vcombine.low %v8789_v0, %v8789_v0  ;;  %3417 = vrot.lane.b32.xlu1 %v3363_v9, %s5878_s28  ;;  %3640 = vrot.lane.b32.xlu0 %v3546_v5, %s5878_s28  ;;  %v3295_v4 = vcombine.high %v10106_v14, %v9653_v32  ;;  %v10107_v9 = vld [vmem:[#allocation94_spill] sm:$0xff] }
 0x5b5   :  { %5808 = vmatpush1.bf16.msra.mxu0 %v5807_v8  ;;  %v4083_v2 = vcombine.high %v10107_v9, %v9653_v32  ;;  %v4736_v5 = vcombine.high %v8397_v6, %v9653_v32  ;;  %v5054_v9 = vcombine.high %v8540_v61, %v9653_v32 }
 0x5b6   :  { %v8795_v46 = vpop.permute.xlu1 %3397  ;;  %5763 = vmatprep.subr.msk.mxu0 %vm177_vm1, %v5791_v35  ;;  %v8798_v30 = vpop.permute.xlu0 %2568 }
 0x5b7   :  { %10098 = vst [vmem:[#allocation89_spill] sm:$0xff] %v8798_v30  ;;  %v10128_v30 = vld [vmem:[#allocation44_spill] sm:$0xff] }
 0x5b8   :  { %3668 = vrot.lane.b32.xlu1 %v3614_v51, %s5878_s28  ;;  %4094 = vrot.lane.b32.xlu0 %v4014_v37, %s5880_s30  ;;  %v4084_v51 = vcombine.high %v8371_v1, %v9653_v32  ;;  %v10108_v37 = vld [vmem:[#allocation100_spill] sm:$0xff] }
 0x5b9   :  { %v4804_v13 = vcombine.high %v10108_v37, %v9653_v32  ;;  %v5056_v37 = vcombine.high %v8586_v60, %v9653_v32 }
 0x5ba   :  { %v8806_v20 = vpop.permute.xlu1 %3648  ;;  %v8808_v62 = vpop.permute.xlu0 %2576 }
 0x5bb   :  { %10101 = vst [vmem:[#allocation99_spill] sm:$0xff] %v8808_v62 }
 0x5bc   :  { %4122 = vrot.lane.b32.xlu1 %v4082_v28, %s5880_s30  ;;  %4345 = vrot.lane.b32.xlu0 %v4265_v55, %s5880_s30  ;;  %v4335_v28 = vcombine.high %v8390_v58, %v9653_v32  ;;  %v4805_v58 = vcombine.high %v8420_v47, %v9653_v32 }
 0x5be   :  { %v8816_v29 = vpop.permute.xlu1 %3405  ;;  %v8818_v33 = vpop.permute.xlu0 %3369 }
 0x5c0   :  { %4373 = vrot.lane.b32.xlu1 %v4333_v43, %s5880_s30  ;;  %4815 = vrot.lane.b32.xlu0 %v4735_v54, %s5880_s30  ;;  %v4267_v43 = vcombine.high %v8466_v63, %v9653_v32  ;;  %v4016_v54 = vcombine.high %v8440_v49, %v9653_v32  ;;  %v4737_v63 = vcombine.high %v8499_v24, %v9653_v32 }
 0x5c2   :  { %v8826_v42 = vpop.permute.xlu1 %3656  ;;  %v8828_v18 = vpop.permute.xlu0 %3620 }
 0x5c4   :  { %4843 = vrot.lane.b32.xlu1 %v4803_v17, %s5880_s30  ;;  %4102 = vrot.lane.b32.xlu0 %v4015_v10, %s5879_s29  ;;  %v10112_v17 = vld [vmem:[#allocation128_spill] sm:$0xff] }
 0x5c5   :  { %v10113_v10 = vcombine.low %v10111_v52, %v10112_v17 }
 0x5c6   :  { %v8836_v8 = vpop.permute.xlu1 %3413  ;;  %v8838_v34 = vpop.permute.xlu0 %3377 }
 0x5c7   :  { %v8904_v14 = vrot.slane %v10113_v10, %v6027_v11 }
 0x5c8   :  { %3389 = vrot.lane.b32.xlu1 %v3295_v4, %s5878_s28  ;;  %4353 = vrot.lane.b32.xlu0 %v4266_v57, %s5879_s29 }
 0x5c9   :  { %10114 = vst [vmem:[#allocation106_spill] sm:$0xff] %v8904_v14  ;;  %v4985_v49 = vcombine.high %v8904_v14, %v9653_v32 }
 0x5ca   :  { %v8846_v39 = vpop.permute.xlu1 %3664  ;;  %v8848_v45 = vpop.permute.xlu0 %3628 }
 0x5cc   :  { %4130 = vrot.lane.b32.xlu1 %v4083_v2, %s5879_s29  ;;  %4823 = vrot.lane.b32.xlu0 %v4736_v5, %s5879_s29  ;;  %v4986_v2 = vcombine.high %v8427_v40, %v9653_v32 }
 0x5ce   :  { %v8856_v35 = vpop.permute.xlu1 %4118  ;;  %v8858_v44 = vpop.permute.xlu0 %3385 }
 0x5d0   :  { %4381 = vrot.lane.b32.xlu1 %v4334_v16, %s5879_s29  ;;  %4138 = vrot.lane.b32.xlu0 %v4084_v51, %s5878_s28  ;;  %v5055_v16 = vcombine.high %v8562_v50, %v9653_v32  ;;  %v4987_v51 = vcombine.high %v8443_v22, %v9653_v32 }
 0x5d2   :  { %v8866_v53 = vpop.permute.xlu1 %4369  ;;  %v8868_v6 = vpop.permute.xlu0 %3636 }
 0x5d4   :  { %4851 = vrot.lane.b32.xlu1 %v4804_v13, %s5879_s29  ;;  %4389 = vrot.lane.b32.xlu0 %v4335_v28, %s5878_s28  ;;  %v10116_v13 = vld [vmem:[#allocation50_spill] sm:$0xff] }
 0x5d5   :  { %v2490_v28 = vcombine.high %v10116_v13, %v9653_v32 }
 0x5d6   :  { %v8882_v1 = vpop.permute.xlu1 %4839  ;;  %v8884_v55 = vpop.permute.xlu0 %4090 }
 0x5d8   :  { %5086 = vrot.lane.b32.xlu1 %v5053_v12, %s5882_s7  ;;  %4859 = vrot.lane.b32.xlu0 %v4805_v58, %s5878_s28 }
 0x5da   :  { %v8892_v25 = vpop.permute.xlu1 %4126  ;;  %v8894_v31 = vpop.permute.xlu0 %4341 }
 0x5dc   :  { %4361 = vrot.lane.b32.xlu1 %v4267_v43, %s5878_s28  ;;  %4110 = vrot.lane.b32.xlu0 %v4016_v54, %s5878_s28 }
 0x5de   :  { %v8908_v47 = vpop.permute.xlu1 %4377  ;;  %v8910_v4 = vpop.permute.xlu0 %4811 }
 0x5e0   :  { %4831 = vrot.lane.b32.xlu1 %v4737_v63, %s5878_s28  ;;  %5058 = vrot.lane.b32.xlu0 %v4985_v49, %s5882_s7 }
 0x5e2   :  { %v8918_v11 = vpop.permute.xlu1 %4847  ;;  %v8920_v57 = vpop.permute.xlu0 %4098 }
 0x5e4   :  { %5094 = vrot.lane.b32.xlu1 %v5054_v9, %s5880_s30  ;;  %5066 = vrot.lane.b32.xlu0 %v4986_v2, %s5880_s30 }
 0x5e6   :  { %v8928_v24 = vpop.permute.xlu1 %4134  ;;  %v8930_v5 = vpop.permute.xlu0 %4349 }
 0x5e8   :  { %5102 = vrot.lane.b32.xlu1 %v5055_v16, %s5879_s29  ;;  %5074 = vrot.lane.b32.xlu0 %v4987_v51, %s5879_s29 }
 0x5ea   :  { %v8938_v61 = vpop.permute.xlu1 %4385  ;;  %v8940_v40 = vpop.permute.xlu0 %4819 }
 0x5eb   :  { %10115 = vst [vmem:[#allocation104_spill] sm:$0xff] %v8940_v40 }
 0x5ec   :  { %5110 = vrot.lane.b32.xlu1 %v5056_v37, %s5878_s28  ;;  %2584 = vrot.lane.b32.xlu0 %v2490_v28, %s5878_s28 }
 0x5ee   :  { %v8948_v50 = vpop.permute.xlu1 %4855  ;;  %v8950_v22 = vpop.permute.xlu0 %5062 }
 0x5ef   :  { %10117 = vst [vmem:[#allocation105_spill] sm:$0xff] %v8950_v22  ;;  %v10127_v22 = vld [vmem:[#allocation126_spill] sm:$0xff] }
 0x5f0   :  { %5082 = vrot.lane.b32.xlu1 %v4988_v36, %s5878_s28 }
 0x5f2   :  { %v8955_v12 = vpop.permute.xlu1 %4106  ;;  %v8957_v58 = vpop.permute.xlu0 %5070 }
 0x5f3   :  { %10118 = vst [vmem:[#allocation101_spill] sm:$0xff] %v8955_v12  ;;  %10119 = vst [vmem:[#allocation112_spill] sm:$0xff] %v8957_v58 }
 0x5f6   :  { %v8959_v60 = vpop.permute.xlu1 %4357  ;;  %v8961_v43 = vpop.permute.xlu0 %5078 }
 0x5f7   :  { %10120 = vst [vmem:[#allocation110_spill] sm:$0xff] %v8959_v60  ;;  %10121 = vst [vmem:[#allocation111_spill] sm:$0xff] %v8961_v43  ;;  %v10131_v60 = vld [vmem:[#allocation27_spill] sm:$0xff] }
 0x5fa   :  { %v8963_v54 = vpop.permute.xlu1 %4827  ;;  %v3645_v52 = vpop.permute.xlu0 %3644 }
 0x5fb   :  { %10122 = vst [vmem:[#allocation107_spill] sm:$0xff] %v8963_v54  ;;  %v3678_v3 = vsel %vm657_vm5, %v8452_v59, %v3645_v52  ;;  %v10133_v52 = vld [vmem:[#allocation46_spill] sm:$0xff] }
 0x5fe   :  { %v8965_v17 = vpop.permute.xlu1 %5090  ;;  %v3366_v10 = vpop.permute.xlu0 %3365 }
 0x5ff   :  { %10123 = vst [vmem:[#allocation151_spill] sm:$0xff] %v8965_v17  ;;  %v10129_v17 = vld [vmem:[#allocation131_spill] sm:$0xff] }
 0x600   :  { %v3897_v27 = vsel %vm657_vm5, %v10129_v17, %v10128_v30  ;;  %v10132_v17 = vld [vmem:[#allocation51_spill] sm:$0xff] }
 0x601   :  { %v3898_v40 = vsel %vm659_vm6, %v3897_v27, %v10131_v60  ;;  %v10134_v60 = vld [vmem:[#allocation19_spill] sm:$0xff] }
 0x602   :  { %v8967_v63 = vpop.permute.xlu1 %5098  ;;  %v3617_v49 = vpop.permute.xlu0 %3616 }
 0x603   :  { %10124 = vst [vmem:[#allocation66_spill] sm:$0xff] %v8967_v63  ;;  %v10126_v63 = vld [vmem:[#allocation43_spill] sm:$0xff] }
 0x604   :  { %v3176_v14 = vsel %vm657_vm5, %v10127_v22, %v10126_v63  ;;  %v3679_v22 = vsel %vm659_vm6, %v3678_v3, %v8806_v20  ;;  %v10135_v20 = vld [vmem:[#allocation36_spill] sm:$0xff] }
 0x606   :  { %v8969_v15 = vpop.permute.xlu1 %5106  ;;  %v8971_v9 = vpop.permute.xlu0 %3373 }
 0x607   :  { %10125 = vst [vmem:[#allocation152_spill] sm:$0xff] %v8969_v15 }
 0x60a   :  { %v3394_v2 = vpop.permute.xlu1 %3393  ;;  %v3625_v16 = vpop.permute.xlu0 %3624 }
 0x60b   :  { %v3427_v58 = vsel %vm657_vm5, %v8579_v21, %v3394_v2  ;;  %v10130_v2 = vld [vmem:[#allocation20_spill] sm:$0xff] }
 0x60c   :  { %v3428_v54 = vsel %vm659_vm6, %v3427_v58, %v8795_v46  ;;  %v3177_v12 = vsel %vm659_vm6, %v3176_v14, %v10130_v2  ;;  %v3899_v46 = vsel %vm661_vm7, %v3898_v40, %v10133_v52 }
 0x60d   :  { %v3178_v59 = vsel %vm661_vm7, %v3177_v12, %v10132_v17  ;;  %v10136_v17 = vld [vmem:[#allocation54_spill] sm:$0xff] }
 0x60e   :  { %v3402_v51 = vpop.permute.xlu1 %3401  ;;  %v8973_v37 = vpop.permute.xlu0 %4114  ;;  %v3179_v3 = vsel %vm663_vm8, %v3178_v59, %v10134_v60  ;;  %v10138_v59 = vld [vmem:[#allocation33_spill] sm:$0xff] }
 0x60f   :  { %v3429_v21 = vsel %vm661_vm7, %v3428_v54, %v3402_v51  ;;  %v3900_v54 = vsel %vm663_vm8, %v3899_v46, %v10135_v20  ;;  %v3180_v40 = vsel %vm665_vm9, %v3179_v3, %v10136_v17  ;;  %v10139_v46 = vld [vmem:[#allocation42_spill] sm:$0xff]  ;;  %v10140_v3 = vld [vmem:[#allocation161_spill] sm:$0xff]  ;;  %v10141_v20 = vld [vmem:[#allocation163_spill] sm:$0xff] }
 0x610   :  { %v3430_v14 = vsel %vm663_vm8, %v3429_v21, %v8816_v29  ;;  %v3181_v52 = vsel %vm667_vm10, %v3180_v40, %v10138_v59  ;;  %v10145_v59 = vld [vmem:[#allocation135_spill] sm:$0xff] }
 0x612   :  { %v3653_v13 = vpop.permute.xlu1 %3652  ;;  %v8975_v28 = vpop.permute.xlu0 %3381 }
 0x613   :  { %v3680_v58 = vsel %vm661_vm7, %v3679_v22, %v3653_v13  ;;  %v10137_v13 = vld [vmem:[#allocation57_spill] sm:$0xff] }
 0x614   :  { %v3681_v51 = vsel %vm663_vm8, %v3680_v58, %v8826_v42  ;;  %v3901_v22 = vsel %vm665_vm9, %v3900_v54, %v10137_v13 }
 0x615   :  { %v3902_v42 = vsel %vm667_vm10, %v3901_v22, %v10139_v46  ;;  %v10143_v22 = vld [vmem:[#allocation132_spill] sm:$0xff]  ;;  %v3420_v46 = vsel %vm657_vm5, %v8491_v19, %v3366_v10 }
 0x616   :  { %v3410_v36 = vpop.permute.xlu1 %3409  ;;  %v3633_v32 = vpop.permute.xlu0 %3632  ;;  %v10149_v10 = vld [vmem:[#allocation52_spill] sm:$0xff] }
 0x617   :  { %v3431_v27 = vsel %vm665_vm9, %v3430_v14, %v3410_v36 }
 0x618   :  { %v3432_v36 = vsel %vm667_vm10, %v3431_v27, %v8836_v8  ;;  %v3903_v8 = vsel %vm669_vm11, %v3902_v42, %v10141_v20 }
 0x61a   :  { %v3661_v43 = vpop.permute.xlu1 %3660  ;;  %v8977_v0 = vpop.permute.xlu0 %4086 }
 0x61b   :  { %v3682_v29 = vsel %vm665_vm9, %v3681_v51, %v3661_v43  ;;  %v3182_v43 = vsel %vm669_vm11, %v3181_v52, %v10140_v3  ;;  %v3421_v3 = vsel %vm659_vm6, %v3420_v46, %v8818_v33 }
 0x61c   :  { %v3683_v14 = vsel %vm667_vm10, %v3682_v29, %v8846_v39  ;;  %v10142_v39 = vld [vmem:[#allocation40_spill] sm:$0xff] }
 0x61d   :  { %v3169_v29 = vsel %vm657_vm5, %v10143_v22, %v10142_v39 }
 0x61e   :  { %v8981_v62 = vpop.permute.xlu1 %4365  ;;  %v8983_v15 = vpop.permute.xlu0 %4337 }
 0x622   :  { %v9002_v63 = vpop.permute.xlu1 %4835  ;;  %v9004_v30 = vpop.permute.xlu0 %4807 }
 0x626   :  { %v3418_v12 = vpop.permute.xlu1 %3417  ;;  %v3641_v2 = vpop.permute.xlu0 %3640 }
 0x627   :  { %v3433_v21 = vsel %vm669_vm11, %v3432_v36, %v3418_v12  ;;  %v3671_v12 = vsel %vm657_vm5, %v8527_v56, %v3617_v49  ;;  %v10144_v36 = vld [vmem:[#allocation49_spill] sm:$0xff]  ;;  %v10146_v49 = vld [vmem:[#allocation28_spill] sm:$0xff] }
 0x628   :  { %v5793_v54 = vcombine.low %v3182_v43, %v3433_v21  ;;  %v3890_v52 = vsel %vm657_vm5, %v10145_v59, %v10144_v36  ;;  %v3672_v21 = vsel %vm659_vm6, %v3671_v12, %v8828_v18  ;;  %v3170_v42 = vsel %vm659_vm6, %v3169_v29, %v10146_v49  ;;  %v10151_v12 = vld [vmem:[#allocation31_spill] sm:$0xff]  ;;  %v10152_v36 = vld [vmem:[#allocation162_spill] sm:$0xff]  ;;  %v10153_v59 = vld [vmem:[#allocation164_spill] sm:$0xff] }
 0x629   :  { %v3673_v56 = vsel %vm661_vm7, %v3672_v21, %v3625_v16  ;;  %v3422_v16 = vsel %vm661_vm7, %v3421_v3, %v8971_v9  ;;  %v10154_v21 = vld [vmem:[#allocation30_spill] sm:$0xff]  ;;  %v10156_v3 = vld [vmem:[#allocation168_spill] sm:$0xff] }
 0x62a   :  { %v3669_v58 = vpop.permute.xlu1 %3668  ;;  %v9034_v60 = vpop.permute.xlu0 %4094  ;;  %v3423_v39 = vsel %vm663_vm8, %v3422_v16, %v8838_v34 }
 0x62b   :  { %v3684_v27 = vsel %vm669_vm11, %v3683_v14, %v3669_v58  ;;  %v10147_v58 = vld [vmem:[#allocation17_spill] sm:$0xff] }
 0x62c   :  { %v5795_v51 = vcombine.low %v3684_v27, %v3903_v8  ;;  %v3891_v14 = vsel %vm659_vm6, %v3890_v52, %v10147_v58  ;;  %v10148_v8 = vld [vmem:[#allocation53_spill] sm:$0xff]  ;;  %v3674_v27 = vsel %vm663_vm8, %v3673_v56, %v8848_v45 }
 0x62d   :  { %v3171_v19 = vsel %vm661_vm7, %v3170_v42, %v10148_v8  ;;  %v3892_v18 = vsel %vm661_vm7, %v3891_v14, %v10149_v10  ;;  %v10155_v56 = vld [vmem:[#allocation41_spill] sm:$0xff] }
 0x62e   :  { %v4123_v17 = vpop.permute.xlu1 %4122  ;;  %v9043_v40 = vpop.permute.xlu0 %4345  ;;  %v5809_v13 = vpack.c.bf16 %v5795_v51, %v5793_v54  ;;  %v3675_v54 = vsel %vm665_vm9, %v3674_v27, %v3633_v32  ;;  %v10150_v51 = vld [vmem:[#allocation35_spill] sm:$0xff]  ;;  %v3424_v32 = vsel %vm665_vm9, %v3423_v39, %v8975_v28  ;;  %v10157_v28 = vld [vmem:[#allocation169_spill] sm:$0xff] }
 0x62f   :  { %v3172_v33 = vsel %vm663_vm8, %v3171_v19, %v10150_v51  ;;  %v3676_v52 = vsel %vm667_vm10, %v3675_v54, %v8868_v6  ;;  %v3425_v58 = vsel %vm667_vm10, %v3424_v32, %v8858_v44  ;;  %v10158_v51 = vld [vmem:[#allocation56_spill] sm:$0xff]  ;;  %v10159_v44 = vld [vmem:[#allocation142_spill] sm:$0xff]  ;;  %v10162_v32 = vld [vmem:[#allocation167_spill] sm:$0xff] }
 0x630   :  { %5810 = vmatprep.subr.bf16.mxu1 %v5809_v13  ;;  %v3893_v13 = vsel %vm663_vm8, %v3892_v18, %v10151_v12  ;;  %v3173_v9 = vsel %vm665_vm9, %v3172_v33, %v10152_v36  ;;  %v3677_v46 = vsel %vm669_vm11, %v3676_v52, %v3641_v2  ;;  %v4399_v18 = vsel %vm657_vm5, %v8702_v7, %v8981_v62  ;;  %v10160_v62 = vld [vmem:[#allocation32_spill] sm:$0xff]  ;;  %v10163_v52 = vld [vmem:[#allocation149_spill] sm:$0xff] }
 0x631   :  { %v3894_v45 = vsel %vm665_vm9, %v3893_v13, %v10153_v59  ;;  %v3174_v49 = vsel %vm667_vm10, %v3173_v9, %v10155_v56  ;;  %v4618_v33 = vsel %vm657_vm5, %v10159_v44, %v10158_v51  ;;  %v4148_v12 = vsel %vm657_vm5, %v8617_v23, %v8973_v37 }
 0x632   :  { %v4374_v43 = vpop.permute.xlu1 %4373  ;;  %v9062_v20 = vpop.permute.xlu0 %4815  ;;  %v3895_v34 = vsel %vm667_vm10, %v3894_v45, %v10154_v21  ;;  %v3175_v19 = vsel %vm669_vm11, %v3174_v49, %v10157_v28  ;;  %v4869_v13 = vsel %vm657_vm5, %v8736_v41, %v9002_v63  ;;  %v4400_v39 = vsel %vm659_vm6, %v4399_v18, %v8866_v53  ;;  %v10161_v45 = vld [vmem:[#allocation166_spill] sm:$0xff]  ;;  %v10167_v28 = vld [vmem:[#allocation171_spill] sm:$0xff] }
 0x633   :  { %v3896_v8 = vsel %vm669_vm11, %v3895_v34, %v10156_v3  ;;  %v4401_v7 = vsel %vm661_vm7, %v4400_v39, %v4374_v43  ;;  %v4619_v36 = vsel %vm659_vm6, %v4618_v33, %v10160_v62  ;;  %v4149_v9 = vsel %vm659_vm6, %v4148_v12, %v8856_v35  ;;  %v10170_v39 = vld [vmem:[#allocation34_spill] sm:$0xff] }
 0x634   :  { %v5794_v2 = vcombine.low %v3677_v46, %v3896_v8  ;;  %v4870_v59 = vsel %vm659_vm6, %v4869_v13, %v8882_v1  ;;  %v4620_v41 = vsel %vm661_vm7, %v4619_v36, %v10161_v45  ;;  %v4150_v63 = vsel %vm661_vm7, %v4149_v9, %v4123_v17  ;;  %v10164_v17 = vld [vmem:[#allocation37_spill] sm:$0xff] }
 0x635   :  { %v4402_v43 = vsel %vm663_vm8, %v4401_v7, %v8908_v47  ;;  %v4611_v46 = vsel %vm657_vm5, %v10163_v52, %v10162_v32  ;;  %v4141_v35 = vsel %vm657_vm5, %v8682_v38, %v8977_v0  ;;  %v4392_v1 = vsel %vm657_vm5, %v8708_v48, %v8983_v15  ;;  %v10171_v7 = vld [vmem:[#allocation104_spill] sm:$0xff]  ;;  %v10176_v52 = vld [vmem:[#allocation107_spill] sm:$0xff] }
 0x636   :  { %v4844_v22 = vpop.permute.xlu1 %4843  ;;  %v9079_v29 = vpop.permute.xlu0 %4102  ;;  %v4151_v47 = vsel %vm663_vm8, %v4150_v63, %v8892_v25  ;;  %v4862_v48 = vsel %vm657_vm5, %v8748_v26, %v9004_v30  ;;  %v4142_v25 = vsel %vm659_vm6, %v4141_v35, %v8884_v55 }
 0x637   :  { %v4871_v53 = vsel %vm661_vm7, %v4870_v59, %v4844_v22  ;;  %v4621_v22 = vsel %vm663_vm8, %v4620_v41, %v10164_v17  ;;  %v4143_v26 = vsel %vm661_vm7, %v4142_v25, %v9034_v60  ;;  %v10169_v60 = vld [vmem:[#allocation175_spill] sm:$0xff]  ;;  %v10179_v17 = vld [vmem:[#allocation64_spill] sm:$0xff] }
 0x638   :  { %v4872_v34 = vsel %vm663_vm8, %v4871_v53, %v8918_v11  ;;  %v4393_v11 = vsel %vm659_vm6, %v4392_v1, %v8894_v31  ;;  %v4863_v31 = vsel %vm659_vm6, %v4862_v48, %v8910_v4  ;;  %v4144_v4 = vsel %vm663_vm8, %v4143_v26, %v8920_v57  ;;  %v10172_v57 = vld [vmem:[#allocation173_spill] sm:$0xff] }
 0x639   :  { %v4394_v30 = vsel %vm661_vm7, %v4393_v11, %v9043_v40  ;;  %v4864_v40 = vsel %vm661_vm7, %v4863_v31, %v9062_v20  ;;  %v10175_v53 = vld [vmem:[#allocation45_spill] sm:$0xff]  ;;  %v10187_v31 = vld [vmem:[#allocation66_spill] sm:$0xff] }
 0x63a   :  { %v3390_v42 = vpop.permute.xlu1 %3389  ;;  %v4354_v14 = vpop.permute.xlu0 %4353  ;;  %v4865_v62 = vsel %vm663_vm8, %v4864_v40, %v10171_v7  ;;  %v10183_v11 = vld [vmem:[#allocation89_spill] sm:$0xff] }
 0x63b   :  { %v3426_v6 = vsel %vm669_vm11, %v3425_v58, %v3390_v42  ;;  %v10165_v42 = vld [vmem:[#allocation170_spill] sm:$0xff]  ;;  %v10166_v58 = vld [vmem:[#allocation47_spill] sm:$0xff] }
 0x63c   :  { %v5792_v10 = vcombine.low %v3175_v19, %v3426_v6  ;;  %v4622_v38 = vsel %vm665_vm9, %v4621_v22, %v10165_v42  ;;  %v4612_v3 = vsel %vm659_vm6, %v4611_v46, %v10166_v58 }
 0x63d   :  { %v4613_v19 = vsel %vm661_vm7, %v4612_v3, %v10167_v28  ;;  %v10184_v28 = vld [vmem:[#allocation106_spill] sm:$0xff] }
 0x63e   :  { %v5811_v16 = vpack.c.bf16 %v5794_v2, %v5792_v10  ;;  %v4131_v27 = vpop.permute.xlu1 %4130  ;;  %v4824_v54 = vpop.permute.xlu0 %4823  ;;  %v10168_v2 = vld [vmem:[#allocation38_spill] sm:$0xff]  ;;  %v4614_v20 = vsel %vm663_vm8, %v4613_v19, %v10170_v39 }
 0x63f   :  { %v4152_v0 = vsel %vm665_vm9, %v4151_v47, %v4131_v27  ;;  %v4623_v55 = vsel %vm667_vm10, %v4622_v38, %v10168_v2  ;;  %v10180_v47 = vld [vmem:[#allocation95_spill] sm:$0xff]  ;;  %v10186_v2 = vld [vmem:[#allocation105_spill] sm:$0xff] }
 0x640   :  { %5812 = vmatpush1.bf16.msra.mxu1 %v5811_v16  ;;  %v4624_v27 = vsel %vm669_vm11, %v4623_v55, %v10169_v60  ;;  %v10181_v38 = vld [vmem:[#allocation79_spill] sm:$0xff] }
 0x642   :  { %v4382_v23 = vpop.permute.xlu1 %4381  ;;  %v4139_v37 = vpop.permute.xlu0 %4138 }
 0x643   :  { %v4403_v21 = vsel %vm665_vm9, %v4402_v43, %v4382_v23  ;;  %v4615_v23 = vsel %vm665_vm9, %v4614_v20, %v10172_v57 }
 0x644   :  { %v4404_v8 = vsel %vm667_vm10, %v4403_v21, %v8938_v61  ;;  %v4153_v61 = vsel %vm667_vm10, %v4152_v0, %v8928_v24  ;;  %v4395_v24 = vsel %vm663_vm8, %v4394_v30, %v8930_v5  ;;  %v4866_v5 = vsel %vm665_vm9, %v4865_v62, %v4824_v54  ;;  %v10177_v54 = vld [vmem:[#allocation176_spill] sm:$0xff]  ;;  %v10178_v21 = vld [vmem:[#allocation98_spill] sm:$0xff]  ;;  %v10185_v30 = vld [vmem:[#allocation181_spill] sm:$0xff] }
 0x645   :  { %v4154_v51 = vsel %vm669_vm11, %v4153_v61, %v4139_v37  ;;  %v4396_v13 = vsel %vm665_vm9, %v4395_v24, %v4354_v14  ;;  %v10173_v37 = vld [vmem:[#allocation110_spill] sm:$0xff]  ;;  %v4616_v43 = vsel %vm667_vm10, %v4615_v23, %v10175_v53  ;;  %v4867_v46 = vsel %vm667_vm10, %v4866_v5, %v10176_v52  ;;  %v10193_v23 = vld [vmem:[#allocation111_spill] sm:$0xff] }
 0x646   :  { %v4852_v56 = vpop.permute.xlu1 %4851  ;;  %v4390_v49 = vpop.permute.xlu0 %4389  ;;  %v4397_v45 = vsel %vm667_vm10, %v4396_v13, %v10173_v37  ;;  %v4617_v1 = vsel %vm669_vm11, %v4616_v43, %v10177_v54  ;;  %v2615_v22 = vsel %vm657_vm5, %v10179_v17, %v10178_v21 }
 0x647   :  { %v4873_v15 = vsel %vm665_vm9, %v4872_v34, %v4852_v56  ;;  %v4405_v6 = vsel %vm669_vm11, %v4404_v8, %v4390_v49  ;;  %v2616_v48 = vsel %vm659_vm6, %v2615_v22, %v10181_v38 }
 0x648   :  { %v4874_v18 = vsel %vm667_vm10, %v4873_v15, %v8948_v50  ;;  %v5797_v33 = vcombine.low %v4154_v51, %v4405_v6  ;;  %v4145_v50 = vsel %vm665_vm9, %v4144_v4, %v9079_v29  ;;  %v10174_v29 = vld [vmem:[#allocation101_spill] sm:$0xff]  ;;  %v10182_v15 = vld [vmem:[#allocation151_spill] sm:$0xff]  ;;  %v2617_v8 = vsel %vm661_vm7, %v2616_v48, %v10183_v11  ;;  %v10189_v51 = vld [vmem:[#allocation112_spill] sm:$0xff] }
 0x649   :  { %v4146_v14 = vsel %vm667_vm10, %v4145_v50, %v10174_v29  ;;  %v2618_v6 = vsel %vm663_vm8, %v2617_v8, %v10185_v30  ;;  %v10190_v4 = vld [vmem:[#allocation152_spill] sm:$0xff]  ;;  %v10194_v29 = vmov 0.0  }
 0x64a   :  { %v5087_v10 = vpop.permute.xlu1 %5086  ;;  %v4860_v16 = vpop.permute.xlu0 %4859 }
 0x64b   :  { %v4875_v44 = vsel %vm669_vm11, %v4874_v18, %v4860_v16  ;;  %v5120_v34 = vsel %vm657_vm5, %v10180_v47, %v5087_v10  ;;  %v10188_v16 = vld [vmem:[#allocation99_spill] sm:$0xff] }
 0x64c   :  { %v5799_v12 = vcombine.low %v4624_v27, %v4875_v44  ;;  %v5121_v58 = vsel %vm659_vm6, %v5120_v34, %v10182_v15  ;;  %v2619_v60 = vsel %vm665_vm9, %v2618_v6, %v10188_v16  ;;  %v23_v16 = vld [vmem:[%s9377_s3 + $0x8] sm:$0xff] }
 0x64e   :  { %v4362_v36 = vpop.permute.xlu1 %4361  ;;  %v4111_v9 = vpop.permute.xlu0 %4110  ;;  %v5813_v59 = vpack.c.bf16 %v5799_v12, %v5797_v33  ;;  %v10191_v12 = vld [vmem:[#allocation88_spill] sm:$0xff] }
 0x64f   :  { %v4398_v41 = vsel %vm669_vm11, %v4397_v45, %v4362_v36  ;;  %v4147_v63 = vsel %vm669_vm11, %v4146_v14, %v4111_v9  ;;  %v2620_v50 = vsel %vm667_vm10, %v2619_v60, %v10191_v12  ;;  %v10192_v36 = vld [vmem:[#allocation93_spill] sm:$0xff]  ;;  %v24_v60 = vld [vmem:[%s9378_s4] sm:$0xff] }
 0x650   :  { %5814 = vmatprep.subr.bf16.mxu1 %v5813_v59  ;;  %v5796_v49 = vcombine.low %v4147_v63, %v4398_v41  ;;  %v21_v59 = vld [vmem:[%s9376_s2] sm:$0xff] }
 0x652   :  { %v4832_v32 = vpop.permute.xlu1 %4831  ;;  %v5059_v35 = vpop.permute.xlu0 %5058 }
 0x653   :  { %v4868_v56 = vsel %vm669_vm11, %v4867_v46, %v4832_v32  ;;  %v5113_v19 = vsel %vm657_vm5, %v10184_v28, %v5059_v35 }
 0x654   :  { %v5798_v42 = vcombine.low %v4617_v1, %v4868_v56  ;;  %v5114_v55 = vsel %vm659_vm6, %v5113_v19, %v10186_v2 }
 0x656   :  { %v5815_v0 = vpack.c.bf16 %v5798_v42, %v5796_v49  ;;  %v5095_v3 = vpop.permute.xlu1 %5094  ;;  %v5067_v25 = vpop.permute.xlu0 %5066 }
 0x657   :  { %v5122_v26 = vsel %vm661_vm7, %v5121_v58, %v5095_v3  ;;  %v5115_v27 = vsel %vm661_vm7, %v5114_v55, %v5067_v25  ;;  %v22_v55 = vld [vmem:[%s9377_s3] sm:$0xff] }
 0x658   :  { %5816 = vmatpush1.bf16.msra.mxu1 %v5815_v0  ;;  %v5123_v61 = vsel %vm663_vm8, %v5122_v26, %v10187_v31  ;;  %v5116_v44 = vsel %vm663_vm8, %v5115_v27, %v10189_v51  ;;  %v5495_v31 = vld [vmem:[%s9374_s0 + $0x8] sm:$0xff] }
 0x659   :  { %v25_v27 = vld [vmem:[%s9378_s4 + $0x8] sm:$0xff] }
 0x65a   :  { %v5103_v10 = vpop.permute.xlu1 %5102  ;;  %v5075_v18 = vpop.permute.xlu0 %5074 }
 0x65b   :  { %v5124_v40 = vsel %vm665_vm9, %v5123_v61, %v5103_v10  ;;  %v5117_v39 = vsel %vm665_vm9, %v5116_v44, %v5075_v18  ;;  %v5494_v61 = vld [vmem:[%s9374_s0] sm:$0xff]  ;;  %v5776_v10 = vld [vmem:[%s9374_s0 + $0x18] sm:$0xff]  ;;  %v5775_v18 = vld [vmem:[%s9374_s0 + $0x10] sm:$0xff] }
 0x65c   :  { %v5125_v24 = vsel %vm667_vm10, %v5124_v40, %v10190_v4  ;;  %v5118_v5 = vsel %vm667_vm10, %v5117_v39, %v10193_v23 }
 0x65e   :  { %v5111_v33 = vpop.permute.xlu1 %5110  ;;  %v2585_v13 = vpop.permute.xlu0 %2584 }
 0x65f   :  { %v5126_v20 = vsel %vm669_vm11, %v5125_v24, %v5111_v33  ;;  %v2621_v7 = vsel %vm669_vm11, %v2620_v50, %v2585_v13 }
 0x660   :  { %v5800_v62 = vcombine.low %v5126_v20, %v5126_v20  ;;  %v2631_v9 = vcombine.low %v2621_v7, %v10192_v36 }
 0x662   :  { %v5083_v57 = vpop.permute.xlu1 %5082  ;;  %5764 = vmatpush1.msk.msra.mxu0 %vm177_vm1, %v2631_v9  ;;  %5766 = vmatprep.subr.msk.mxu1 %vm177_vm1, %v5800_v62 }
 0x663   :  { %v5119_v37 = vsel %vm669_vm11, %v5118_v5, %v5083_v57  ;;  %5765 = vmatmul.mubr.msk.f32.vlgmr.msra.gmra.mrb[2].mxu0 %vm2670_vm12, %v21_v59 }
 0x664   :  { %v5129_v45 = vcombine.low %v5119_v37, %v5126_v20  ;;  %5348 = vmatprep.mubr.f32.mxu0 %v10194_v29 }
 0x666   :  { %5767 = vmatpush1.msk.msra.mxu1 %vm177_vm1, %v5129_v45 }
 0x667   :  { %5768 = vmatmul.mubr.msk.f32.vlgmr.msra.gmra.mrb[2].mxu1 %vm2670_vm12, %v21_v59 }
 0x668   :  { %5425 = vmatprep.mubr.f32.mxu1 %v10194_v29 }
 0x736   :  { %v2744_v14 = vpop.f32.mrb[2].mxu0 }
 0x737   :  { %v2746_v41 = vpop.f32.mrb[3].mxu0 }
 0x738   :  { %v5242_v63 = vadd.f32 %v2746_v41, %v2744_v14 }
 0x73a   :  { %v5237_v53 = vpop.f32.mrb[2].mxu1  ;;  %5243 = vadd.xlane.f32.xlu0 %v5242_v63 }
 0x73b   :  { %v5239_v43 = vpop.f32.mrb[3].mxu1 }
 0x73c   :  { %v5245_v32 = vadd.f32 %v5239_v43, %v5237_v53 }
 0x73e   :  { %5246 = vadd.xlane.f32.xlu1 %v5245_v32 }
 0x7c7   :  { %v5244_v52 = vpop.xlane.xlu0 %5243 }
 0x7cb   :  { %v5247_v46 = vpop.xlane.xlu1 %5246 }
 0x7cc   :  { %v5249_v35 = vadd.f32 %v5247_v46, %v5244_v52 }
 0x7ce   :  { %v5250_v54 = vmul.f32 0.001953125, %v5249_v35 }
 0x7d0   :  { %v5251_v1 = vsub.f32 %v2744_v14, %v5250_v54  ;;  %v5252_v21 = vsub.f32 %v2746_v41, %v5250_v54  ;;  %v5258_v17 = vsub.f32 %v5237_v53, %v5250_v54  ;;  %v5259_v22 = vsub.f32 %v5239_v43, %v5250_v54 }
 0x7d2   :  { %v5253_v47 = vmul.f32 %v5251_v1, %v5251_v1  ;;  %v5254_v34 = vmul.f32 %v5252_v21, %v5252_v21  ;;  %v5260_v49 = vmul.f32 %v5258_v17, %v5258_v17  ;;  %v5261_v42 = vmul.f32 %v5259_v22, %v5259_v22 }
 0x7d4   :  { %v5255_v56 = vadd.f32 %v5254_v34, %v5253_v47  ;;  %v5262_v38 = vadd.f32 %v5261_v42, %v5260_v49 }
 0x7d6   :  { %5256 = vadd.xlane.f32.xlu0 %v5255_v56 }
 0x7da   :  { %5263 = vadd.xlane.f32.xlu0 %v5262_v38 }
 0x863   :  { %v5257_v48 = vpop.xlane.xlu0 %5256 }
 0x867   :  { %v5264_v0 = vpop.xlane.xlu0 %5263 }
 0x868   :  { %v5266_v15 = vadd.f32 %v5264_v0, %v5257_v48 }
 0x86a   :  { %v5267_v58 = vmul.f32 0.001953125, %v5266_v15 }
 0x86c   :  { %v5268_v3 = vadd.f32 1e-05, %v5267_v58 }
 0x86e   :  { %5866 = vrsqrt.f32 %v5268_v3 }
 0x878   :  { %v5867_v25 = vpop.eup %5866 }
 0x879   :  { %v5271_v11 = vmul.f32 %v5867_v25, %v5252_v21  ;;  %v5275_v8 = vmul.f32 %v5867_v25, %v5259_v22  ;;  %v5270_v28 = vmul.f32 %v5867_v25, %v5251_v1  ;;  %v5274_v19 = vmul.f32 %v5867_v25, %v5258_v17 }
 0x87b   :  { %v5273_v26 = vmax.f32 %v5271_v11, 0.0  ;;  %v5277_v30 = vmax.f32 %v5275_v8, 0.0  ;;  %v5272_v6 = vmax.f32 %v5270_v28, 0.0  ;;  %v5276_v2 = vmax.f32 %v5274_v19, 0.0 }
 0x87d   :  { %5284 = vmatprep.subr.mxu0 %v5273_v26  ;;  %5361 = vmatprep.subr.mxu1 %v5277_v30 }
 0x87e   :  { %5285 = vmatpush1.msra.mxu0 %v5272_v6  ;;  %5362 = vmatpush1.msra.mxu1 %v5276_v2 }
 0x87f   :  { %5769 = vmatmul.mubr.msk.f32.vlgmr.msra.gmra.mrb[4].mxu0 %vm28_vm0, %v22_v55  ;;  %5502 = vmatprep.subr.mxu0 %v5495_v31 }
 0x880   :  { %5354 = vmatprep.mubr.f32.mxu0 %v10194_v29  ;;  %5503 = vmatpush1.msra.mxu0 %v5494_v61 }
 0x881   :  { %5771 = vmatmul.mubr.msk.f32.vlgmr.msra.gmra.mrb[4].mxu1 %vm28_vm0, %v22_v55  ;;  %5581 = vmatprep.subr.mxu1 %v5776_v10 }
 0x882   :  { %5431 = vmatprep.mubr.f32.mxu1 %v10194_v29  ;;  %5582 = vmatpush1.msra.mxu1 %v5775_v18 }
 0x883   :  { %5770 = vmatmul.mubr.msk.f32.gmra.mrb[6].mxu0 %vm28_vm0, %v23_v16 }
 0x884   :  { %5566 = vmatprep.mubr.f32.mxu0 %v10194_v29 }
 0x885   :  { %5772 = vmatmul.mubr.msk.f32.gmra.mrb[6].mxu1 %vm28_vm0, %v23_v16 }
 0x886   :  { %5645 = vmatprep.mubr.f32.mxu1 %v10194_v29 }
 0x887   :  { %5773 = vmatmul.mubr.msk.f32.vlgmr.msra.gmra.mrb[8].mxu0 %vm28_vm0, %v24_v60 }
 0x888   :  { %5572 = vmatprep.mubr.f32.mxu0 %v10194_v29 }
 0x889   :  { %5777 = vmatmul.mubr.msk.f32.vlgmr.msra.gmra.mrb[8].mxu1 %vm28_vm0, %v24_v60 }
 0x88a   :  { %5651 = vmatprep.mubr.f32.mxu1 %v10194_v29 }
 0x88b   :  { %5774 = vmatmul.mubr.msk.f32.gmra.mrb[10].mxu0 %vm28_vm0, %v25_v27 }
 0x88d   :  { %5778 = vmatmul.mubr.msk.f32.gmra.mrb[10].mxu1 %vm28_vm0, %v25_v27 }
 0x952   :  { %v5350_v40 = vpop.f32.mrb[4].mxu0 }
 0x953   :  { %v5352_v51 = vpop.f32.mrb[5].mxu0 }
 0x954   :  { %v5438_v44 = vadd.f32 %v5352_v51, %v5350_v40  ;;  %v5427_v4 = vpop.f32.mrb[4].mxu1 }
 0x955   :  { %v5429_v24 = vpop.f32.mrb[5].mxu1 }
 0x956   :  { %5439 = vadd.xlane.f32.xlu0 %v5438_v44  ;;  %v5356_v33 = vpop.f32.mrb[6].mxu0  ;;  %v5444_v12 = vadd.f32 %v5429_v24, %v5427_v4 }
 0x957   :  { %v5358_v50 = vpop.f32.mrb[7].mxu0 }
 0x958   :  { %v5441_v13 = vadd.f32 %v5358_v50, %v5356_v33  ;;  %v5433_v39 = vpop.f32.mrb[6].mxu1 }
 0x959   :  { %v5435_v20 = vpop.f32.mrb[7].mxu1 }
 0x95a   :  { %5445 = vadd.xlane.f32.xlu0 %v5444_v12  ;;  %v5568_v7 = vpop.f32.mrb[8].mxu0  ;;  %5442 = vadd.xlane.f32.xlu1 %v5441_v13  ;;  %v5447_v62 = vadd.f32 %v5435_v20, %v5433_v39 }
 0x95b   :  { %v5570_v36 = vpop.f32.mrb[9].mxu0 }
 0x95c   :  { %v5658_v9 = vadd.f32 %v5570_v36, %v5568_v7  ;;  %v5647_v59 = vpop.f32.mrb[8].mxu1 }
 0x95d   :  { %v5649_v57 = vpop.f32.mrb[9].mxu1 }
 0x95e   :  { %5659 = vadd.xlane.f32.xlu0 %v5658_v9  ;;  %v5574_v23 = vpop.f32.mrb[10].mxu0  ;;  %5448 = vadd.xlane.f32.xlu1 %v5447_v62  ;;  %v5664_v5 = vadd.f32 %v5649_v57, %v5647_v59 }
 0x95f   :  { %v5576_v37 = vpop.f32.mrb[11].mxu0 }
 0x960   :  { %v5661_v45 = vadd.f32 %v5576_v37, %v5574_v23  ;;  %v5653_v29 = vpop.f32.mrb[10].mxu1 }
 0x961   :  { %v5655_v14 = vpop.f32.mrb[11].mxu1 }
 0x962   :  { %5665 = vadd.xlane.f32.xlu0 %v5664_v5  ;;  %5662 = vadd.xlane.f32.xlu1 %v5661_v45  ;;  %v5667_v41 = vadd.f32 %v5655_v14, %v5653_v29 }
 0x966   :  { %5668 = vadd.xlane.f32.xlu1 %v5667_v41 }
 0x9e3   :  { %v5440_v63 = vpop.xlane.xlu0 %5439 }
 0x9e7   :  { %v5446_v53 = vpop.xlane.xlu0 %5445  ;;  %v5443_v43 = vpop.xlane.xlu1 %5442 }
 0x9e8   :  { %v5452_v32 = vadd.f32 %v5446_v53, %v5440_v63 }
 0x9ea   :  { %v5454_v52 = vmul.f32 0.001953125, %v5452_v32 }
 0x9eb   :  { %v5660_v46 = vpop.xlane.xlu0 %5659  ;;  %v5449_v35 = vpop.xlane.xlu1 %5448 }
 0x9ec   :  { %v5453_v54 = vadd.f32 %v5449_v35, %v5443_v43  ;;  %v9290_v1 = vsub.f32 %v5350_v40, %v5454_v52  ;;  %v9292_v21 = vsub.f32 %v5352_v51, %v5454_v52  ;;  %v9294_v17 = vsub.f32 %v5427_v4, %v5454_v52 }
 0x9ed   :  { %v9296_v22 = vsub.f32 %v5429_v24, %v5454_v52 }
 0x9ee   :  { %v5455_v47 = vmul.f32 0.001953125, %v5453_v54  ;;  %v5460_v34 = vmul.f32 %v9290_v1, %v9290_v1  ;;  %v5461_v56 = vmul.f32 %v9292_v21, %v9292_v21  ;;  %v5474_v38 = vmul.f32 %v9294_v17, %v9294_v17 }
 0x9ef   :  { %v5666_v49 = vpop.xlane.xlu0 %5665  ;;  %v5663_v42 = vpop.xlane.xlu1 %5662  ;;  %v5475_v48 = vmul.f32 %v9296_v22, %v9296_v22 }
 0x9f0   :  { %v5672_v0 = vadd.f32 %v5666_v49, %v5660_v46  ;;  %v5464_v15 = vadd.f32 %v5461_v56, %v5460_v34  ;;  %v9306_v58 = vsub.f32 %v5356_v33, %v5455_v47  ;;  %v9308_v3 = vsub.f32 %v5358_v50, %v5455_v47 }
 0x9f1   :  { %v9310_v25 = vsub.f32 %v5433_v39, %v5455_v47  ;;  %v9312_v11 = vsub.f32 %v5435_v20, %v5455_v47  ;;  %v5478_v30 = vadd.f32 %v5475_v48, %v5474_v38 }
 0x9f2   :  { %v5674_v8 = vmul.f32 0.001953125, %v5672_v0  ;;  %5465 = vadd.xlane.f32.xlu0 %v5464_v15  ;;  %v5462_v28 = vmul.f32 %v9306_v58, %v9306_v58  ;;  %v5463_v19 = vmul.f32 %v9308_v3, %v9308_v3 }
 0x9f3   :  { %v5669_v26 = vpop.xlane.xlu1 %5668  ;;  %v5476_v6 = vmul.f32 %v9310_v25, %v9310_v25  ;;  %v5477_v2 = vmul.f32 %v9312_v11, %v9312_v11 }
 0x9f4   :  { %v5673_v55 = vadd.f32 %v5669_v26, %v5663_v42  ;;  %v5467_v31 = vadd.f32 %v5463_v19, %v5462_v28  ;;  %v5676_v61 = vsub.f32 %v5568_v7, %v5674_v8  ;;  %v5677_v10 = vsub.f32 %v5570_v36, %v5674_v8 }
 0x9f5   :  { %v5690_v18 = vsub.f32 %v5647_v59, %v5674_v8  ;;  %v5691_v16 = vsub.f32 %v5649_v57, %v5674_v8  ;;  %v5481_v51 = vadd.f32 %v5477_v2, %v5476_v6 }
 0x9f6   :  { %v5675_v60 = vmul.f32 0.001953125, %v5673_v55  ;;  %5479 = vadd.xlane.f32.xlu0 %v5478_v30  ;;  %5468 = vadd.xlane.f32.xlu1 %v5467_v31  ;;  %v5680_v27 = vmul.f32 %v5676_v61, %v5676_v61  ;;  %v5681_v40 = vmul.f32 %v5677_v10, %v5677_v10 }
 0x9f7   :  { %v5694_v44 = vmul.f32 %v5690_v18, %v5690_v18  ;;  %v5695_v4 = vmul.f32 %v5691_v16, %v5691_v16 }
 0x9f8   :  { %v5684_v24 = vadd.f32 %v5681_v40, %v5680_v27  ;;  %v9322_v33 = vsub.f32 %v5574_v23, %v5675_v60  ;;  %v9324_v12 = vsub.f32 %v5576_v37, %v5675_v60  ;;  %v9326_v50 = vsub.f32 %v5653_v29, %v5675_v60 }
 0x9f9   :  { %v9328_v13 = vsub.f32 %v5655_v14, %v5675_v60  ;;  %v5698_v7 = vadd.f32 %v5695_v4, %v5694_v44 }
 0x9fa   :  { %5685 = vadd.xlane.f32.xlu0 %v5684_v24  ;;  %5482 = vadd.xlane.f32.xlu1 %v5481_v51  ;;  %v5682_v39 = vmul.f32 %v9322_v33, %v9322_v33  ;;  %v5683_v20 = vmul.f32 %v9324_v12, %v9324_v12  ;;  %v5696_v36 = vmul.f32 %v9326_v50, %v9326_v50 }
 0x9fb   :  { %v5697_v9 = vmul.f32 %v9328_v13, %v9328_v13 }
 0x9fc   :  { %v5687_v62 = vadd.f32 %v5683_v20, %v5682_v39 }
 0x9fd   :  { %v5701_v59 = vadd.f32 %v5697_v9, %v5696_v36 }
 0x9fe   :  { %5699 = vadd.xlane.f32.xlu0 %v5698_v7  ;;  %5688 = vadd.xlane.f32.xlu1 %v5687_v62 }
 0xa02   :  { %5702 = vadd.xlane.f32.xlu1 %v5701_v59 }
 0xa7f   :  { %v5466_v57 = vpop.xlane.xlu0 %5465 }
 0xa83   :  { %v5480_v23 = vpop.xlane.xlu0 %5479  ;;  %v5469_v5 = vpop.xlane.xlu1 %5468 }
 0xa84   :  { %v5486_v37 = vadd.f32 %v5480_v23, %v5466_v57 }
 0xa86   :  { %v5488_v45 = vmul.f32 0.001953125, %v5486_v37 }
 0xa87   :  { %v5686_v29 = vpop.xlane.xlu0 %5685  ;;  %v5483_v14 = vpop.xlane.xlu1 %5482 }
 0xa88   :  { %v5487_v41 = vadd.f32 %v5483_v14, %v5469_v5  ;;  %v5490_v63 = vadd.f32 1e-05, %v5488_v45 }
 0xa8a   :  { %v5489_v53 = vmul.f32 0.001953125, %v5487_v41  ;;  %5868 = vrsqrt.f32 %v5490_v63 }
 0xa8b   :  { %v5700_v43 = vpop.xlane.xlu0 %5699  ;;  %v5689_v32 = vpop.xlane.xlu1 %5688 }
 0xa8c   :  { %v5706_v52 = vadd.f32 %v5700_v43, %v5686_v29  ;;  %v5491_v35 = vadd.f32 1e-05, %v5489_v53 }
 0xa8e   :  { %v5708_v46 = vmul.f32 0.001953125, %v5706_v52 }
 0xa8f   :  { %v5703_v54 = vpop.xlane.xlu1 %5702 }
 0xa90   :  { %v5710_v47 = vadd.f32 1e-05, %v5708_v46  ;;  %v5707_v34 = vadd.f32 %v5703_v54, %v5689_v32 }
 0xa92   :  { %5870 = vrsqrt.f32 %v5710_v47  ;;  %v5709_v56 = vmul.f32 0.001953125, %v5707_v34 }
 0xa93   :  { %5872 = vrsqrt.f32 %v5491_v35 }
 0xa94   :  { %v5711_v49 = vadd.f32 1e-05, %v5709_v56  ;;  %v5869_v42 = vpop.eup %5868 }
 0xa95   :  { %v5714_v48 = vmul.f32 %v5869_v42, %v9290_v1  ;;  %v5715_v0 = vmul.f32 %v5869_v42, %v9292_v21  ;;  %v5734_v15 = vmul.f32 %v5869_v42, %v9294_v17  ;;  %v5735_v8 = vmul.f32 %v5869_v42, %v9296_v22 }
 0xa96   :  { %5874 = vrsqrt.f32 %v5711_v49 }
 0xa9c   :  { %v5871_v38 = vpop.eup %5870 }
 0xa9d   :  { %v5873_v28 = vpop.eup %5872  ;;  %v5718_v19 = vmul.f32 %v5871_v38, %v5676_v61  ;;  %v5719_v26 = vmul.f32 %v5871_v38, %v5677_v10  ;;  %v5738_v30 = vmul.f32 %v5871_v38, %v5690_v18  ;;  %v5739_v6 = vmul.f32 %v5871_v38, %v5691_v16 }
 0xa9e   :  { %v5716_v40 = vmul.f32 %v5873_v28, %v9306_v58  ;;  %v5717_v1 = vmul.f32 %v5873_v28, %v9308_v3  ;;  %v5736_v21 = vmul.f32 %v5873_v28, %v9310_v25  ;;  %v5737_v17 = vmul.f32 %v5873_v28, %v9312_v11 }
 0xa9f   :  { %v5722_v2 = vadd.f32 %v5718_v19, %v5714_v48  ;;  %v5723_v55 = vadd.f32 %v5719_v26, %v5715_v0  ;;  %v5742_v31 = vadd.f32 %v5738_v30, %v5734_v15  ;;  %v5743_v60 = vadd.f32 %v5739_v6, %v5735_v8 }
 0xaa0   :  { %v5875_v27 = vpop.eup %5874 }
 0xaa1   :  { %v5726_v51 = vmax.f32 %v5722_v2, 0.0  ;;  %v5727_v22 = vmax.f32 %v5723_v55, 0.0  ;;  %v5746_v44 = vmax.f32 %v5742_v31, 0.0  ;;  %v5747_v61 = vmax.f32 %v5743_v60, 0.0 }
 0xaa2   :  { %v5720_v10 = vmul.f32 %v5875_v27, %v9322_v33  ;;  %v5721_v18 = vmul.f32 %v5875_v27, %v9324_v12  ;;  %v5740_v16 = vmul.f32 %v5875_v27, %v9326_v50  ;;  %v5741_v4 = vmul.f32 %v5875_v27, %v9328_v13 }
 0xaa3   :  { %5730 = vst [vmem:[%s9379_s5] sm:$0xff] %v5726_v51  ;;  %5731 = vst [vmem:[%s9379_s5 + $0x8] sm:$0xff] %v5727_v22 }
 0xaa4   :  { %5779 = vst [vmem:[%s9379_s5 + $0x20] sm:$0xff] %v5746_v44  ;;  %5780 = vst [vmem:[%s9379_s5 + $0x28] sm:$0xff] %v5747_v61  ;;  %v5724_v58 = vadd.f32 %v5720_v10, %v5716_v40  ;;  %v5725_v3 = vadd.f32 %v5721_v18, %v5717_v1  ;;  %v5744_v25 = vadd.f32 %v5740_v16, %v5736_v21 }
 0xaa5   :  { %v5745_v11 = vadd.f32 %v5741_v4, %v5737_v17 }
 0xaa6   :  { %v5728_v24 = vmax.f32 %v5724_v58, 0.0  ;;  %v5729_v33 = vmax.f32 %v5725_v3, 0.0  ;;  %v5748_v12 = vmax.f32 %v5744_v25, 0.0 }
 0xaa7   :  { %v5749_v50 = vmax.f32 %v5745_v11, 0.0 }
 0xaa8   :  { %5732 = vst [vmem:[%s9379_s5 + $0x10] sm:$0xff] %v5728_v24  ;;  %5733 = vst [vmem:[%s9379_s5 + $0x18] sm:$0xff] %v5729_v33 }
 0xaa9   :  { %5781 = vst [vmem:[%s9379_s5 + $0x30] sm:$0xff] %v5748_v12  ;;  %5782 = vst [vmem:[%s9379_s5 + $0x38] sm:$0xff] %v5749_v50 }

</bundles_post_ra>
